<compile_context>
chip_gen: v6e
topology: v6e:2x2x1
jax: 0.10.0
libtpu: 0.0.40
codegen_flags: <defaults>
</compile_context>

<pallas_src>
import jax
import jax.numpy as jnp
import numpy as np
from jax.experimental import pallas as pl
from jax.experimental.pallas import tpu as pltpu

EPS = 1e-5
BF16 = jnp.bfloat16


# ------------------- banded (conv -> matmul) weight construction ------------------- #

def _banded_conv1_weights(w1, wp, wo, stride, dtype):
    """w1: (kh, kw, 1, cout) HWIO -> (kh, wp, wo*cout) banded matrices.

    Column layout: col = (ow % 2) * (wo//2 * cout) + (ow // 2) * cout + c, i.e.
    even/odd output columns live in separate lane halves so MaxPool along W is a
    single max of the two 128-aligned halves.
    """
    kh, kw, _, cout = w1.shape
    w1r = w1.reshape(kh, kw, cout)
    groups = []
    for par in range(2):
        bands = []
        for owh in range(wo // 2):
            ow = 2 * owh + par
            bands.append(jnp.pad(w1r, ((0, 0), (stride * ow, wp - kw - stride * ow), (0, 0))))
        groups.append(jnp.stack(bands, axis=2))        # (kh, wp, wo//2, cout)
    m = jnp.stack(groups, axis=2)                      # (kh, wp, 2, wo//2, cout)
    return m.reshape(kh, wp, wo * cout).astype(dtype)


def _banded_conv2_weights(w2, wp, wo, dtype):
    """w2: (kh, kw, cin, cout) HWIO -> (kh, wp*cin, wo*cout) banded matrices.

    Row layout matches the merged (w, c) layout of the padded pooled map
    (row = wj*cin + ci); column layout = (ow%2)*half + (ow//2)*cout + co.
    """
    kh, kw, cin, cout = w2.shape
    groups = []
    for par in range(2):
        bands = []
        for owh in range(wo // 2):
            ow = 2 * owh + par
            bands.append(jnp.pad(w2, ((0, 0), (ow, wp - kw - ow), (0, 0), (0, 0))))
        groups.append(jnp.stack(bands, axis=3))        # (kh, wp, cin, wo//2, cout)
    m = jnp.stack(groups, axis=3)                      # (kh, wp, cin, 2, wo//2, cout)
    return m.reshape(kh, wp * cin, wo * cout).astype(dtype)


def _bn_affine(gamma, beta, rmean, rvar):
    scale = gamma / jnp.sqrt(rvar + EPS)
    return scale, beta - rmean * scale


# --------------------------------- fused encoder ---------------------------------- #

def deepfont_encoder(x_nchw, params):
    """Conv(1,64,12,2,1)+ReLU+BN+Pool -> Conv(64,128,3,1,1)+ReLU+BN+Pool, in one kernel."""
    N, cin, H, W = x_nchw.shape
    assert cin == 1

    K1, S1, P1 = 12, 2, 1
    ho1 = (H + 2 * P1 - K1) // S1 + 1            # 12
    wo1 = (W + 2 * P1 - K1) // S1 + 1            # 12
    ph1, pw1 = ho1 // 2, wo1 // 2                # 6, 6   (after MaxPool2d(2,2))
    ho2, wo2 = ph1, pw1                          # 6, 6   (3x3, stride 1, pad 1)
    ph2, pw2 = ho2 // 2, wo2 // 2                # 3, 3
    C1, C2 = 64, 128
    wp1 = W + 2 * P1                             # 34  padded input width
    wp2 = pw1 + 2                                # 8   padded pooled width
    assert ho1 % 2 == 0 and wo1 % 2 == 0 and ho2 % 2 == 0 and wo2 % 2 == 0

    # Tiny host-side prep: pad + row-parity split of the input, banded weights,
    # folded epilogue vectors (conv bias / BN scale / BN shift, tiled to lane width).
    x = x_nchw.reshape(N, H, W).astype(jnp.float32)
    xpad = jnp.pad(x, ((0, 0), (P1, P1), (P1, P1)))                       # (N, 34, 34)
    xs = jnp.stack([xpad[:, 0::2, :], xpad[:, 1::2, :]], axis=1)          # (N, 2, 17, 34)

    m1 = _banded_conv1_weights(params['w1'], wp1, wo1, S1, BF16)          # (12, 34, 768)
    m2 = _banded_conv2_weights(params['w2'], wp2, wo2, BF16)              # (3, 512, 768)

    sc1, sh1 = _bn_affine(params['g1'], params['beta1'], params['rm1'], params['rv1'])
    sc2, sh2 = _bn_affine(params['g2'], params['beta2'], params['rm2'], params['rv2'])
    ep1 = jnp.stack([jnp.tile(params['b1'], wo1), jnp.tile(sc1, wo1),
                     jnp.tile(sh1, wo1)]).astype(jnp.float32)             # (3, 768)
    ep2 = jnp.stack([jnp.tile(params['b2'], wo2), jnp.tile(sc2, wo2),
                     jnp.tile(sh2, wo2)]).astype(jnp.float32)             # (3, 768)

    half1 = (wo1 // 2) * C1                                               # 384
    half2 = (wo2 // 2) * C2                                               # 384

    def kernel(x_ref, m1_ref, m2_ref, ep1_ref, ep2_ref, o_ref, pool_ref):
        # ---- layer 1: Conv2d(1,64,12,2,1) + bias + ReLU + BN + MaxPool2d(2,2) ----
        acc = jnp.zeros((ho1, wo1 * C1), jnp.float32)
        for ki in range(K1):
            rows = x_ref[0, ki % 2, ki // 2:ki // 2 + ho1, :].astype(BF16)   # (12, 34)
            acc = acc + jnp.dot(rows, m1_ref[ki], preferred_element_type=jnp.float32)
        act = jnp.maximum(acc + ep1_ref[0:1, :], 0.0) * ep1_ref[1:2, :] + ep1_ref[2:3, :]

        # fused MaxPool2d(2,2): write zero-padded pooled map (8, 8*64) into VMEM
        pool_ref[...] = jnp.zeros_like(pool_ref)
        for t in range(ph1):
            row = jnp.maximum(act[2 * t:2 * t + 1, :], act[2 * t + 1:2 * t + 2, :])
            pool_ref[t + 1:t + 2, C1:C1 + pw1 * C1] = jnp.maximum(row[:, :half1],
                                                                  row[:, half1:])

        # ---- layer 2: Conv2d(64,128,3,1,1) + bias + ReLU + BN + MaxPool2d(2,2) ----
        acc = jnp.zeros((ho2, wo2 * C2), jnp.float32)
        for ki in range(3):
            rows = pool_ref[ki:ki + ho2, :].astype(BF16)                      # (6, 512)
            acc = acc + jnp.dot(rows, m2_ref[ki], preferred_element_type=jnp.float32)
        act = jnp.maximum(acc + ep2_ref[0:1, :], 0.0) * ep2_ref[1:2, :] + ep2_ref[2:3, :]

        for t in range(ph2):
            row = jnp.maximum(act[2 * t:2 * t + 1, :], act[2 * t + 1:2 * t + 2, :])
            o_ref[0, t:t + 1, :] = jnp.maximum(row[:, :half2], row[:, half2:])

    flops = N * (2 * K1 * ho1 * wp1 * wo1 * C1 + 2 * 3 * ho2 * wp2 * C1 * wo2 * C2)
    bytes_accessed = (xs.size * 4 + m1.size * 2 + m2.size * 2 +
                      ep1.size * 4 + ep2.size * 4 + N * ph2 * pw2 * C2 * 4)

    out = pl.pallas_call(
        kernel,
        out_shape=jax.ShapeDtypeStruct((N, ph2, pw2 * C2), jnp.float32),
        grid=(N,),
        in_specs=[
            pl.BlockSpec((1,) + xs.shape[1:], lambda n: (n, 0, 0, 0)),
            pl.BlockSpec(m1.shape, lambda n: (0, 0, 0)),
            pl.BlockSpec(m2.shape, lambda n: (0, 0, 0)),
            pl.BlockSpec(ep1.shape, lambda n: (0, 0)),
            pl.BlockSpec(ep2.shape, lambda n: (0, 0)),
        ],
        out_specs=pl.BlockSpec((1, ph2, pw2 * C2), lambda n: (n, 0, 0)),
        scratch_shapes=[pltpu.VMEM((ph1 + 2, (pw1 + 2) * C1), jnp.float32)],
        compiler_params=pltpu.CompilerParams(dimension_semantics=("parallel",)),
        cost_estimate=pl.CostEstimate(flops=flops, transcendentals=0,
                                      bytes_accessed=bytes_accessed),
    )(xs, m1, m2, ep1, ep2)

    out = out.reshape(N, ph2, pw2, C2)             # (n, oh, ow, c)
    return jnp.transpose(out, (0, 3, 1, 2))        # -> NCHW (n, 128, 3, 3)


# ------------------------------ pure-JAX reference -------------------------------- #

def ref_forward(x_nchw, params):
    x = jnp.transpose(x_nchw, (0, 2, 3, 1)).astype(jnp.float32)

    def conv_relu_bn(x, w, b, g, beta, rm, rv, stride, pad):
        y = jax.lax.conv_general_dilated(
            x, w, window_strides=(stride, stride),
            padding=((pad, pad), (pad, pad)),
            dimension_numbers=('NHWC', 'HWIO', 'NHWC'))
        y = jnp.maximum(y + b, 0.0)
        return (y - rm) / jnp.sqrt(rv + EPS) * g + beta

    def pool(y):
        N, H, W, C = y.shape
        return y.reshape(N, H // 2, 2, W // 2, 2, C).max(axis=(2, 4))

    y = pool(conv_relu_bn(x, params['w1'], params['b1'], params['g1'],
                          params['beta1'], params['rm1'], params['rv1'], 2, 1))
    z = pool(conv_relu_bn(y, params['w2'], params['b2'], params['g2'],
                          params['beta2'], params['rm2'], params['rv2'], 1, 1))
    return jnp.transpose(z, (0, 3, 1, 2))


# ------------------------------------- main ---------------------------------------- #

if __name__ == "__main__":
    key = jax.random.PRNGKey(0)
    k = jax.random.split(key, 13)

    params = {
        # conv weights stored HWIO (kh, kw, Cin, Cout)
        'w1': jax.random.normal(k[0], (12, 12, 1, 64), jnp.float32) / 12.0,
        'b1': jax.random.normal(k[1], (64,), jnp.float32) * 0.1,
        'g1': 1.0 + 0.1 * jax.random.normal(k[2], (64,), jnp.float32),
        'beta1': 0.1 * jax.random.normal(k[3], (64,), jnp.float32),
        'rm1': 0.1 * jax.random.normal(k[4], (64,), jnp.float32),
        'rv1': 1.0 + 0.5 * jax.random.uniform(k[5], (64,), jnp.float32),
        'w2': jax.random.normal(k[6], (3, 3, 64, 128), jnp.float32) / 24.0,
        'b2': jax.random.normal(k[7], (128,), jnp.float32) * 0.1,
        'g2': 1.0 + 0.1 * jax.random.normal(k[8], (128,), jnp.float32),
        'beta2': 0.1 * jax.random.normal(k[9], (128,), jnp.float32),
        'rm2': 0.1 * jax.random.normal(k[10], (128,), jnp.float32),
        'rv2': 1.0 + 0.5 * jax.random.uniform(k[11], (128,), jnp.float32),
    }

    # input in PyTorch NCHW convention: [batch=2, channels=1, H=32, W=32]
    x = jax.random.normal(k[12], (2, 1, 32, 32), jnp.float32)

    out = jax.jit(deepfont_encoder)(x, params)
    out = jax.block_until_ready(out)
    assert out.shape == (2, 128, 3, 3), out.shape

    ref = ref_forward(x, params)
    np.testing.assert_allclose(np.asarray(out), np.asarray(ref), rtol=5e-2, atol=5e-2)

    print("KERNEL_OK")
</pallas_src>

<mosaic_0001>
module attributes {stable_mosaic.version = 11 : i64} {
  func.func @kernel(%arg0: i32, %arg1: memref<1x2x17x34xf32, #tpu.memory_space<vmem>>, %arg2: memref<12x34x768xbf16, #tpu.memory_space<vmem>>, %arg3: memref<3x512x768xbf16, #tpu.memory_space<vmem>>, %arg4: memref<3x768xf32, #tpu.memory_space<vmem>>, %arg5: memref<3x768xf32, #tpu.memory_space<vmem>>, %arg6: memref<1x3x384xf32, #tpu.memory_space<vmem>>, %arg7: memref<8x512xf32, #tpu.memory_space<vmem>>) attributes {dimension_semantics = [#tpu.dimension_semantics<parallel>], iteration_bounds = array<i64: 2>, scalar_prefetch = 0 : i64, scratch_operands = 1 : i64, tpu.core_type = #tpu.core_type<tc>, window_params = [{transform_indices = @transform_0, window_bounds = array<i64: 1, 2, 17, 34>}, {pipeline_mode = #tpu.pipeline_mode<synchronous>, transform_indices = @transform_1, window_bounds = array<i64: 12, 34, 768>}, {pipeline_mode = #tpu.pipeline_mode<synchronous>, transform_indices = @transform_2, window_bounds = array<i64: 3, 512, 768>}, {pipeline_mode = #tpu.pipeline_mode<synchronous>, transform_indices = @transform_3, window_bounds = array<i64: 3, 768>}, {pipeline_mode = #tpu.pipeline_mode<synchronous>, transform_indices = @transform_4, window_bounds = array<i64: 3, 768>}, {transform_indices = @transform_5, window_bounds = array<i64: 1, 3, 384>}]} {
    %cst = arith.constant 0.000000e+00 : f32
    %0 = vector.broadcast %cst : f32 to vector<12x768xf32>
    %c0 = arith.constant 0 : index
    %c0_0 = arith.constant 0 : index
    %c0_1 = arith.constant 0 : index
    %c0_2 = arith.constant 0 : index
    %1 = vector.load %arg1[%c0, %c0_0, %c0_1, %c0_2] : memref<1x2x17x34xf32, #tpu.memory_space<vmem>>, vector<1x1x12x34xf32>
    %2 = vector.shape_cast %1 : vector<1x1x12x34xf32> to vector<12x34xf32>
    %3 = arith.truncf %2 : vector<12x34xf32> to vector<12x34xbf16>
    %c0_3 = arith.constant 0 : index
    %c0_4 = arith.constant 0 : index
    %c0_5 = arith.constant 0 : index
    %4 = vector.load %arg2[%c0_3, %c0_4, %c0_5] : memref<12x34x768xbf16, #tpu.memory_space<vmem>>, vector<1x34x768xbf16>
    %5 = vector.shape_cast %4 : vector<1x34x768xbf16> to vector<34x768xbf16>
    %cst_6 = arith.constant dense<0.000000e+00> : vector<12x768xf32>
    %6 = tpu.matmul %3, %5, %cst_6 {dimension_numbers = #tpu.dot_dimension_numbers<[1], [0], [0], [1], [0, 0, 1, 1], [], []>} : vector<12x34xbf16>, vector<34x768xbf16>, vector<12x768xf32> -> vector<12x768xf32>
    %7 = arith.addf %0, %6 : vector<12x768xf32>
    %c0_7 = arith.constant 0 : index
    %c1 = arith.constant 1 : index
    %c0_8 = arith.constant 0 : index
    %c0_9 = arith.constant 0 : index
    %8 = vector.load %arg1[%c0_7, %c1, %c0_8, %c0_9] : memref<1x2x17x34xf32, #tpu.memory_space<vmem>>, vector<1x1x12x34xf32>
    %9 = vector.shape_cast %8 : vector<1x1x12x34xf32> to vector<12x34xf32>
    %10 = arith.truncf %9 : vector<12x34xf32> to vector<12x34xbf16>
    %c1_10 = arith.constant 1 : index
    %c0_11 = arith.constant 0 : index
    %c0_12 = arith.constant 0 : index
    %11 = vector.load %arg2[%c1_10, %c0_11, %c0_12] : memref<12x34x768xbf16, #tpu.memory_space<vmem>>, vector<1x34x768xbf16>
    %12 = vector.shape_cast %11 : vector<1x34x768xbf16> to vector<34x768xbf16>
    %cst_13 = arith.constant dense<0.000000e+00> : vector<12x768xf32>
    %13 = tpu.matmul %10, %12, %cst_13 {dimension_numbers = #tpu.dot_dimension_numbers<[1], [0], [0], [1], [0, 0, 1, 1], [], []>} : vector<12x34xbf16>, vector<34x768xbf16>, vector<12x768xf32> -> vector<12x768xf32>
    %14 = arith.addf %7, %13 : vector<12x768xf32>
    %c0_14 = arith.constant 0 : index
    %c0_15 = arith.constant 0 : index
    %c1_16 = arith.constant 1 : index
    %c0_17 = arith.constant 0 : index
    %15 = vector.load %arg1[%c0_14, %c0_15, %c1_16, %c0_17] : memref<1x2x17x34xf32, #tpu.memory_space<vmem>>, vector<1x1x12x34xf32>
    %16 = vector.shape_cast %15 : vector<1x1x12x34xf32> to vector<12x34xf32>
    %17 = arith.truncf %16 : vector<12x34xf32> to vector<12x34xbf16>
    %c2 = arith.constant 2 : index
    %c0_18 = arith.constant 0 : index
    %c0_19 = arith.constant 0 : index
    %18 = vector.load %arg2[%c2, %c0_18, %c0_19] : memref<12x34x768xbf16, #tpu.memory_space<vmem>>, vector<1x34x768xbf16>
    %19 = vector.shape_cast %18 : vector<1x34x768xbf16> to vector<34x768xbf16>
    %cst_20 = arith.constant dense<0.000000e+00> : vector<12x768xf32>
    %20 = tpu.matmul %17, %19, %cst_20 {dimension_numbers = #tpu.dot_dimension_numbers<[1], [0], [0], [1], [0, 0, 1, 1], [], []>} : vector<12x34xbf16>, vector<34x768xbf16>, vector<12x768xf32> -> vector<12x768xf32>
    %21 = arith.addf %14, %20 : vector<12x768xf32>
    %c0_21 = arith.constant 0 : index
    %c1_22 = arith.constant 1 : index
    %c1_23 = arith.constant 1 : index
    %c0_24 = arith.constant 0 : index
    %22 = vector.load %arg1[%c0_21, %c1_22, %c1_23, %c0_24] : memref<1x2x17x34xf32, #tpu.memory_space<vmem>>, vector<1x1x12x34xf32>
    %23 = vector.shape_cast %22 : vector<1x1x12x34xf32> to vector<12x34xf32>
    %24 = arith.truncf %23 : vector<12x34xf32> to vector<12x34xbf16>
    %c3 = arith.constant 3 : index
    %c0_25 = arith.constant 0 : index
    %c0_26 = arith.constant 0 : index
    %25 = vector.load %arg2[%c3, %c0_25, %c0_26] : memref<12x34x768xbf16, #tpu.memory_space<vmem>>, vector<1x34x768xbf16>
    %26 = vector.shape_cast %25 : vector<1x34x768xbf16> to vector<34x768xbf16>
    %cst_27 = arith.constant dense<0.000000e+00> : vector<12x768xf32>
    %27 = tpu.matmul %24, %26, %cst_27 {dimension_numbers = #tpu.dot_dimension_numbers<[1], [0], [0], [1], [0, 0, 1, 1], [], []>} : vector<12x34xbf16>, vector<34x768xbf16>, vector<12x768xf32> -> vector<12x768xf32>
    %28 = arith.addf %21, %27 : vector<12x768xf32>
    %c0_28 = arith.constant 0 : index
    %c0_29 = arith.constant 0 : index
    %c2_30 = arith.constant 2 : index
    %c0_31 = arith.constant 0 : index
    %29 = vector.load %arg1[%c0_28, %c0_29, %c2_30, %c0_31] : memref<1x2x17x34xf32, #tpu.memory_space<vmem>>, vector<1x1x12x34xf32>
    %30 = vector.shape_cast %29 : vector<1x1x12x34xf32> to vector<12x34xf32>
    %31 = arith.truncf %30 : vector<12x34xf32> to vector<12x34xbf16>
    %c4 = arith.constant 4 : index
    %c0_32 = arith.constant 0 : index
    %c0_33 = arith.constant 0 : index
    %32 = vector.load %arg2[%c4, %c0_32, %c0_33] : memref<12x34x768xbf16, #tpu.memory_space<vmem>>, vector<1x34x768xbf16>
    %33 = vector.shape_cast %32 : vector<1x34x768xbf16> to vector<34x768xbf16>
    %cst_34 = arith.constant dense<0.000000e+00> : vector<12x768xf32>
    %34 = tpu.matmul %31, %33, %cst_34 {dimension_numbers = #tpu.dot_dimension_numbers<[1], [0], [0], [1], [0, 0, 1, 1], [], []>} : vector<12x34xbf16>, vector<34x768xbf16>, vector<12x768xf32> -> vector<12x768xf32>
    %35 = arith.addf %28, %34 : vector<12x768xf32>
    %c0_35 = arith.constant 0 : index
    %c1_36 = arith.constant 1 : index
    %c2_37 = arith.constant 2 : index
    %c0_38 = arith.constant 0 : index
    %36 = vector.load %arg1[%c0_35, %c1_36, %c2_37, %c0_38] : memref<1x2x17x34xf32, #tpu.memory_space<vmem>>, vector<1x1x12x34xf32>
    %37 = vector.shape_cast %36 : vector<1x1x12x34xf32> to vector<12x34xf32>
    %38 = arith.truncf %37 : vector<12x34xf32> to vector<12x34xbf16>
    %c5 = arith.constant 5 : index
    %c0_39 = arith.constant 0 : index
    %c0_40 = arith.constant 0 : index
    %39 = vector.load %arg2[%c5, %c0_39, %c0_40] : memref<12x34x768xbf16, #tpu.memory_space<vmem>>, vector<1x34x768xbf16>
    %40 = vector.shape_cast %39 : vector<1x34x768xbf16> to vector<34x768xbf16>
    %cst_41 = arith.constant dense<0.000000e+00> : vector<12x768xf32>
    %41 = tpu.matmul %38, %40, %cst_41 {dimension_numbers = #tpu.dot_dimension_numbers<[1], [0], [0], [1], [0, 0, 1, 1], [], []>} : vector<12x34xbf16>, vector<34x768xbf16>, vector<12x768xf32> -> vector<12x768xf32>
    %42 = arith.addf %35, %41 : vector<12x768xf32>
    %c0_42 = arith.constant 0 : index
    %c0_43 = arith.constant 0 : index
    %c3_44 = arith.constant 3 : index
    %c0_45 = arith.constant 0 : index
    %43 = vector.load %arg1[%c0_42, %c0_43, %c3_44, %c0_45] : memref<1x2x17x34xf32, #tpu.memory_space<vmem>>, vector<1x1x12x34xf32>
    %44 = vector.shape_cast %43 : vector<1x1x12x34xf32> to vector<12x34xf32>
    %45 = arith.truncf %44 : vector<12x34xf32> to vector<12x34xbf16>
    %c6 = arith.constant 6 : index
    %c0_46 = arith.constant 0 : index
    %c0_47 = arith.constant 0 : index
    %46 = vector.load %arg2[%c6, %c0_46, %c0_47] : memref<12x34x768xbf16, #tpu.memory_space<vmem>>, vector<1x34x768xbf16>
    %47 = vector.shape_cast %46 : vector<1x34x768xbf16> to vector<34x768xbf16>
    %cst_48 = arith.constant dense<0.000000e+00> : vector<12x768xf32>
    %48 = tpu.matmul %45, %47, %cst_48 {dimension_numbers = #tpu.dot_dimension_numbers<[1], [0], [0], [1], [0, 0, 1, 1], [], []>} : vector<12x34xbf16>, vector<34x768xbf16>, vector<12x768xf32> -> vector<12x768xf32>
    %49 = arith.addf %42, %48 : vector<12x768xf32>
    %c0_49 = arith.constant 0 : index
    %c1_50 = arith.constant 1 : index
    %c3_51 = arith.constant 3 : index
    %c0_52 = arith.constant 0 : index
    %50 = vector.load %arg1[%c0_49, %c1_50, %c3_51, %c0_52] : memref<1x2x17x34xf32, #tpu.memory_space<vmem>>, vector<1x1x12x34xf32>
    %51 = vector.shape_cast %50 : vector<1x1x12x34xf32> to vector<12x34xf32>
    %52 = arith.truncf %51 : vector<12x34xf32> to vector<12x34xbf16>
    %c7 = arith.constant 7 : index
    %c0_53 = arith.constant 0 : index
    %c0_54 = arith.constant 0 : index
    %53 = vector.load %arg2[%c7, %c0_53, %c0_54] : memref<12x34x768xbf16, #tpu.memory_space<vmem>>, vector<1x34x768xbf16>
    %54 = vector.shape_cast %53 : vector<1x34x768xbf16> to vector<34x768xbf16>
    %cst_55 = arith.constant dense<0.000000e+00> : vector<12x768xf32>
    %55 = tpu.matmul %52, %54, %cst_55 {dimension_numbers = #tpu.dot_dimension_numbers<[1], [0], [0], [1], [0, 0, 1, 1], [], []>} : vector<12x34xbf16>, vector<34x768xbf16>, vector<12x768xf32> -> vector<12x768xf32>
    %56 = arith.addf %49, %55 : vector<12x768xf32>
    %c0_56 = arith.constant 0 : index
    %c0_57 = arith.constant 0 : index
    %c4_58 = arith.constant 4 : index
    %c0_59 = arith.constant 0 : index
    %57 = vector.load %arg1[%c0_56, %c0_57, %c4_58, %c0_59] : memref<1x2x17x34xf32, #tpu.memory_space<vmem>>, vector<1x1x12x34xf32>
    %58 = vector.shape_cast %57 : vector<1x1x12x34xf32> to vector<12x34xf32>
    %59 = arith.truncf %58 : vector<12x34xf32> to vector<12x34xbf16>
    %c8 = arith.constant 8 : index
    %c0_60 = arith.constant 0 : index
    %c0_61 = arith.constant 0 : index
    %60 = vector.load %arg2[%c8, %c0_60, %c0_61] : memref<12x34x768xbf16, #tpu.memory_space<vmem>>, vector<1x34x768xbf16>
    %61 = vector.shape_cast %60 : vector<1x34x768xbf16> to vector<34x768xbf16>
    %cst_62 = arith.constant dense<0.000000e+00> : vector<12x768xf32>
    %62 = tpu.matmul %59, %61, %cst_62 {dimension_numbers = #tpu.dot_dimension_numbers<[1], [0], [0], [1], [0, 0, 1, 1], [], []>} : vector<12x34xbf16>, vector<34x768xbf16>, vector<12x768xf32> -> vector<12x768xf32>
    %63 = arith.addf %56, %62 : vector<12x768xf32>
    %c0_63 = arith.constant 0 : index
    %c1_64 = arith.constant 1 : index
    %c4_65 = arith.constant 4 : index
    %c0_66 = arith.constant 0 : index
    %64 = vector.load %arg1[%c0_63, %c1_64, %c4_65, %c0_66] : memref<1x2x17x34xf32, #tpu.memory_space<vmem>>, vector<1x1x12x34xf32>
    %65 = vector.shape_cast %64 : vector<1x1x12x34xf32> to vector<12x34xf32>
    %66 = arith.truncf %65 : vector<12x34xf32> to vector<12x34xbf16>
    %c9 = arith.constant 9 : index
    %c0_67 = arith.constant 0 : index
    %c0_68 = arith.constant 0 : index
    %67 = vector.load %arg2[%c9, %c0_67, %c0_68] : memref<12x34x768xbf16, #tpu.memory_space<vmem>>, vector<1x34x768xbf16>
    %68 = vector.shape_cast %67 : vector<1x34x768xbf16> to vector<34x768xbf16>
    %cst_69 = arith.constant dense<0.000000e+00> : vector<12x768xf32>
    %69 = tpu.matmul %66, %68, %cst_69 {dimension_numbers = #tpu.dot_dimension_numbers<[1], [0], [0], [1], [0, 0, 1, 1], [], []>} : vector<12x34xbf16>, vector<34x768xbf16>, vector<12x768xf32> -> vector<12x768xf32>
    %70 = arith.addf %63, %69 : vector<12x768xf32>
    %c0_70 = arith.constant 0 : index
    %c0_71 = arith.constant 0 : index
    %c5_72 = arith.constant 5 : index
    %c0_73 = arith.constant 0 : index
    %71 = vector.load %arg1[%c0_70, %c0_71, %c5_72, %c0_73] : memref<1x2x17x34xf32, #tpu.memory_space<vmem>>, vector<1x1x12x34xf32>
    %72 = vector.shape_cast %71 : vector<1x1x12x34xf32> to vector<12x34xf32>
    %73 = arith.truncf %72 : vector<12x34xf32> to vector<12x34xbf16>
    %c10 = arith.constant 10 : index
    %c0_74 = arith.constant 0 : index
    %c0_75 = arith.constant 0 : index
    %74 = vector.load %arg2[%c10, %c0_74, %c0_75] : memref<12x34x768xbf16, #tpu.memory_space<vmem>>, vector<1x34x768xbf16>
    %75 = vector.shape_cast %74 : vector<1x34x768xbf16> to vector<34x768xbf16>
    %cst_76 = arith.constant dense<0.000000e+00> : vector<12x768xf32>
    %76 = tpu.matmul %73, %75, %cst_76 {dimension_numbers = #tpu.dot_dimension_numbers<[1], [0], [0], [1], [0, 0, 1, 1], [], []>} : vector<12x34xbf16>, vector<34x768xbf16>, vector<12x768xf32> -> vector<12x768xf32>
    %77 = arith.addf %70, %76 : vector<12x768xf32>
    %c0_77 = arith.constant 0 : index
    %c1_78 = arith.constant 1 : index
    %c5_79 = arith.constant 5 : index
    %c0_80 = arith.constant 0 : index
    %78 = vector.load %arg1[%c0_77, %c1_78, %c5_79, %c0_80] : memref<1x2x17x34xf32, #tpu.memory_space<vmem>>, vector<1x1x12x34xf32>
    %79 = vector.shape_cast %78 : vector<1x1x12x34xf32> to vector<12x34xf32>
    %80 = arith.truncf %79 : vector<12x34xf32> to vector<12x34xbf16>
    %c11 = arith.constant 11 : index
    %c0_81 = arith.constant 0 : index
    %c0_82 = arith.constant 0 : index
    %81 = vector.load %arg2[%c11, %c0_81, %c0_82] : memref<12x34x768xbf16, #tpu.memory_space<vmem>>, vector<1x34x768xbf16>
    %82 = vector.shape_cast %81 : vector<1x34x768xbf16> to vector<34x768xbf16>
    %cst_83 = arith.constant dense<0.000000e+00> : vector<12x768xf32>
    %83 = tpu.matmul %80, %82, %cst_83 {dimension_numbers = #tpu.dot_dimension_numbers<[1], [0], [0], [1], [0, 0, 1, 1], [], []>} : vector<12x34xbf16>, vector<34x768xbf16>, vector<12x768xf32> -> vector<12x768xf32>
    %84 = arith.addf %77, %83 : vector<12x768xf32>
    %c0_84 = arith.constant 0 : index
    %c0_85 = arith.constant 0 : index
    %85 = vector.load %arg4[%c0_84, %c0_85] : memref<3x768xf32, #tpu.memory_space<vmem>>, vector<1x768xf32>
    %86 = vector.broadcast %85 : vector<1x768xf32> to vector<12x768xf32>
    %87 = arith.addf %84, %86 : vector<12x768xf32>
    %cst_86 = arith.constant 0.000000e+00 : f32
    %88 = vector.broadcast %cst_86 : f32 to vector<12x768xf32>
    %89 = arith.maximumf %87, %88 : vector<12x768xf32>
    %c1_87 = arith.constant 1 : index
    %c0_88 = arith.constant 0 : index
    %90 = vector.load %arg4[%c1_87, %c0_88] : memref<3x768xf32, #tpu.memory_space<vmem>>, vector<1x768xf32>
    %91 = vector.broadcast %90 : vector<1x768xf32> to vector<12x768xf32>
    %92 = arith.mulf %89, %91 : vector<12x768xf32>
    %c2_89 = arith.constant 2 : index
    %c0_90 = arith.constant 0 : index
    %93 = vector.load %arg4[%c2_89, %c0_90] : memref<3x768xf32, #tpu.memory_space<vmem>>, vector<1x768xf32>
    %94 = vector.broadcast %93 : vector<1x768xf32> to vector<12x768xf32>
    %95 = arith.addf %92, %94 : vector<12x768xf32>
    %cst_91 = arith.constant 0.000000e+00 : f32
    %96 = vector.broadcast %cst_91 : f32 to vector<8x512xf32>
    %c0_92 = arith.constant 0 : index
    %c0_93 = arith.constant 0 : index
    %97 = vector.load %arg7[%c0_92, %c0_93] : memref<8x512xf32, #tpu.memory_space<vmem>>, vector<8x512xf32>
    tpu.vector_store %arg7[%c0_92, %c0_93], %96 {strides = array<i32>} : memref<8x512xf32, #tpu.memory_space<vmem>>, vector<8x512xf32>,
    %98 = vector.extract_strided_slice %95 {offsets = [0, 0], sizes = [1, 768], strides = [1, 1]} : vector<12x768xf32> to vector<1x768xf32>
    %99 = vector.extract_strided_slice %95 {offsets = [1, 0], sizes = [1, 768], strides = [1, 1]} : vector<12x768xf32> to vector<1x768xf32>
    %100 = arith.maximumf %98, %99 : vector<1x768xf32>
    %101 = vector.extract_strided_slice %100 {offsets = [0, 0], sizes = [1, 384], strides = [1, 1]} : vector<1x768xf32> to vector<1x384xf32>
    %102 = vector.extract_strided_slice %100 {offsets = [0, 384], sizes = [1, 384], strides = [1, 1]} : vector<1x768xf32> to vector<1x384xf32>
    %103 = arith.maximumf %101, %102 : vector<1x384xf32>
    %c1_94 = arith.constant 1 : index
    %c64 = arith.constant 64 : index
    %104 = vector.load %arg7[%c1_94, %c64] : memref<8x512xf32, #tpu.memory_space<vmem>>, vector<1x384xf32>
    tpu.vector_store %arg7[%c1_94, %c64], %103 {strides = array<i32>} : memref<8x512xf32, #tpu.memory_space<vmem>>, vector<1x384xf32>,
    %105 = vector.extract_strided_slice %95 {offsets = [2, 0], sizes = [1, 768], strides = [1, 1]} : vector<12x768xf32> to vector<1x768xf32>
    %106 = vector.extract_strided_slice %95 {offsets = [3, 0], sizes = [1, 768], strides = [1, 1]} : vector<12x768xf32> to vector<1x768xf32>
    %107 = arith.maximumf %105, %106 : vector<1x768xf32>
    %108 = vector.extract_strided_slice %107 {offsets = [0, 0], sizes = [1, 384], strides = [1, 1]} : vector<1x768xf32> to vector<1x384xf32>
    %109 = vector.extract_strided_slice %107 {offsets = [0, 384], sizes = [1, 384], strides = [1, 1]} : vector<1x768xf32> to vector<1x384xf32>
    %110 = arith.maximumf %108, %109 : vector<1x384xf32>
    %c2_95 = arith.constant 2 : index
    %c64_96 = arith.constant 64 : index
    %111 = vector.load %arg7[%c2_95, %c64_96] : memref<8x512xf32, #tpu.memory_space<vmem>>, vector<1x384xf32>
    tpu.vector_store %arg7[%c2_95, %c64_96], %110 {strides = array<i32>} : memref<8x512xf32, #tpu.memory_space<vmem>>, vector<1x384xf32>,
    %112 = vector.extract_strided_slice %95 {offsets = [4, 0], sizes = [1, 768], strides = [1, 1]} : vector<12x768xf32> to vector<1x768xf32>
    %113 = vector.extract_strided_slice %95 {offsets = [5, 0], sizes = [1, 768], strides = [1, 1]} : vector<12x768xf32> to vector<1x768xf32>
    %114 = arith.maximumf %112, %113 : vector<1x768xf32>
    %115 = vector.extract_strided_slice %114 {offsets = [0, 0], sizes = [1, 384], strides = [1, 1]} : vector<1x768xf32> to vector<1x384xf32>
    %116 = vector.extract_strided_slice %114 {offsets = [0, 384], sizes = [1, 384], strides = [1, 1]} : vector<1x768xf32> to vector<1x384xf32>
    %117 = arith.maximumf %115, %116 : vector<1x384xf32>
    %c3_97 = arith.constant 3 : index
    %c64_98 = arith.constant 64 : index
    %118 = vector.load %arg7[%c3_97, %c64_98] : memref<8x512xf32, #tpu.memory_space<vmem>>, vector<1x384xf32>
    tpu.vector_store %arg7[%c3_97, %c64_98], %117 {strides = array<i32>} : memref<8x512xf32, #tpu.memory_space<vmem>>, vector<1x384xf32>,
    %119 = vector.extract_strided_slice %95 {offsets = [6, 0], sizes = [1, 768], strides = [1, 1]} : vector<12x768xf32> to vector<1x768xf32>
    %120 = vector.extract_strided_slice %95 {offsets = [7, 0], sizes = [1, 768], strides = [1, 1]} : vector<12x768xf32> to vector<1x768xf32>
    %121 = arith.maximumf %119, %120 : vector<1x768xf32>
    %122 = vector.extract_strided_slice %121 {offsets = [0, 0], sizes = [1, 384], strides = [1, 1]} : vector<1x768xf32> to vector<1x384xf32>
    %123 = vector.extract_strided_slice %121 {offsets = [0, 384], sizes = [1, 384], strides = [1, 1]} : vector<1x768xf32> to vector<1x384xf32>
    %124 = arith.maximumf %122, %123 : vector<1x384xf32>
    %c4_99 = arith.constant 4 : index
    %c64_100 = arith.constant 64 : index
    %125 = vector.load %arg7[%c4_99, %c64_100] : memref<8x512xf32, #tpu.memory_space<vmem>>, vector<1x384xf32>
    tpu.vector_store %arg7[%c4_99, %c64_100], %124 {strides = array<i32>} : memref<8x512xf32, #tpu.memory_space<vmem>>, vector<1x384xf32>,
    %126 = vector.extract_strided_slice %95 {offsets = [8, 0], sizes = [1, 768], strides = [1, 1]} : vector<12x768xf32> to vector<1x768xf32>
    %127 = vector.extract_strided_slice %95 {offsets = [9, 0], sizes = [1, 768], strides = [1, 1]} : vector<12x768xf32> to vector<1x768xf32>
    %128 = arith.maximumf %126, %127 : vector<1x768xf32>
    %129 = vector.extract_strided_slice %128 {offsets = [0, 0], sizes = [1, 384], strides = [1, 1]} : vector<1x768xf32> to vector<1x384xf32>
    %130 = vector.extract_strided_slice %128 {offsets = [0, 384], sizes = [1, 384], strides = [1, 1]} : vector<1x768xf32> to vector<1x384xf32>
    %131 = arith.maximumf %129, %130 : vector<1x384xf32>
    %c5_101 = arith.constant 5 : index
    %c64_102 = arith.constant 64 : index
    %132 = vector.load %arg7[%c5_101, %c64_102] : memref<8x512xf32, #tpu.memory_space<vmem>>, vector<1x384xf32>
    tpu.vector_store %arg7[%c5_101, %c64_102], %131 {strides = array<i32>} : memref<8x512xf32, #tpu.memory_space<vmem>>, vector<1x384xf32>,
    %133 = vector.extract_strided_slice %95 {offsets = [10, 0], sizes = [1, 768], strides = [1, 1]} : vector<12x768xf32> to vector<1x768xf32>
    %134 = vector.extract_strided_slice %95 {offsets = [11, 0], sizes = [1, 768], strides = [1, 1]} : vector<12x768xf32> to vector<1x768xf32>
    %135 = arith.maximumf %133, %134 : vector<1x768xf32>
    %136 = vector.extract_strided_slice %135 {offsets = [0, 0], sizes = [1, 384], strides = [1, 1]} : vector<1x768xf32> to vector<1x384xf32>
    %137 = vector.extract_strided_slice %135 {offsets = [0, 384], sizes = [1, 384], strides = [1, 1]} : vector<1x768xf32> to vector<1x384xf32>
    %138 = arith.maximumf %136, %137 : vector<1x384xf32>
    %c6_103 = arith.constant 6 : index
    %c64_104 = arith.constant 64 : index
    %139 = vector.load %arg7[%c6_103, %c64_104] : memref<8x512xf32, #tpu.memory_space<vmem>>, vector<1x384xf32>
    tpu.vector_store %arg7[%c6_103, %c64_104], %138 {strides = array<i32>} : memref<8x512xf32, #tpu.memory_space<vmem>>, vector<1x384xf32>,
    %cst_105 = arith.constant 0.000000e+00 : f32
    %140 = vector.broadcast %cst_105 : f32 to vector<6x768xf32>
    %c0_106 = arith.constant 0 : index
    %c0_107 = arith.constant 0 : index
    %141 = vector.load %arg7[%c0_106, %c0_107] : memref<8x512xf32, #tpu.memory_space<vmem>>, vector<6x512xf32>
    %142 = arith.truncf %141 : vector<6x512xf32> to vector<6x512xbf16>
    %c0_108 = arith.constant 0 : index
    %c0_109 = arith.constant 0 : index
    %c0_110 = arith.constant 0 : index
    %143 = vector.load %arg3[%c0_108, %c0_109, %c0_110] : memref<3x512x768xbf16, #tpu.memory_space<vmem>>, vector<1x512x768xbf16>
    %144 = vector.shape_cast %143 : vector<1x512x768xbf16> to vector<512x768xbf16>
    %cst_111 = arith.constant dense<0.000000e+00> : vector<6x768xf32>
    %145 = tpu.matmul %142, %144, %cst_111 {dimension_numbers = #tpu.dot_dimension_numbers<[1], [0], [0], [1], [0, 0, 1, 1], [], []>} : vector<6x512xbf16>, vector<512x768xbf16>, vector<6x768xf32> -> vector<6x768xf32>
    %146 = arith.addf %140, %145 : vector<6x768xf32>
    %c1_112 = arith.constant 1 : index
    %c0_113 = arith.constant 0 : index
    %147 = vector.load %arg7[%c1_112, %c0_113] : memref<8x512xf32, #tpu.memory_space<vmem>>, vector<6x512xf32>
    %148 = arith.truncf %147 : vector<6x512xf32> to vector<6x512xbf16>
    %c1_114 = arith.constant 1 : index
    %c0_115 = arith.constant 0 : index
    %c0_116 = arith.constant 0 : index
    %149 = vector.load %arg3[%c1_114, %c0_115, %c0_116] : memref<3x512x768xbf16, #tpu.memory_space<vmem>>, vector<1x512x768xbf16>
    %150 = vector.shape_cast %149 : vector<1x512x768xbf16> to vector<512x768xbf16>
    %cst_117 = arith.constant dense<0.000000e+00> : vector<6x768xf32>
    %151 = tpu.matmul %148, %150, %cst_117 {dimension_numbers = #tpu.dot_dimension_numbers<[1], [0], [0], [1], [0, 0, 1, 1], [], []>} : vector<6x512xbf16>, vector<512x768xbf16>, vector<6x768xf32> -> vector<6x768xf32>
    %152 = arith.addf %146, %151 : vector<6x768xf32>
    %c2_118 = arith.constant 2 : index
    %c0_119 = arith.constant 0 : index
    %153 = vector.load %arg7[%c2_118, %c0_119] : memref<8x512xf32, #tpu.memory_space<vmem>>, vector<6x512xf32>
    %154 = arith.truncf %153 : vector<6x512xf32> to vector<6x512xbf16>
    %c2_120 = arith.constant 2 : index
    %c0_121 = arith.constant 0 : index
    %c0_122 = arith.constant 0 : index
    %155 = vector.load %arg3[%c2_120, %c0_121, %c0_122] : memref<3x512x768xbf16, #tpu.memory_space<vmem>>, vector<1x512x768xbf16>
    %156 = vector.shape_cast %155 : vector<1x512x768xbf16> to vector<512x768xbf16>
    %cst_123 = arith.constant dense<0.000000e+00> : vector<6x768xf32>
    %157 = tpu.matmul %154, %156, %cst_123 {dimension_numbers = #tpu.dot_dimension_numbers<[1], [0], [0], [1], [0, 0, 1, 1], [], []>} : vector<6x512xbf16>, vector<512x768xbf16>, vector<6x768xf32> -> vector<6x768xf32>
    %158 = arith.addf %152, %157 : vector<6x768xf32>
    %c0_124 = arith.constant 0 : index
    %c0_125 = arith.constant 0 : index
    %159 = vector.load %arg5[%c0_124, %c0_125] : memref<3x768xf32, #tpu.memory_space<vmem>>, vector<1x768xf32>
    %160 = vector.broadcast %159 : vector<1x768xf32> to vector<6x768xf32>
    %161 = arith.addf %158, %160 : vector<6x768xf32>
    %cst_126 = arith.constant 0.000000e+00 : f32
    %162 = vector.broadcast %cst_126 : f32 to vector<6x768xf32>
    %163 = arith.maximumf %161, %162 : vector<6x768xf32>
    %c1_127 = arith.constant 1 : index
    %c0_128 = arith.constant 0 : index
    %164 = vector.load %arg5[%c1_127, %c0_128] : memref<3x768xf32, #tpu.memory_space<vmem>>, vector<1x768xf32>
    %165 = vector.broadcast %164 : vector<1x768xf32> to vector<6x768xf32>
    %166 = arith.mulf %163, %165 : vector<6x768xf32>
    %c2_129 = arith.constant 2 : index
    %c0_130 = arith.constant 0 : index
    %167 = vector.load %arg5[%c2_129, %c0_130] : memref<3x768xf32, #tpu.memory_space<vmem>>, vector<1x768xf32>
    %168 = vector.broadcast %167 : vector<1x768xf32> to vector<6x768xf32>
    %169 = arith.addf %166, %168 : vector<6x768xf32>
    %170 = vector.extract_strided_slice %169 {offsets = [0, 0], sizes = [1, 768], strides = [1, 1]} : vector<6x768xf32> to vector<1x768xf32>
    %171 = vector.extract_strided_slice %169 {offsets = [1, 0], sizes = [1, 768], strides = [1, 1]} : vector<6x768xf32> to vector<1x768xf32>
    %172 = arith.maximumf %170, %171 : vector<1x768xf32>
    %173 = vector.extract_strided_slice %172 {offsets = [0, 0], sizes = [1, 384], strides = [1, 1]} : vector<1x768xf32> to vector<1x384xf32>
    %174 = vector.extract_strided_slice %172 {offsets = [0, 384], sizes = [1, 384], strides = [1, 1]} : vector<1x768xf32> to vector<1x384xf32>
    %175 = arith.maximumf %173, %174 : vector<1x384xf32>
    %c0_131 = arith.constant 0 : index
    %c0_132 = arith.constant 0 : index
    %c0_133 = arith.constant 0 : index
    %176 = vector.load %arg6[%c0_131, %c0_132, %c0_133] : memref<1x3x384xf32, #tpu.memory_space<vmem>>, vector<1x1x384xf32>
    %177 = vector.shape_cast %176 : vector<1x1x384xf32> to vector<1x384xf32>
    %178 = vector.shape_cast %175 : vector<1x384xf32> to vector<1x1x384xf32>
    tpu.vector_store %arg6[%c0_131, %c0_132, %c0_133], %178 {strides = array<i32>} : memref<1x3x384xf32, #tpu.memory_space<vmem>>, vector<1x1x384xf32>,
    %179 = vector.extract_strided_slice %169 {offsets = [2, 0], sizes = [1, 768], strides = [1, 1]} : vector<6x768xf32> to vector<1x768xf32>
    %180 = vector.extract_strided_slice %169 {offsets = [3, 0], sizes = [1, 768], strides = [1, 1]} : vector<6x768xf32> to vector<1x768xf32>
    %181 = arith.maximumf %179, %180 : vector<1x768xf32>
    %182 = vector.extract_strided_slice %181 {offsets = [0, 0], sizes = [1, 384], strides = [1, 1]} : vector<1x768xf32> to vector<1x384xf32>
    %183 = vector.extract_strided_slice %181 {offsets = [0, 384], sizes = [1, 384], strides = [1, 1]} : vector<1x768xf32> to vector<1x384xf32>
    %184 = arith.maximumf %182, %183 : vector<1x384xf32>
    %c0_134 = arith.constant 0 : index
    %c1_135 = arith.constant 1 : index
    %c0_136 = arith.constant 0 : index
    %185 = vector.load %arg6[%c0_134, %c1_135, %c0_136] : memref<1x3x384xf32, #tpu.memory_space<vmem>>, vector<1x1x384xf32>
    %186 = vector.shape_cast %185 : vector<1x1x384xf32> to vector<1x384xf32>
    %187 = vector.shape_cast %184 : vector<1x384xf32> to vector<1x1x384xf32>
    tpu.vector_store %arg6[%c0_134, %c1_135, %c0_136], %187 {strides = array<i32>} : memref<1x3x384xf32, #tpu.memory_space<vmem>>, vector<1x1x384xf32>,
    %188 = vector.extract_strided_slice %169 {offsets = [4, 0], sizes = [1, 768], strides = [1, 1]} : vector<6x768xf32> to vector<1x768xf32>
    %189 = vector.extract_strided_slice %169 {offsets = [5, 0], sizes = [1, 768], strides = [1, 1]} : vector<6x768xf32> to vector<1x768xf32>
    %190 = arith.maximumf %188, %189 : vector<1x768xf32>
    %191 = vector.extract_strided_slice %190 {offsets = [0, 0], sizes = [1, 384], strides = [1, 1]} : vector<1x768xf32> to vector<1x384xf32>
    %192 = vector.extract_strided_slice %190 {offsets = [0, 384], sizes = [1, 384], strides = [1, 1]} : vector<1x768xf32> to vector<1x384xf32>
    %193 = arith.maximumf %191, %192 : vector<1x384xf32>
    %c0_137 = arith.constant 0 : index
    %c2_138 = arith.constant 2 : index
    %c0_139 = arith.constant 0 : index
    %194 = vector.load %arg6[%c0_137, %c2_138, %c0_139] : memref<1x3x384xf32, #tpu.memory_space<vmem>>, vector<1x1x384xf32>
    %195 = vector.shape_cast %194 : vector<1x1x384xf32> to vector<1x384xf32>
    %196 = vector.shape_cast %193 : vector<1x384xf32> to vector<1x1x384xf32>
    tpu.vector_store %arg6[%c0_137, %c2_138, %c0_139], %196 {strides = array<i32>} : memref<1x3x384xf32, #tpu.memory_space<vmem>>, vector<1x1x384xf32>,
    return
  }
  func.func @transform_0(%arg0: i32) -> (i32, i32, i32, i32) {
    %c0_i32 = arith.constant 0 : i32
    %c0_i32_0 = arith.constant 0 : i32
    %c0_i32_1 = arith.constant 0 : i32
    %c0_i32_2 = arith.constant 0 : i32
    return %arg0, %c0_i32, %c0_i32_0, %c0_i32_1 : i32, i32, i32, i32
  }
  func.func @transform_1(%arg0: i32) -> (i32, i32, i32) {
    %c0_i32 = arith.constant 0 : i32
    %c0_i32_0 = arith.constant 0 : i32
    %c0_i32_1 = arith.constant 0 : i32
    %c0_i32_2 = arith.constant 0 : i32
    return %c0_i32, %c0_i32_0, %c0_i32_1 : i32, i32, i32
  }
  func.func @transform_2(%arg0: i32) -> (i32, i32, i32) {
    %c0_i32 = arith.constant 0 : i32
    %c0_i32_0 = arith.constant 0 : i32
    %c0_i32_1 = arith.constant 0 : i32
    %c0_i32_2 = arith.constant 0 : i32
    return %c0_i32, %c0_i32_0, %c0_i32_1 : i32, i32, i32
  }
  func.func @transform_3(%arg0: i32) -> (i32, i32) {
    %c0_i32 = arith.constant 0 : i32
    %c0_i32_0 = arith.constant 0 : i32
    %c0_i32_1 = arith.constant 0 : i32
    return %c0_i32, %c0_i32_0 : i32, i32
  }
  func.func @transform_4(%arg0: i32) -> (i32, i32) {
    %c0_i32 = arith.constant 0 : i32
    %c0_i32_0 = arith.constant 0 : i32
    %c0_i32_1 = arith.constant 0 : i32
    return %c0_i32, %c0_i32_0 : i32, i32
  }
  func.func @transform_5(%arg0: i32) -> (i32, i32, i32) {
    %c0_i32 = arith.constant 0 : i32
    %c0_i32_0 = arith.constant 0 : i32
    %c0_i32_1 = arith.constant 0 : i32
    return %arg0, %c0_i32, %c0_i32_0 : i32, i32, i32
  }
}

</mosaic_0001>

<bundles_post_ra>
// kernel: tile.37
= control target key start
LH: loop header
LB: loop body
LE: loop exit
PB: predicated region body
PF: predicated region fallthrough
CT: control target
= control target key end

     0   :  { %s28_s0 = inlined_call_operand.vmem [shape: f32[64], index: 0, kind: input, shape index: {}]   ;;  %s29_s1 = inlined_call_operand.vmem [shape: f32[12,64], index: 1, kind: output, shape index: {}]  }
   0x1   :  { %v4_v0 = vld [vmem:[%s28_s0] ss:$0 sm:$0xff] }
   0x2   :  { %5 = vst [vmem:[%s29_s1] sm:$0xff] %v4_v0  ;;  %8 = vst [vmem:[%s29_s1 + $0x8] sm:$0xff] %v4_v0 }

// kernel: tile.43
= control target key start
LH: loop header
LB: loop body
LE: loop exit
PB: predicated region body
PF: predicated region fallthrough
CT: control target
= control target key end

     0   :  { %vm3_vm0 = vcmask 523264   ;;  %s66_s8 = smov 64   ;;  %vm10_vm1 = vcmask 1048064   ;;  %s101_s0 = inlined_call_operand.vmem [shape: f32[12,64], index: 0, kind: input, shape index: {}]   ;;  %s102_s1 = inlined_call_operand.vmem [shape: f32[1,768], index: 1, kind: output, shape index: {}]  }
   0x1   :  { %v59_v0 = vld [vmem:[%s101_s0 + $0x1] ss:$2 sm:$0x3f]   ;;  %v2_v1 = vld [vmem:[%s101_s0] ss:$2 sm:$0x3f]  }
   0x2   :  { %8 = vrot.lane.b32.xlu0 %v59_v0, %s66_s8  ;;  %4 = vst.msk [vmem:[#allocation0] ss:$8 sm:$0xf] %vm3_vm0, %v2_v1   ;;  %5 = vst.msk [vmem:[#allocation0] ss:$8 sm:$0x30] %vm3_vm0, %v2_v1  }
  0x74   :  { %v9_v2 = vpop.permute.xlu0 %8  }
  0x75   :  { %11 = vst.msk [vmem:[#allocation0] ss:$8 sm:$0xf] %vm10_vm1, %v9_v2   ;;  %12 = vst.msk [vmem:[#allocation0] ss:$8 sm:$0x30] %vm10_vm1, %v9_v2  }
  0x7c   :  { %v17_v3 = vld [vmem:[#allocation0] sm:$0x1]  ;;  %v22_v4 = vld [vmem:[#allocation0 + $0x8] sm:$0x1]  ;;  %v28_v5 = vld [vmem:[#allocation0 + $0x10] sm:$0x1] }
  0x7d   :  { %20 = vst [vmem:[%s102_s1] sm:$0x1] %v17_v3  ;;  %60 = vst [vmem:[%s102_s1 + $0x1] sm:$0x1] %v22_v4  ;;  %v35_v6 = vld [vmem:[#allocation0 + $0x18] sm:$0x1] }
  0x7e   :  { %61 = vst [vmem:[%s102_s1 + $0x2] sm:$0x1] %v28_v5  ;;  %v42_v7 = vld [vmem:[#allocation0 + $0x20] sm:$0x1]  ;;  %v49_v8 = vld [vmem:[#allocation0 + $0x28] sm:$0x1] }
  0x7f   :  { %62 = vst [vmem:[%s102_s1 + $0x3] sm:$0x1] %v35_v6  ;;  %63 = vst [vmem:[%s102_s1 + $0x4] sm:$0x1] %v42_v7 }
  0x80   :  { %64 = vst [vmem:[%s102_s1 + $0x5] sm:$0x1] %v49_v8 }

// kernel: deepfont_encoder.1
= control target key start
LH: loop header
LB: loop body
LE: loop exit
PB: predicated region body
PF: predicated region fallthrough
CT: control target
= control target key end

     0   :  { %s10796_s18 = smov 0   ;;  %s13769_s0 = inlined_call_operand.vmem [shape: f32[2,2,17,34], index: 0, kind: input, shape index: {}]   ;;  %s13770_s1 = inlined_call_operand.vmem [shape: bf16[12,34,768], index: 1, kind: input, shape index: {}]   ;;  %s13771_s2 = inlined_call_operand.vmem [shape: bf16[3,512,768], index: 2, kind: input, shape index: {}]   ;;  %s13772_s3 = inlined_call_operand.vmem [shape: f32[3,768], index: 3, kind: input, shape index: {}]   ;;  %s13773_s4 = inlined_call_operand.vmem [shape: f32[3,768], index: 4, kind: input, shape index: {}]   ;;  %s13774_s5 = inlined_call_operand.vmem [shape: f32[2,3,384], index: 5, kind: output, shape index: {}]  }
   0x1 LB: > { %s8148_s19 = sadd.s32 4294967295, %s10760_s18   ;;  %p8152_p0 = scmp.ge.s32.totalorder %s10760_s18, 1  ;;  %s10760_s18 = sphi %s10796_s18, %s15_s18  }
   0x2   : > { %p187_p1 = scmp.lt.s32.totalorder %s10760_s18, 3 }
   0x4   : > { %p188_p2 = pnand %p8152_p0, %p187_p1 }
   0x6   : > { %191 = sbr.rel (%p188_p2) target bundleno = 1328 (0x530), region = 40 }
   0xb   : > { %v8169_v0 = vld [vmem:[%s13770_s1 + $0xd8] sm:$0x11]  ;;  %vm343_vm0 = vcmask 1040384   ;;  %v8170_v1 = vld [vmem:[%s13770_s1 + $0xe0] sm:$0x11]  ;;  %p215_p3 = scmp.lt.s32.totalorder %s8148_s19, 1 }
   0xc   : > { %v8185_v2 = vcombine.high %v8169_v0, %v8169_v0  ;;  %v8187_v3 = vcombine.high %v8170_v1, %v8170_v1  ;;  %v8184_v4 = vcombine.low %v8169_v0, %v8169_v0  ;;  %v8186_v5 = vcombine.low %v8170_v1, %v8170_v1  ;;  %v9606_v6 = vld [vmem:[%s13770_s1 + $0xac] ss:$24 sps:$4 sm:$0xff]   ;;  %v9610_v8 = vld [vmem:[%s13770_s1 + $0xa8] ss:$24 sps:$4 sm:$0xff]   ;;  %v9612_v12 = vld [vmem:[%s13770_s1 + $0x7c] ss:$24 sps:$4 sm:$0xff]  }
   0xd   : > { %v9608_v7 = vld [vmem:[%s13770_s1 + $0xb4] ss:$24 sps:$4 sm:$0xff]   ;;  %v9611_v11 = vld [vmem:[%s13770_s1 + $0xb0] ss:$24 sps:$4 sm:$0xff]   ;;  %s13869_s19 = smov (!%p215_p3, %s8148_s19), 1  ;;  %v10762_v14 = vmov 0  }
   0xe   : > { %8190 = vmatprep.subr.msk.bf16.mxu0 %vm343_vm0, %v8185_v2  ;;  %8192 = vmatprep.subr.msk.bf16.mxu1 %vm343_vm0, %v8187_v3  ;;  %v345_v9 = vsel %vm343_vm0, %v8184_v4, 0  ;;  %v351_v10 = vsel %vm343_vm0, %v8186_v5, 0  ;;  %v9614_v13 = vld [vmem:[%s13770_s1 + $0x84] ss:$24 sps:$4 sm:$0xff]   ;;  %s9588_s11 = smul.u32 48, %s13869_s19  ;;  %vm339_vm1 = vcmask 277504  }
   0xf   : > { %373 = vmatpush1.bf16.msra.mxu0 %v345_v9  ;;  %416 = vmatpush1.bf16.msra.mxu1 %v351_v10  ;;  %v8171_v15 = vld [vmem:[%s13770_s1 + $0xe8] sm:$0x11]  ;;  %v241_v16 = vld [vmem:[%s13770_s1 + $0x60] sm:$0x11]  ;;  %v9616_v17 = vld [vmem:[%s13770_s1 + $0x78] ss:$24 sps:$4 sm:$0xff]  }
  0x10   : > { %374 = vmatprep.subr.bf16.mxu0 %v9606_v6  ;;  %417 = vmatprep.subr.bf16.mxu1 %v9608_v7  ;;  %v9617_v18 = vld [vmem:[%s13770_s1 + $0x80] ss:$24 sps:$4 sm:$0xff]   ;;  %s10852_s24 = scalar_lea.vmem %s13769_s0, %s9588_s11  ;;  %v8189_v19 = vcombine.high %v8171_v15, %v8171_v15  ;;  %v8209_v22 = vcombine.high %v241_v16, %v241_v16  ;;  %v8188_v23 = vcombine.low %v8171_v15, %v8171_v15  ;;  %v9624_v28 = vld [vmem:[%s13770_s1 + $0xbc] ss:$24 sps:$4 sm:$0xff]   ;;  %v9625_v31 = vld [vmem:[%s13770_s1 + $0x30] ss:$24 sps:$4 sm:$0xff]  }
  0x11   : > { %394 = vmatprep.mubr.bf16.mxu0 %v10762_v14  ;;  %437 = vmatprep.mubr.bf16.mxu1 %v10762_v14  ;;  %v8155_v20 = vld [vmem:[%s10852_s24 + $0x18] sm:$0xff]  ;;  %v8156_v21 = vld [vmem:[%s10852_s24 + $0x20] sm:$0xf]  ;;  %v8208_v24 = vcombine.low %v241_v16, %v241_v16  ;;  %v9627_v29 = vld [vmem:[%s13770_s1 + $0x34] ss:$24 sps:$4 sm:$0xff]   ;;  %s10765_s22 = smov 64  }
  0x12   : > { %v247_v25 = vpack.c.bf16 %v8156_v21, %v8155_v20  ;;  %v357_v26 = vsel %vm343_vm0, %v8188_v23, 0  ;;  %v9622_v30 = vld [vmem:[%s13770_s1 + $0xb8] ss:$24 sps:$4 sm:$0xff]   ;;  %v9630_v32 = vld [vmem:[%s13770_s1 + $0x8c] ss:$24 sps:$4 sm:$0xff]   ;;  %vm3482_vm4 = vcmask 523264  }
  0x13   : > { %375 = vmatpush1.bf16.msra.mxu0 %v9610_v8  ;;  %418 = vmatpush1.bf16.msra.mxu1 %v9611_v11  ;;  %v570_v27 = vsel %vm343_vm0, %v8208_v24, 0  ;;  %v9633_v33 = vld [vmem:[%s13770_s1 + $0x4] ss:$24 sps:$4 sm:$0xff]   ;;  %v242_v34 = vld [vmem:[%s13770_s1 + $0x68] sm:$0x11]  ;;  %s9589_s21 = smul.u32 12, %s13869_s19 }
  0x14   : > { %376 = vmatprep.subr.bf16.mxu0 %v9612_v12  ;;  %419 = vmatprep.subr.bf16.mxu1 %v9614_v13  ;;  %v243_v35 = vld [vmem:[%s13770_s1 + $0x70] sm:$0x11]  ;;  %v9628_v36 = vld [vmem:[%s13770_s1 + $0x88] ss:$24 sps:$4 sm:$0xff]   ;;  %v8211_v40 = vcombine.high %v242_v34, %v242_v34  ;;  %v8210_v42 = vcombine.low %v242_v34, %v242_v34  ;;  %v9643_v48 = vld [vmem:[%s13770_s1 + $0x44] ss:$24 sps:$4 sm:$0xff]  }
  0x15   : > { %v9631_v37 = vld [vmem:[%s13770_s1] ss:$24 sps:$4 sm:$0xff]   ;;  %v227_v39 = vld [vmem:[%s10852_s24 + $0x8] sm:$0xf]  ;;  %v8213_v41 = vcombine.high %v243_v35, %v243_v35  ;;  %v8212_v43 = vcombine.low %v243_v35, %v243_v35  ;;  %v9640_v47 = vld [vmem:[%s13770_s1 + $0x3c] ss:$24 sps:$4 sm:$0xff]   ;;  %s224_s26 = scalar_lea.vmem %s13774_s5, %s9589_s21 }
  0x16   : > { %v226_v38 = vld [vmem:[%s10852_s24] sm:$0xff]  ;;  %v576_v45 = vsel %vm343_vm0, %v8210_v42, 0  ;;  %v9638_v49 = vld [vmem:[%s13770_s1 + $0x38] ss:$24 sps:$4 sm:$0xff]   ;;  %v9649_v52 = vld [vmem:[%s13770_s1 + $0x14] ss:$24 sps:$4 sm:$0xff]  }
  0x17   : > { %377 = vmatpush1.bf16.msra.mxu0 %v9616_v17  ;;  %420 = vmatpush1.bf16.msra.mxu1 %v9617_v18  ;;  %v228_v44 = vpack.c.bf16 %v227_v39, %v226_v38  ;;  %v582_v46 = vsel %vm343_vm0, %v8212_v43, 0  ;;  %v9641_v50 = vld [vmem:[%s13770_s1 + $0x40] ss:$24 sps:$4 sm:$0xff]   ;;  %v9646_v51 = vld [vmem:[%s13770_s1 + $0xc] ss:$24 sps:$4 sm:$0xff]  }
  0x18   : > { %8194 = vmatprep.subr.msk.bf16.mxu0 %vm343_vm0, %v8189_v19  ;;  %8214 = vmatprep.subr.msk.bf16.mxu1 %vm343_vm0, %v8209_v22  ;;  %v8232_v53 = vld [vmem:[%s13770_s1 + $0x150] sm:$0x11]  ;;  %v8233_v54 = vld [vmem:[%s13770_s1 + $0x158] sm:$0x11]  ;;  %v9644_v55 = vld [vmem:[%s13770_s1 + $0x8] ss:$24 sps:$4 sm:$0xff]  }
  0x19   : > { %v9647_v56 = vld [vmem:[%s13770_s1 + $0x10] ss:$24 sps:$4 sm:$0xff]   ;;  %v8248_v57 = vcombine.high %v8232_v53, %v8232_v53  ;;  %v8250_v58 = vcombine.high %v8233_v54, %v8233_v54  ;;  %v8247_v59 = vcombine.low %v8232_v53, %v8232_v53  ;;  %v8249_v60 = vcombine.low %v8233_v54, %v8233_v54  ;;  %v9656_v61 = vld [vmem:[%s13770_s1 + $0x124] ss:$24 sps:$4 sm:$0xff]   ;;  %v9654_v1 = vld [vmem:[%s13770_s1 + $0x120] ss:$24 sps:$4 sm:$0xff]  }
  0x1a   : > { %8191 = vmatmul.mubr.msk.bf16.vlgmr.msra.gmra.mxu0 %vm339_vm1, %v247_v25  ;;  %8193 = vmatmul.mubr.msk.bf16.vlgmr.msra.gmra.mxu1 %vm339_vm1, %v247_v25  ;;  %v9659_v0 = vld [vmem:[%s13770_s1 + $0x12c] ss:$24 sps:$4 sm:$0xff]   ;;  %v9657_v2 = vld [vmem:[%s13770_s1 + $0x128] ss:$24 sps:$4 sm:$0xff]   ;;  %v9665_v4 = vld [vmem:[%s13770_s1 + $0xfc] ss:$24 sps:$4 sm:$0xff]  }
  0x1b   : > { %459 = vmatpush1.bf16.msra.mxu0 %v357_v26  ;;  %598 = vmatpush1.bf16.msra.mxu1 %v570_v27  ;;  %v814_v62 = vsel %vm343_vm0, %v8247_v59, 0  ;;  %v820_v63 = vsel %vm343_vm0, %v8249_v60, 0  ;;  %v9662_v3 = vld [vmem:[%s13770_s1 + $0xf4] ss:$24 sps:$4 sm:$0xff]   ;;  %v8234_v5 = vld [vmem:[%s13770_s1 + $0x160] sm:$0x11] }
  0x1c   : > { %460 = vmatprep.subr.bf16.mxu0 %v9624_v28  ;;  %599 = vmatprep.subr.bf16.mxu1 %v9627_v29  ;;  %v8273_v6 = vld [vmem:[%s13770_s1 + $0x1c8] sm:$0x11]  ;;  %v9663_v8 = vld [vmem:[%s13770_s1 + $0xf8] ss:$24 sps:$4 sm:$0xff]   ;;  %v8252_v11 = vcombine.high %v8234_v5, %v8234_v5  ;;  %v8251_v13 = vcombine.low %v8234_v5, %v8234_v5  ;;  %v9675_v20 = vld [vmem:[%s13770_s1 + $0x19c] ss:$24 sps:$4 sm:$0xff]  }
  0x1d   : > { %480 = vmatprep.mubr.bf16.mxu0 %v10762_v14  ;;  %619 = vmatprep.mubr.bf16.mxu1 %v10762_v14  ;;  %v9660_v7 = vld [vmem:[%s13770_s1 + $0xf0] ss:$24 sps:$4 sm:$0xff]   ;;  %v8289_v12 = vcombine.high %v8273_v6, %v8273_v6  ;;  %v8288_v15 = vcombine.low %v8273_v6, %v8273_v6  ;;  %v9672_v17 = vld [vmem:[%s13770_s1 + $0x134] ss:$24 sps:$4 sm:$0xff]   ;;  %v9678_v23 = vld [vmem:[%s13770_s1 + $0x104] ss:$24 sps:$4 sm:$0xff]  }
  0x1e   : > { %v716_v9 = vld [vmem:[%s10852_s24 + $0x1] sm:$0xff]  ;;  %v717_v10 = vld [vmem:[%s10852_s24 + $0x9] sm:$0xf]  ;;  %v826_v18 = vsel %vm343_vm0, %v8251_v13, 0  ;;  %v9673_v22 = vld [vmem:[%s13770_s1 + $0x198] ss:$24 sps:$4 sm:$0xff]  }
  0x1f   : > { %461 = vmatpush1.bf16.msra.mxu0 %v9622_v30  ;;  %600 = vmatpush1.bf16.msra.mxu1 %v9625_v31  ;;  %v718_v16 = vpack.c.bf16 %v717_v10, %v716_v9  ;;  %v1070_v19 = vsel %vm343_vm0, %v8288_v15, 0  ;;  %v9670_v21 = vld [vmem:[%s13770_s1 + $0x130] ss:$24 sps:$4 sm:$0xff]   ;;  %v9681_v24 = vld [vmem:[%s13770_s1 + $0x16c] ss:$24 sps:$4 sm:$0xff]   ;;  %v8259_v29 = vld [vmem:[%s10852_s24 + $0x19] sm:$0xff] }
  0x20   : > { %462 = vmatprep.subr.bf16.mxu0 %v9630_v32  ;;  %601 = vmatprep.subr.bf16.mxu1 %v9633_v33  ;;  %v9676_v26 = vld [vmem:[%s13770_s1 + $0x100] ss:$24 sps:$4 sm:$0xff]   ;;  %v9691_v39 = vld [vmem:[%s13770_s1 + $0x1ac] ss:$24 sps:$4 sm:$0xff]   ;;  %v9697_v43 = vld [vmem:[%s13770_s1 + $0x17c] ss:$24 sps:$4 sm:$0xff]  }
  0x21   : > { %v8275_v27 = vld [vmem:[%s13770_s1 + $0x1d8] sm:$0x11]  ;;  %v9679_v28 = vld [vmem:[%s13770_s1 + $0x168] ss:$24 sps:$4 sm:$0xff]   ;;  %v9694_v42 = vld [vmem:[%s13770_s1 + $0x174] ss:$24 sps:$4 sm:$0xff]  }
  0x22   : > { %v8260_v30 = vld [vmem:[%s10852_s24 + $0x21] sm:$0xf]  ;;  %v8293_v32 = vcombine.high %v8275_v27, %v8275_v27  ;;  %v8292_v34 = vcombine.low %v8275_v27, %v8275_v27  ;;  %v8314_v60 = vld [vmem:[%s13770_s1 + $0x250] sm:$0x11] }
  0x23   : > { %463 = vmatpush1.bf16.msra.mxu0 %v9628_v36  ;;  %602 = vmatpush1.bf16.msra.mxu1 %v9631_v37  ;;  %v974_v35 = vpack.c.bf16 %v8260_v30, %v8259_v29  ;;  %v9688_v36 = vld [vmem:[%s13770_s1 + $0x1a4] ss:$24 sps:$4 sm:$0xff]   ;;  %v9726_v13 = vld [vmem:[%s13770_s1 + $0x1f4] ss:$24 sps:$4 sm:$0xff]  }
  0x24   : > { %8216 = vmatprep.subr.msk.bf16.mxu0 %vm343_vm0, %v8211_v40  ;;  %8218 = vmatprep.subr.msk.bf16.mxu1 %vm343_vm0, %v8213_v41  ;;  %v1082_v38 = vsel %vm343_vm0, %v8292_v34, 0  ;;  %v9686_v40 = vld [vmem:[%s13770_s1 + $0x1a0] ss:$24 sps:$4 sm:$0xff]   ;;  %v9713_v59 = vld [vmem:[%s13770_s1 + $0x1ec] ss:$24 sps:$4 sm:$0xff]  }
  0x25   : > { %v9689_v41 = vld [vmem:[%s13770_s1 + $0x1a8] ss:$24 sps:$4 sm:$0xff]   ;;  %v9723_v10 = vld [vmem:[%s13770_s1 + $0x28c] ss:$24 sps:$4 sm:$0xff]   ;;  %v9729_v15 = vld [vmem:[%s13770_s1 + $0x25c] ss:$24 sps:$4 sm:$0xff]  }
  0x26   : > { %8195 = vmatmul.mubr.msk.bf16.vlgmr.msra.gmra.mxu0 %vm339_vm1, %v247_v25  ;;  %8215 = vmatmul.mubr.msk.bf16.vlgmr.msra.gmra.mxu1 %vm339_vm1, %v228_v44  ;;  %v8274_v25 = vld [vmem:[%s13770_s1 + $0x1d0] sm:$0x11]  ;;  %v9745_v34 = vld [vmem:[%s13770_s1 + $0x26c] ss:$24 sps:$4 sm:$0xff]  }
  0x27   : > { %641 = vmatpush1.bf16.msra.mxu0 %v576_v45  ;;  %684 = vmatpush1.bf16.msra.mxu1 %v582_v46  ;;  %v8291_v31 = vcombine.high %v8274_v25, %v8274_v25  ;;  %v8290_v33 = vcombine.low %v8274_v25, %v8274_v25  ;;  %v8313_v45 = vld [vmem:[%s13770_s1 + $0x248] sm:$0x11]  ;;  %v9739_v30 = vld [vmem:[%s13770_s1 + $0x29c] ss:$24 sps:$4 sm:$0xff]  }
  0x28   : > { %642 = vmatprep.subr.bf16.mxu0 %v9640_v47  ;;  %685 = vmatprep.subr.bf16.mxu1 %v9643_v48  ;;  %v9692_v46 = vld [vmem:[%s13770_s1 + $0x170] ss:$24 sps:$4 sm:$0xff]   ;;  %v9736_v27 = vld [vmem:[%s13770_s1 + $0x294] ss:$24 sps:$4 sm:$0xff]  }
  0x29   : > { %662 = vmatprep.mubr.bf16.mxu0 %v10762_v14  ;;  %705 = vmatprep.mubr.bf16.mxu1 %v10762_v14  ;;  %v1076_v37 = vsel %vm343_vm0, %v8290_v33, 0  ;;  %v9695_v47 = vld [vmem:[%s13770_s1 + $0x178] ss:$24 sps:$4 sm:$0xff]   ;;  %v9742_v33 = vld [vmem:[%s13770_s1 + $0x264] ss:$24 sps:$4 sm:$0xff]  }
  0x2b   : > { %643 = vmatpush1.bf16.msra.mxu0 %v9638_v49  ;;  %686 = vmatpush1.bf16.msra.mxu1 %v9641_v50  ;;  %v8330_v49 = vcombine.high %v8313_v45, %v8313_v45 }
  0x2c   : > { %644 = vmatprep.subr.bf16.mxu0 %v9646_v51  ;;  %687 = vmatprep.subr.bf16.mxu1 %v9649_v52  ;;  %v8329_v51 = vcombine.low %v8313_v45, %v8313_v45  ;;  %v9704_v52 = vld [vmem:[%s13770_s1 + $0x214] ss:$24 sps:$4 sm:$0xff]   ;;  %v9752_v45 = vld [vmem:[%s13770_s1 + $0x304] ss:$24 sps:$4 sm:$0xff]  }
  0x2e   : > { %v1332_v54 = vsel %vm343_vm0, %v8329_v51, 0  ;;  %v8394_v51 = vld [vmem:[%s13770_s1 + $0x340] sm:$0x11] }
  0x2f   : > { %645 = vmatpush1.bf16.msra.mxu0 %v9644_v55  ;;  %688 = vmatpush1.bf16.msra.mxu1 %v9647_v56  ;;  %v9707_v55 = vld [vmem:[%s13770_s1 + $0x21c] ss:$24 sps:$4 sm:$0xff]   ;;  %v9702_v56 = vld [vmem:[%s13770_s1 + $0x210] ss:$24 sps:$4 sm:$0xff]  }
  0x30   : > { %8253 = vmatprep.subr.msk.bf16.mxu0 %vm343_vm0, %v8248_v57  ;;  %8255 = vmatprep.subr.msk.bf16.mxu1 %vm343_vm0, %v8250_v58  ;;  %v9705_v57 = vld [vmem:[%s13770_s1 + $0x218] ss:$24 sps:$4 sm:$0xff]   ;;  %v9710_v58 = vld [vmem:[%s13770_s1 + $0x1e4] ss:$24 sps:$4 sm:$0xff]  }
  0x32   : > { %8217 = vmatmul.mubr.msk.bf16.vlgmr.msra.gmra.mxu0 %vm339_vm1, %v228_v44  ;;  %8219 = vmatmul.mubr.msk.bf16.vlgmr.msra.gmra.mxu1 %vm339_vm1, %v228_v44  ;;  %v8312_v44 = vld [vmem:[%s13770_s1 + $0x240] sm:$0x11] }
  0x33   : > { %842 = vmatpush1.bf16.msra.mxu0 %v814_v62  ;;  %885 = vmatpush1.bf16.msra.mxu1 %v820_v63  ;;  %v8328_v48 = vcombine.high %v8312_v44, %v8312_v44  ;;  %v8327_v50 = vcombine.low %v8312_v44, %v8312_v44  ;;  %v8353_v62 = vld [vmem:[%s13770_s1 + $0x2b8] sm:$0x11]  ;;  %v9711_v63 = vld [vmem:[%s13770_s1 + $0x1e8] ss:$24 sps:$4 sm:$0xff]  }
  0x34   : > { %843 = vmatprep.subr.bf16.mxu0 %v9656_v61  ;;  %886 = vmatprep.subr.bf16.mxu1 %v9659_v0  ;;  %v9708_v61 = vld [vmem:[%s13770_s1 + $0x1e0] ss:$24 sps:$4 sm:$0xff]   ;;  %v8368_v5 = vcombine.low %v8353_v62, %v8353_v62 }
  0x35   : > { %863 = vmatprep.mubr.bf16.mxu0 %v10762_v14  ;;  %906 = vmatprep.mubr.bf16.mxu1 %v10762_v14  ;;  %v1326_v53 = vsel %vm343_vm0, %v8327_v50, 0  ;;  %v1228_v0 = vld [vmem:[%s10852_s24 + $0x2] sm:$0xff]  ;;  %v9761_v50 = vld [vmem:[%s13770_s1 + $0x2dc] ss:$24 sps:$4 sm:$0xff]  }
  0x36   : > { %v1582_v9 = vsel %vm343_vm0, %v8368_v5, 0  ;;  %v9777_v5 = vld [vmem:[%s13770_s1 + $0x34c] ss:$24 sps:$4 sm:$0xff]  }
  0x37   : > { %844 = vmatpush1.bf16.msra.mxu0 %v9654_v1  ;;  %887 = vmatpush1.bf16.msra.mxu1 %v9657_v2  ;;  %v1229_v1 = vld [vmem:[%s10852_s24 + $0xa] sm:$0xf]  ;;  %v8332_v2 = vcombine.high %v8314_v60, %v8314_v60 }
  0x38   : > { %845 = vmatprep.subr.bf16.mxu0 %v9662_v3  ;;  %888 = vmatprep.subr.bf16.mxu1 %v9665_v4  ;;  %v8369_v3 = vcombine.high %v8353_v62, %v8353_v62  ;;  %v8331_v4 = vcombine.low %v8314_v60, %v8314_v60  ;;  %v1230_v6 = vpack.c.bf16 %v1229_v1, %v1228_v0  ;;  %v9768_v62 = vld [vmem:[%s13770_s1 + $0x314] ss:$24 sps:$4 sm:$0xff]  }
  0x3b   : > { %846 = vmatpush1.bf16.msra.mxu0 %v9660_v7  ;;  %889 = vmatpush1.bf16.msra.mxu1 %v9663_v8  ;;  %v9720_v7 = vld [vmem:[%s13770_s1 + $0x224] ss:$24 sps:$4 sm:$0xff]   ;;  %v1338_v8 = vsel %vm343_vm0, %v8331_v4, 0 }
  0x3c   : > { %8257 = vmatprep.subr.msk.bf16.mxu0 %vm343_vm0, %v8252_v11  ;;  %8294 = vmatprep.subr.msk.bf16.mxu1 %vm343_vm0, %v8289_v12  ;;  %v9718_v11 = vld [vmem:[%s13770_s1 + $0x220] ss:$24 sps:$4 sm:$0xff]   ;;  %v9774_v4 = vld [vmem:[%s13770_s1 + $0x2e4] ss:$24 sps:$4 sm:$0xff]  }
  0x3d   : > { %v9721_v12 = vld [vmem:[%s13770_s1 + $0x288] ss:$24 sps:$4 sm:$0xff]  }
  0x3e   : > { %8254 = vmatmul.mubr.msk.bf16.vlgmr.msra.gmra.mxu0 %vm339_vm1, %v718_v16  ;;  %8256 = vmatmul.mubr.msk.bf16.vlgmr.msra.gmra.mxu1 %vm339_vm1, %v718_v16 }
  0x3f   : > { %928 = vmatpush1.bf16.msra.mxu0 %v826_v18  ;;  %1098 = vmatpush1.bf16.msra.mxu1 %v1070_v19  ;;  %v8355_v18 = vld [vmem:[%s13770_s1 + $0x2c8] sm:$0x11]  ;;  %v9727_v19 = vld [vmem:[%s13770_s1 + $0x258] ss:$24 sps:$4 sm:$0xff]  }
  0x40   : > { %929 = vmatprep.subr.bf16.mxu0 %v9672_v17  ;;  %1099 = vmatprep.subr.bf16.mxu1 %v9675_v20  ;;  %v9724_v17 = vld [vmem:[%s13770_s1 + $0x1f0] ss:$24 sps:$4 sm:$0xff]   ;;  %v8339_v20 = vld [vmem:[%s10852_s24 + $0x1a] sm:$0xff]  ;;  %v8372_v25 = vcombine.low %v8355_v18, %v8355_v18 }
  0x41   : > { %949 = vmatprep.mubr.bf16.mxu0 %v10762_v14  ;;  %1119 = vmatprep.mubr.bf16.mxu1 %v10762_v14 }
  0x42   : > { %v1594_v29 = vsel %vm343_vm0, %v8372_v25, 0  ;;  %v9793_v25 = vld [vmem:[%s13770_s1 + $0x35c] ss:$24 sps:$4 sm:$0xff]  }
  0x43   : > { %930 = vmatpush1.bf16.msra.mxu0 %v9670_v21  ;;  %1100 = vmatpush1.bf16.msra.mxu1 %v9673_v22  ;;  %v8340_v21 = vld [vmem:[%s10852_s24 + $0x22] sm:$0xf] }
  0x44   : > { %931 = vmatprep.subr.bf16.mxu0 %v9678_v23  ;;  %1101 = vmatprep.subr.bf16.mxu1 %v9681_v24  ;;  %v8373_v23 = vcombine.high %v8355_v18, %v8355_v18  ;;  %v9784_v18 = vld [vmem:[%s13770_s1 + $0x384] ss:$24 sps:$4 sm:$0xff]  }
  0x47   : > { %932 = vmatpush1.bf16.msra.mxu0 %v9676_v26  ;;  %1102 = vmatpush1.bf16.msra.mxu1 %v9679_v28  ;;  %v1486_v26 = vpack.c.bf16 %v8340_v21, %v8339_v20 }
  0x48   : > { %8296 = vmatprep.subr.msk.bf16.mxu0 %vm343_vm0, %v8291_v31  ;;  %8298 = vmatprep.subr.msk.bf16.mxu1 %vm343_vm0, %v8293_v32  ;;  %v9734_v31 = vld [vmem:[%s13770_s1 + $0x290] ss:$24 sps:$4 sm:$0xff]  }
  0x49   : > { %v9737_v32 = vld [vmem:[%s13770_s1 + $0x298] ss:$24 sps:$4 sm:$0xff]  }
  0x4a   : > { %8258 = vmatmul.mubr.msk.bf16.vlgmr.msra.gmra.mxu0 %vm339_vm1, %v718_v16  ;;  %8295 = vmatmul.mubr.msk.bf16.vlgmr.msra.gmra.mxu1 %vm339_vm1, %v974_v35  ;;  %v8354_v16 = vld [vmem:[%s13770_s1 + $0x2c0] sm:$0x11] }
  0x4b   : > { %1141 = vmatpush1.bf16.msra.mxu0 %v1076_v37  ;;  %1184 = vmatpush1.bf16.msra.mxu1 %v1082_v38  ;;  %v8371_v22 = vcombine.high %v8354_v16, %v8354_v16  ;;  %v8370_v24 = vcombine.low %v8354_v16, %v8354_v16  ;;  %v9740_v37 = vld [vmem:[%s13770_s1 + $0x260] ss:$24 sps:$4 sm:$0xff]  }
  0x4c   : > { %1142 = vmatprep.subr.bf16.mxu0 %v9688_v36  ;;  %1185 = vmatprep.subr.bf16.mxu1 %v9691_v39  ;;  %v8393_v36 = vld [vmem:[%s13770_s1 + $0x338] sm:$0x11]  ;;  %v9743_v38 = vld [vmem:[%s13770_s1 + $0x268] ss:$24 sps:$4 sm:$0xff]  }
  0x4d   : > { %1162 = vmatprep.mubr.bf16.mxu0 %v10762_v14  ;;  %1205 = vmatprep.mubr.bf16.mxu1 %v10762_v14  ;;  %v1588_v28 = vsel %vm343_vm0, %v8370_v24, 0  ;;  %v9790_v24 = vld [vmem:[%s13770_s1 + $0x354] ss:$24 sps:$4 sm:$0xff]  }
  0x4f   : > { %1143 = vmatpush1.bf16.msra.mxu0 %v9686_v40  ;;  %1186 = vmatpush1.bf16.msra.mxu1 %v9689_v41  ;;  %v8410_v40 = vcombine.high %v8393_v36, %v8393_v36 }
  0x50   : > { %1144 = vmatprep.subr.bf16.mxu0 %v9694_v42  ;;  %1187 = vmatprep.subr.bf16.mxu1 %v9697_v43  ;;  %v8409_v42 = vcombine.low %v8393_v36, %v8393_v36 }
  0x52   : > { %v1844_v44 = vsel %vm343_vm0, %v8409_v42, 0  ;;  %v8474_v42 = vld [vmem:[%s13770_s1 + $0x430] sm:$0x11] }
  0x53   : > { %1145 = vmatpush1.bf16.msra.mxu0 %v9692_v46  ;;  %1188 = vmatpush1.bf16.msra.mxu1 %v9695_v47  ;;  %v9755_v46 = vld [vmem:[%s13770_s1 + $0x30c] ss:$24 sps:$4 sm:$0xff]   ;;  %v9750_v47 = vld [vmem:[%s13770_s1 + $0x300] ss:$24 sps:$4 sm:$0xff]  }
  0x54   : > { %8333 = vmatprep.subr.msk.bf16.mxu0 %vm343_vm0, %v8328_v48  ;;  %8335 = vmatprep.subr.msk.bf16.mxu1 %vm343_vm0, %v8330_v49  ;;  %v9753_v48 = vld [vmem:[%s13770_s1 + $0x308] ss:$24 sps:$4 sm:$0xff]   ;;  %v9758_v49 = vld [vmem:[%s13770_s1 + $0x2d4] ss:$24 sps:$4 sm:$0xff]  }
  0x56   : > { %8297 = vmatmul.mubr.msk.bf16.vlgmr.msra.gmra.mxu0 %vm339_vm1, %v974_v35  ;;  %8299 = vmatmul.mubr.msk.bf16.vlgmr.msra.gmra.mxu1 %vm339_vm1, %v974_v35  ;;  %v8392_v35 = vld [vmem:[%s13770_s1 + $0x330] sm:$0x11] }
  0x57   : > { %1354 = vmatpush1.bf16.msra.mxu0 %v1326_v53  ;;  %1397 = vmatpush1.bf16.msra.mxu1 %v1332_v54  ;;  %v8408_v39 = vcombine.high %v8392_v35, %v8392_v35  ;;  %v8407_v41 = vcombine.low %v8392_v35, %v8392_v35  ;;  %v9759_v53 = vld [vmem:[%s13770_s1 + $0x2d8] ss:$24 sps:$4 sm:$0xff]   ;;  %v8433_v54 = vld [vmem:[%s13770_s1 + $0x3a8] sm:$0x11]  ;;  %v9803_v35 = vld [vmem:[%s13770_s1 + $0x3fc] ss:$24 sps:$4 sm:$0xff]  }
  0x58   : > { %1355 = vmatprep.subr.bf16.mxu0 %v9704_v52  ;;  %1398 = vmatprep.subr.bf16.mxu1 %v9707_v55  ;;  %v9756_v52 = vld [vmem:[%s13770_s1 + $0x2d0] ss:$24 sps:$4 sm:$0xff]   ;;  %v8448_v60 = vcombine.low %v8433_v54, %v8433_v54 }
  0x59   : > { %1375 = vmatprep.mubr.bf16.mxu0 %v10762_v14  ;;  %1418 = vmatprep.mubr.bf16.mxu1 %v10762_v14  ;;  %v1838_v43 = vsel %vm343_vm0, %v8407_v41, 0  ;;  %v1740_v55 = vld [vmem:[%s10852_s24 + $0x3] sm:$0xff] }
  0x5a   : > { %v2094_v1 = vsel %vm343_vm0, %v8448_v60, 0  ;;  %v9809_v41 = vld [vmem:[%s13770_s1 + $0x3cc] ss:$24 sps:$4 sm:$0xff]   ;;  %v9825_v60 = vld [vmem:[%s13770_s1 + $0x43c] ss:$24 sps:$4 sm:$0xff]  }
  0x5b   : > { %1356 = vmatpush1.bf16.msra.mxu0 %v9702_v56  ;;  %1399 = vmatpush1.bf16.msra.mxu1 %v9705_v57  ;;  %v1741_v56 = vld [vmem:[%s10852_s24 + $0xb] sm:$0xf]  ;;  %v8412_v57 = vcombine.high %v8394_v51, %v8394_v51 }
  0x5c   : > { %1357 = vmatprep.subr.bf16.mxu0 %v9710_v58  ;;  %1400 = vmatprep.subr.bf16.mxu1 %v9713_v59  ;;  %v8449_v58 = vcombine.high %v8433_v54, %v8433_v54  ;;  %v8411_v59 = vcombine.low %v8394_v51, %v8394_v51  ;;  %v9819_v54 = vld [vmem:[%s13770_s1 + $0x46c] ss:$24 sps:$4 sm:$0xff]  }
  0x5e   : > { %v1850_v0 = vsel %vm343_vm0, %v8411_v59, 0  ;;  %v9822_v59 = vld [vmem:[%s13770_s1 + $0x3d4] ss:$24 sps:$4 sm:$0xff]  }
  0x5f   : > { %1358 = vmatpush1.bf16.msra.mxu0 %v9708_v61  ;;  %1401 = vmatpush1.bf16.msra.mxu1 %v9711_v63  ;;  %v1742_v61 = vpack.c.bf16 %v1741_v56, %v1740_v55  ;;  %v9771_v63 = vld [vmem:[%s13770_s1 + $0x37c] ss:$24 sps:$4 sm:$0xff]  }
  0x60   : > { %8337 = vmatprep.subr.msk.bf16.mxu0 %vm343_vm0, %v8332_v2  ;;  %8374 = vmatprep.subr.msk.bf16.mxu1 %vm343_vm0, %v8369_v3  ;;  %v9766_v2 = vld [vmem:[%s13770_s1 + $0x310] ss:$24 sps:$4 sm:$0xff]  }
  0x61   : > { %v9769_v3 = vld [vmem:[%s13770_s1 + $0x378] ss:$24 sps:$4 sm:$0xff]  }
  0x62   : > { %8334 = vmatmul.mubr.msk.bf16.vlgmr.msra.gmra.mxu0 %vm339_vm1, %v1230_v6  ;;  %8336 = vmatmul.mubr.msk.bf16.vlgmr.msra.gmra.mxu1 %vm339_vm1, %v1230_v6 }
  0x63   : > { %1440 = vmatpush1.bf16.msra.mxu0 %v1338_v8  ;;  %1610 = vmatpush1.bf16.msra.mxu1 %v1582_v9  ;;  %v9772_v8 = vld [vmem:[%s13770_s1 + $0x2e0] ss:$24 sps:$4 sm:$0xff]  }
  0x64   : > { %1441 = vmatprep.subr.bf16.mxu0 %v9720_v7  ;;  %1611 = vmatprep.subr.bf16.mxu1 %v9723_v10  ;;  %v8435_v7 = vld [vmem:[%s13770_s1 + $0x3b8] sm:$0x11]  ;;  %v9775_v9 = vld [vmem:[%s13770_s1 + $0x348] ss:$24 sps:$4 sm:$0xff]  }
  0x65   : > { %1461 = vmatprep.mubr.bf16.mxu0 %v10762_v14  ;;  %1631 = vmatprep.mubr.bf16.mxu1 %v10762_v14  ;;  %v8419_v10 = vld [vmem:[%s10852_s24 + $0x1b] sm:$0xff]  ;;  %v8452_v16 = vcombine.low %v8435_v7, %v8435_v7 }
  0x67   : > { %1442 = vmatpush1.bf16.msra.mxu0 %v9718_v11  ;;  %1612 = vmatpush1.bf16.msra.mxu1 %v9721_v12  ;;  %v8420_v11 = vld [vmem:[%s10852_s24 + $0x23] sm:$0xf]  ;;  %v2106_v21 = vsel %vm343_vm0, %v8452_v16, 0 }
  0x68   : > { %1443 = vmatprep.subr.bf16.mxu0 %v9726_v13  ;;  %1613 = vmatprep.subr.bf16.mxu1 %v9729_v15  ;;  %v8453_v13 = vcombine.high %v8435_v7, %v8435_v7  ;;  %v9841_v16 = vld [vmem:[%s13770_s1 + $0x44c] ss:$24 sps:$4 sm:$0xff]  }
  0x6b   : > { %1444 = vmatpush1.bf16.msra.mxu0 %v9724_v17  ;;  %1614 = vmatpush1.bf16.msra.mxu1 %v9727_v19  ;;  %v1998_v17 = vpack.c.bf16 %v8420_v11, %v8419_v10  ;;  %v9787_v19 = vld [vmem:[%s13770_s1 + $0x38c] ss:$24 sps:$4 sm:$0xff]  }
  0x6c   : > { %8376 = vmatprep.subr.msk.bf16.mxu0 %vm343_vm0, %v8371_v22  ;;  %8378 = vmatprep.subr.msk.bf16.mxu1 %vm343_vm0, %v8373_v23  ;;  %v9782_v22 = vld [vmem:[%s13770_s1 + $0x380] ss:$24 sps:$4 sm:$0xff]  }
  0x6d   : > { %v9785_v23 = vld [vmem:[%s13770_s1 + $0x388] ss:$24 sps:$4 sm:$0xff]  }
  0x6e   : > { %8338 = vmatmul.mubr.msk.bf16.vlgmr.msra.gmra.mxu0 %vm339_vm1, %v1230_v6  ;;  %8375 = vmatmul.mubr.msk.bf16.vlgmr.msra.gmra.mxu1 %vm339_vm1, %v1486_v26  ;;  %v8434_v6 = vld [vmem:[%s13770_s1 + $0x3b0] sm:$0x11] }
  0x6f   : > { %1653 = vmatpush1.bf16.msra.mxu0 %v1588_v28  ;;  %1696 = vmatpush1.bf16.msra.mxu1 %v1594_v29  ;;  %v8451_v12 = vcombine.high %v8434_v6, %v8434_v6  ;;  %v8450_v15 = vcombine.low %v8434_v6, %v8434_v6  ;;  %v9788_v28 = vld [vmem:[%s13770_s1 + $0x350] ss:$24 sps:$4 sm:$0xff]  }
  0x70   : > { %1654 = vmatprep.subr.bf16.mxu0 %v9736_v27  ;;  %1697 = vmatprep.subr.bf16.mxu1 %v9739_v30  ;;  %v8473_v27 = vld [vmem:[%s13770_s1 + $0x428] sm:$0x11]  ;;  %v9791_v29 = vld [vmem:[%s13770_s1 + $0x358] ss:$24 sps:$4 sm:$0xff]  }
  0x71   : > { %1674 = vmatprep.mubr.bf16.mxu0 %v10762_v14  ;;  %1717 = vmatprep.mubr.bf16.mxu1 %v10762_v14  ;;  %v2100_v20 = vsel %vm343_vm0, %v8450_v15, 0  ;;  %v9838_v15 = vld [vmem:[%s13770_s1 + $0x444] ss:$24 sps:$4 sm:$0xff]  }
  0x73   : > { %1655 = vmatpush1.bf16.msra.mxu0 %v9734_v31  ;;  %1698 = vmatpush1.bf16.msra.mxu1 %v9737_v32  ;;  %v8490_v31 = vcombine.high %v8473_v27, %v8473_v27 }
  0x74   : > { %1656 = vmatprep.subr.bf16.mxu0 %v9742_v33  ;;  %1699 = vmatprep.subr.bf16.mxu1 %v9745_v34  ;;  %v8489_v33 = vcombine.low %v8473_v27, %v8473_v27  ;;  %v9800_v34 = vld [vmem:[%s13770_s1 + $0x3f4] ss:$24 sps:$4 sm:$0xff]  }
  0x77   : > { %1657 = vmatpush1.bf16.msra.mxu0 %v9740_v37  ;;  %1700 = vmatpush1.bf16.msra.mxu1 %v9743_v38  ;;  %v2356_v37 = vsel %vm343_vm0, %v8489_v33, 0  ;;  %v9798_v38 = vld [vmem:[%s13770_s1 + $0x3f0] ss:$24 sps:$4 sm:$0xff]   ;;  %v8554_v33 = vld [vmem:[%s13770_s1 + $0x520] sm:$0x11] }
  0x78   : > { %8413 = vmatprep.subr.msk.bf16.mxu0 %vm343_vm0, %v8408_v39  ;;  %8415 = vmatprep.subr.msk.bf16.mxu1 %vm343_vm0, %v8410_v40  ;;  %v9801_v39 = vld [vmem:[%s13770_s1 + $0x3f8] ss:$24 sps:$4 sm:$0xff]   ;;  %v9806_v40 = vld [vmem:[%s13770_s1 + $0x3c4] ss:$24 sps:$4 sm:$0xff]  }
  0x7a   : > { %8377 = vmatmul.mubr.msk.bf16.vlgmr.msra.gmra.mxu0 %vm339_vm1, %v1486_v26  ;;  %8379 = vmatmul.mubr.msk.bf16.vlgmr.msra.gmra.mxu1 %vm339_vm1, %v1486_v26  ;;  %v8472_v26 = vld [vmem:[%s13770_s1 + $0x420] sm:$0x11] }
  0x7b   : > { %1866 = vmatpush1.bf16.msra.mxu0 %v1838_v43  ;;  %1909 = vmatpush1.bf16.msra.mxu1 %v1844_v44  ;;  %v8488_v30 = vcombine.high %v8472_v26, %v8472_v26  ;;  %v8487_v32 = vcombine.low %v8472_v26, %v8472_v26  ;;  %v8513_v43 = vld [vmem:[%s13770_s1 + $0x498] sm:$0x11]  ;;  %v9851_v26 = vld [vmem:[%s13770_s1 + $0x4ec] ss:$24 sps:$4 sm:$0xff]  }
  0x7c   : > { %1867 = vmatprep.subr.bf16.mxu0 %v9752_v45  ;;  %1910 = vmatprep.subr.bf16.mxu1 %v9755_v46  ;;  %v9804_v44 = vld [vmem:[%s13770_s1 + $0x3c0] ss:$24 sps:$4 sm:$0xff]   ;;  %v2252_v46 = vld [vmem:[%s10852_s24 + $0x4] sm:$0xff]  ;;  %v8528_v51 = vcombine.low %v8513_v43, %v8513_v43 }
  0x7d   : > { %1887 = vmatprep.mubr.bf16.mxu0 %v10762_v14  ;;  %1930 = vmatprep.mubr.bf16.mxu1 %v10762_v14  ;;  %v2350_v36 = vsel %vm343_vm0, %v8487_v32, 0  ;;  %v9807_v45 = vld [vmem:[%s13770_s1 + $0x3c8] ss:$24 sps:$4 sm:$0xff]   ;;  %v9857_v32 = vld [vmem:[%s13770_s1 + $0x4bc] ss:$24 sps:$4 sm:$0xff]  }
  0x7e   : > { %v2606_v56 = vsel %vm343_vm0, %v8528_v51, 0  ;;  %v9873_v51 = vld [vmem:[%s13770_s1 + $0x52c] ss:$24 sps:$4 sm:$0xff]  }
  0x7f   : > { %1868 = vmatpush1.bf16.msra.mxu0 %v9750_v47  ;;  %1911 = vmatpush1.bf16.msra.mxu1 %v9753_v48  ;;  %v2253_v47 = vld [vmem:[%s10852_s24 + $0xc] sm:$0xf]  ;;  %v8492_v48 = vcombine.high %v8474_v42, %v8474_v42 }
  0x80   : > { %1869 = vmatprep.subr.bf16.mxu0 %v9758_v49  ;;  %1912 = vmatprep.subr.bf16.mxu1 %v9761_v50  ;;  %v8529_v49 = vcombine.high %v8513_v43, %v8513_v43  ;;  %v8491_v50 = vcombine.low %v8474_v42, %v8474_v42 }
  0x82   : > { %v2362_v55 = vsel %vm343_vm0, %v8491_v50, 0  ;;  %v9870_v50 = vld [vmem:[%s13770_s1 + $0x4c4] ss:$24 sps:$4 sm:$0xff]  }
  0x83   : > { %1870 = vmatpush1.bf16.msra.mxu0 %v9756_v52  ;;  %1913 = vmatpush1.bf16.msra.mxu1 %v9759_v53  ;;  %v2254_v52 = vpack.c.bf16 %v2253_v47, %v2252_v46  ;;  %v9816_v53 = vld [vmem:[%s13770_s1 + $0x404] ss:$24 sps:$4 sm:$0xff]  }
  0x84   : > { %8417 = vmatprep.subr.msk.bf16.mxu0 %vm343_vm0, %v8412_v57  ;;  %8454 = vmatprep.subr.msk.bf16.mxu1 %vm343_vm0, %v8449_v58  ;;  %v9814_v57 = vld [vmem:[%s13770_s1 + $0x400] ss:$24 sps:$4 sm:$0xff]  }
  0x85   : > { %v9817_v58 = vld [vmem:[%s13770_s1 + $0x468] ss:$24 sps:$4 sm:$0xff]  }
  0x86   : > { %8414 = vmatmul.mubr.msk.bf16.vlgmr.msra.gmra.mxu0 %vm339_vm1, %v1742_v61  ;;  %8416 = vmatmul.mubr.msk.bf16.vlgmr.msra.gmra.mxu1 %vm339_vm1, %v1742_v61 }
  0x87   : > { %1952 = vmatpush1.bf16.msra.mxu0 %v1850_v0  ;;  %2122 = vmatpush1.bf16.msra.mxu1 %v2094_v1  ;;  %v9823_v0 = vld [vmem:[%s13770_s1 + $0x438] ss:$24 sps:$4 sm:$0xff]   ;;  %v8499_v1 = vld [vmem:[%s10852_s24 + $0x1c] sm:$0xff] }
  0x88   : > { %1953 = vmatprep.subr.bf16.mxu0 %v9768_v62  ;;  %2123 = vmatprep.subr.bf16.mxu1 %v9771_v63  ;;  %v8515_v62 = vld [vmem:[%s13770_s1 + $0x4a8] sm:$0x11] }
  0x89   : > { %1973 = vmatprep.mubr.bf16.mxu0 %v10762_v14  ;;  %2143 = vmatprep.mubr.bf16.mxu1 %v10762_v14  ;;  %v9820_v63 = vld [vmem:[%s13770_s1 + $0x3d0] ss:$24 sps:$4 sm:$0xff]   ;;  %v8532_v6 = vcombine.low %v8515_v62, %v8515_v62 }
  0x8b   : > { %1954 = vmatpush1.bf16.msra.mxu0 %v9766_v2  ;;  %2124 = vmatpush1.bf16.msra.mxu1 %v9769_v3  ;;  %v8500_v2 = vld [vmem:[%s10852_s24 + $0x24] sm:$0xf]  ;;  %v2618_v11 = vsel %vm343_vm0, %v8532_v6, 0 }
  0x8c   : > { %1955 = vmatprep.subr.bf16.mxu0 %v9774_v4  ;;  %2125 = vmatprep.subr.bf16.mxu1 %v9777_v5  ;;  %v8533_v4 = vcombine.high %v8515_v62, %v8515_v62  ;;  %v2510_v7 = vpack.c.bf16 %v8500_v2, %v8499_v1 }
  0x8f   : > { %1956 = vmatpush1.bf16.msra.mxu0 %v9772_v8  ;;  %2126 = vmatpush1.bf16.msra.mxu1 %v9775_v9  ;;  %v9832_v8 = vld [vmem:[%s13770_s1 + $0x474] ss:$24 sps:$4 sm:$0xff]  }
  0x90   : > { %8456 = vmatprep.subr.msk.bf16.mxu0 %vm343_vm0, %v8451_v12  ;;  %8458 = vmatprep.subr.msk.bf16.mxu1 %vm343_vm0, %v8453_v13  ;;  %v9835_v9 = vld [vmem:[%s13770_s1 + $0x47c] ss:$24 sps:$4 sm:$0xff]   ;;  %v9830_v12 = vld [vmem:[%s13770_s1 + $0x470] ss:$24 sps:$4 sm:$0xff]  }
  0x91   : > { %v9833_v13 = vld [vmem:[%s13770_s1 + $0x478] ss:$24 sps:$4 sm:$0xff]  }
  0x92   : > { %8418 = vmatmul.mubr.msk.bf16.vlgmr.msra.gmra.mxu0 %vm339_vm1, %v1742_v61  ;;  %8455 = vmatmul.mubr.msk.bf16.vlgmr.msra.gmra.mxu1 %vm339_vm1, %v1998_v17  ;;  %v8514_v61 = vld [vmem:[%s13770_s1 + $0x4a0] sm:$0x11] }
  0x93   : > { %2165 = vmatpush1.bf16.msra.mxu0 %v2100_v20  ;;  %2208 = vmatpush1.bf16.msra.mxu1 %v2106_v21  ;;  %v8531_v3 = vcombine.high %v8514_v61, %v8514_v61  ;;  %v8530_v5 = vcombine.low %v8514_v61, %v8514_v61  ;;  %v9839_v20 = vld [vmem:[%s13770_s1 + $0x448] ss:$24 sps:$4 sm:$0xff]  }
  0x94   : > { %2166 = vmatprep.subr.bf16.mxu0 %v9784_v18  ;;  %2209 = vmatprep.subr.bf16.mxu1 %v9787_v19  ;;  %v8553_v18 = vld [vmem:[%s13770_s1 + $0x518] sm:$0x11] }
  0x95   : > { %2186 = vmatprep.mubr.bf16.mxu0 %v10762_v14  ;;  %2229 = vmatprep.mubr.bf16.mxu1 %v10762_v14  ;;  %v2612_v10 = vsel %vm343_vm0, %v8530_v5, 0  ;;  %v9836_v19 = vld [vmem:[%s13770_s1 + $0x440] ss:$24 sps:$4 sm:$0xff]  }
  0x97   : > { %2167 = vmatpush1.bf16.msra.mxu0 %v9782_v22  ;;  %2210 = vmatpush1.bf16.msra.mxu1 %v9785_v23  ;;  %v8570_v22 = vcombine.high %v8553_v18, %v8553_v18 }
  0x98   : > { %2168 = vmatprep.subr.bf16.mxu0 %v9790_v24  ;;  %2211 = vmatprep.subr.bf16.mxu1 %v9793_v25  ;;  %v8569_v24 = vcombine.low %v8553_v18, %v8553_v18  ;;  %v9848_v25 = vld [vmem:[%s13770_s1 + $0x4e4] ss:$24 sps:$4 sm:$0xff]  }
  0x9b   : > { %2169 = vmatpush1.bf16.msra.mxu0 %v9788_v28  ;;  %2212 = vmatpush1.bf16.msra.mxu1 %v9791_v29  ;;  %v2868_v28 = vsel %vm343_vm0, %v8569_v24, 0  ;;  %v9846_v29 = vld [vmem:[%s13770_s1 + $0x4e0] ss:$24 sps:$4 sm:$0xff]  }
  0x9c   : > { %8493 = vmatprep.subr.msk.bf16.mxu0 %vm343_vm0, %v8488_v30  ;;  %8495 = vmatprep.subr.msk.bf16.mxu1 %vm343_vm0, %v8490_v31  ;;  %v9849_v30 = vld [vmem:[%s13770_s1 + $0x4e8] ss:$24 sps:$4 sm:$0xff]   ;;  %v9854_v31 = vld [vmem:[%s13770_s1 + $0x4b4] ss:$24 sps:$4 sm:$0xff]  }
  0x9e   : > { %8457 = vmatmul.mubr.msk.bf16.vlgmr.msra.gmra.mxu0 %vm339_vm1, %v1998_v17  ;;  %8459 = vmatmul.mubr.msk.bf16.vlgmr.msra.gmra.mxu1 %vm339_vm1, %v1998_v17  ;;  %v8552_v17 = vld [vmem:[%s13770_s1 + $0x510] sm:$0x11] }
  0x9f   : > { %2378 = vmatpush1.bf16.msra.mxu0 %v2350_v36  ;;  %2421 = vmatpush1.bf16.msra.mxu1 %v2356_v37  ;;  %v8568_v21 = vcombine.high %v8552_v17, %v8552_v17  ;;  %v8567_v23 = vcombine.low %v8552_v17, %v8552_v17  ;;  %v9855_v36 = vld [vmem:[%s13770_s1 + $0x4b8] ss:$24 sps:$4 sm:$0xff]   ;;  %v2764_v37 = vld [vmem:[%s10852_s24 + $0x5] sm:$0xff] }
  0xa0   : > { %2379 = vmatprep.subr.bf16.mxu0 %v9800_v34  ;;  %2422 = vmatprep.subr.bf16.mxu1 %v9803_v35  ;;  %v8593_v34 = vld [vmem:[%s13770_s1 + $0x588] sm:$0x11] }
  0xa1   : > { %2399 = vmatprep.mubr.bf16.mxu0 %v10762_v14  ;;  %2442 = vmatprep.mubr.bf16.mxu1 %v10762_v14  ;;  %v2862_v27 = vsel %vm343_vm0, %v8567_v23, 0  ;;  %v9852_v35 = vld [vmem:[%s13770_s1 + $0x4b0] ss:$24 sps:$4 sm:$0xff]   ;;  %v8608_v42 = vcombine.low %v8593_v34, %v8593_v34 }
  0xa3   : > { %2380 = vmatpush1.bf16.msra.mxu0 %v9798_v38  ;;  %2423 = vmatpush1.bf16.msra.mxu1 %v9801_v39  ;;  %v2765_v38 = vld [vmem:[%s10852_s24 + $0xd] sm:$0xf]  ;;  %v8572_v39 = vcombine.high %v8554_v33, %v8554_v33  ;;  %v3118_v47 = vsel %vm343_vm0, %v8608_v42, 0 }
  0xa4   : > { %2381 = vmatprep.subr.bf16.mxu0 %v9806_v40  ;;  %2424 = vmatprep.subr.bf16.mxu1 %v9809_v41  ;;  %v8609_v40 = vcombine.high %v8593_v34, %v8593_v34  ;;  %v8571_v41 = vcombine.low %v8554_v33, %v8554_v33  ;;  %v2766_v43 = vpack.c.bf16 %v2765_v38, %v2764_v37 }
  0xa6   : > { %v2874_v46 = vsel %vm343_vm0, %v8571_v41, 0 }
  0xa7   : > { %2382 = vmatpush1.bf16.msra.mxu0 %v9804_v44  ;;  %2425 = vmatpush1.bf16.msra.mxu1 %v9807_v45  ;;  %v9864_v44 = vld [vmem:[%s13770_s1 + $0x4f4] ss:$24 sps:$4 sm:$0xff]  }
  0xa8   : > { %8497 = vmatprep.subr.msk.bf16.mxu0 %vm343_vm0, %v8492_v48  ;;  %8534 = vmatprep.subr.msk.bf16.mxu1 %vm343_vm0, %v8529_v49  ;;  %v9867_v45 = vld [vmem:[%s13770_s1 + $0x55c] ss:$24 sps:$4 sm:$0xff]   ;;  %v9862_v48 = vld [vmem:[%s13770_s1 + $0x4f0] ss:$24 sps:$4 sm:$0xff]  }
  0xa9   : > { %v9865_v49 = vld [vmem:[%s13770_s1 + $0x558] ss:$24 sps:$4 sm:$0xff]  }
  0xaa   : > { %8494 = vmatmul.mubr.msk.bf16.vlgmr.msra.gmra.mxu0 %vm339_vm1, %v2254_v52  ;;  %8496 = vmatmul.mubr.msk.bf16.vlgmr.msra.gmra.mxu1 %vm339_vm1, %v2254_v52 }
  0xab   : > { %2464 = vmatpush1.bf16.msra.mxu0 %v2362_v55  ;;  %2634 = vmatpush1.bf16.msra.mxu1 %v2606_v56  ;;  %v9871_v55 = vld [vmem:[%s13770_s1 + $0x528] ss:$24 sps:$4 sm:$0xff]  }
  0xac   : > { %2465 = vmatprep.subr.bf16.mxu0 %v9816_v53  ;;  %2635 = vmatprep.subr.bf16.mxu1 %v9819_v54  ;;  %v8595_v53 = vld [vmem:[%s13770_s1 + $0x598] sm:$0x11]  ;;  %v8579_v56 = vld [vmem:[%s10852_s24 + $0x1d] sm:$0xff] }
  0xad   : > { %2485 = vmatprep.mubr.bf16.mxu0 %v10762_v14  ;;  %2655 = vmatprep.mubr.bf16.mxu1 %v10762_v14  ;;  %v9868_v54 = vld [vmem:[%s13770_s1 + $0x4c0] ss:$24 sps:$4 sm:$0xff]   ;;  %v8612_v61 = vcombine.low %v8595_v53, %v8595_v53 }
  0xaf   : > { %2466 = vmatpush1.bf16.msra.mxu0 %v9814_v57  ;;  %2636 = vmatpush1.bf16.msra.mxu1 %v9817_v58  ;;  %v8580_v57 = vld [vmem:[%s10852_s24 + $0x25] sm:$0xf]  ;;  %v3130_v2 = vsel %vm343_vm0, %v8612_v61, 0 }
  0xb0   : > { %2467 = vmatprep.subr.bf16.mxu0 %v9822_v59  ;;  %2637 = vmatprep.subr.bf16.mxu1 %v9825_v60  ;;  %v8613_v59 = vcombine.high %v8595_v53, %v8595_v53  ;;  %v3022_v62 = vpack.c.bf16 %v8580_v57, %v8579_v56 }
  0xb3   : > { %2468 = vmatpush1.bf16.msra.mxu0 %v9820_v63  ;;  %2638 = vmatpush1.bf16.msra.mxu1 %v9823_v0  ;;  %v9880_v63 = vld [vmem:[%s13770_s1 + $0x564] ss:$24 sps:$4 sm:$0xff]  }
  0xb4   : > { %8536 = vmatprep.subr.msk.bf16.mxu0 %vm343_vm0, %v8531_v3  ;;  %8538 = vmatprep.subr.msk.bf16.mxu1 %vm343_vm0, %v8533_v4  ;;  %v9883_v0 = vld [vmem:[%s13770_s1 + $0x56c] ss:$24 sps:$4 sm:$0xff]   ;;  %v9878_v3 = vld [vmem:[%s13770_s1 + $0x560] ss:$24 sps:$4 sm:$0xff]  }
  0xb5   : > { %v9881_v4 = vld [vmem:[%s13770_s1 + $0x568] ss:$24 sps:$4 sm:$0xff]  }
  0xb6   : > { %8498 = vmatmul.mubr.msk.bf16.vlgmr.msra.gmra.mxu0 %vm339_vm1, %v2254_v52  ;;  %8535 = vmatmul.mubr.msk.bf16.vlgmr.msra.gmra.mxu1 %vm339_vm1, %v2510_v7  ;;  %v8594_v52 = vld [vmem:[%s13770_s1 + $0x590] sm:$0x11] }
  0xb7   : > { %2677 = vmatpush1.bf16.msra.mxu0 %v2612_v10  ;;  %2720 = vmatpush1.bf16.msra.mxu1 %v2618_v11  ;;  %v8611_v58 = vcombine.high %v8594_v52, %v8594_v52  ;;  %v8610_v60 = vcombine.low %v8594_v52, %v8594_v52  ;;  %v9884_v11 = vld [vmem:[%s13770_s1 + $0x530] ss:$24 sps:$4 sm:$0xff]  }
  0xb8   : > { %2678 = vmatprep.subr.bf16.mxu0 %v9832_v8  ;;  %2721 = vmatprep.subr.bf16.mxu1 %v9835_v9  ;;  %v9889_v8 = vld [vmem:[%s13770_s1 + $0x53c] ss:$24 sps:$4 sm:$0xff]  }
  0xb9   : > { %2698 = vmatprep.mubr.bf16.mxu0 %v10762_v14  ;;  %2741 = vmatprep.mubr.bf16.mxu1 %v10762_v14  ;;  %v3124_v1 = vsel %vm343_vm0, %v8610_v60, 0 }
  0xbb   : > { %2679 = vmatpush1.bf16.msra.mxu0 %v9830_v12  ;;  %2722 = vmatpush1.bf16.msra.mxu1 %v9833_v13  ;;  %v9887_v12 = vld [vmem:[%s13770_s1 + $0x538] ss:$24 sps:$4 sm:$0xff]  }
  0xbc   : > { %2680 = vmatprep.subr.bf16.mxu0 %v9838_v15  ;;  %2723 = vmatprep.subr.bf16.mxu1 %v9841_v16 }
  0xbf   : > { %2681 = vmatpush1.bf16.msra.mxu0 %v9836_v19  ;;  %2724 = vmatpush1.bf16.msra.mxu1 %v9839_v20 }
  0xc0   : > { %8573 = vmatprep.subr.msk.bf16.mxu0 %vm343_vm0, %v8568_v21  ;;  %8575 = vmatprep.subr.msk.bf16.mxu1 %vm343_vm0, %v8570_v22 }
  0xc2   : > { %8537 = vmatmul.mubr.msk.bf16.vlgmr.msra.gmra.mxu0 %vm339_vm1, %v2510_v7  ;;  %8539 = vmatmul.mubr.msk.bf16.vlgmr.msra.gmra.mxu1 %vm339_vm1, %v2510_v7  ;;  %v9886_v7 = vld [vmem:[%s13770_s1 + $0x534] ss:$24 sps:$4 sm:$0xff]  }
  0xc3   : > { %2890 = vmatpush1.bf16.msra.mxu0 %v2862_v27  ;;  %2933 = vmatpush1.bf16.msra.mxu1 %v2868_v28 }
  0xc4   : > { %2891 = vmatprep.subr.bf16.mxu0 %v9848_v25  ;;  %2934 = vmatprep.subr.bf16.mxu1 %v9851_v26 }
  0xc5   : > { %2911 = vmatprep.mubr.bf16.mxu0 %v10762_v14  ;;  %2954 = vmatprep.mubr.bf16.mxu1 %v10762_v14 }
  0xc7   : > { %2892 = vmatpush1.bf16.msra.mxu0 %v9846_v29  ;;  %2935 = vmatpush1.bf16.msra.mxu1 %v9849_v30 }
  0xc8   : > { %2893 = vmatprep.subr.bf16.mxu0 %v9854_v31  ;;  %2936 = vmatprep.subr.bf16.mxu1 %v9857_v32 }
  0xcb   : > { %2894 = vmatpush1.bf16.msra.mxu0 %v9852_v35  ;;  %2937 = vmatpush1.bf16.msra.mxu1 %v9855_v36 }
  0xcc   : > { %8577 = vmatprep.subr.msk.bf16.mxu0 %vm343_vm0, %v8572_v39  ;;  %8614 = vmatprep.subr.msk.bf16.mxu1 %vm343_vm0, %v8609_v40 }
  0xce   : > { %8574 = vmatmul.mubr.msk.bf16.vlgmr.msra.gmra.mxu0 %vm339_vm1, %v2766_v43  ;;  %8576 = vmatmul.mubr.msk.bf16.vlgmr.msra.gmra.mxu1 %vm339_vm1, %v2766_v43 }
  0xcf   : > { %2976 = vmatpush1.bf16.msra.mxu0 %v2874_v46  ;;  %3146 = vmatpush1.bf16.msra.mxu1 %v3118_v47 }
  0xd0   : > { %2977 = vmatprep.subr.bf16.mxu0 %v9864_v44  ;;  %3147 = vmatprep.subr.bf16.mxu1 %v9867_v45 }
  0xd1   : > { %2997 = vmatprep.mubr.bf16.mxu0 %v10762_v14  ;;  %3167 = vmatprep.mubr.bf16.mxu1 %v10762_v14 }
  0xd3   : > { %2978 = vmatpush1.bf16.msra.mxu0 %v9862_v48  ;;  %3148 = vmatpush1.bf16.msra.mxu1 %v9865_v49 }
  0xd4   : > { %2979 = vmatprep.subr.bf16.mxu0 %v9870_v50  ;;  %3149 = vmatprep.subr.bf16.mxu1 %v9873_v51 }
  0xd7   : > { %2980 = vmatpush1.bf16.msra.mxu0 %v9868_v54  ;;  %3150 = vmatpush1.bf16.msra.mxu1 %v9871_v55 }
  0xd8   : > { %8616 = vmatprep.subr.msk.bf16.mxu0 %vm343_vm0, %v8611_v58  ;;  %8618 = vmatprep.subr.msk.bf16.mxu1 %vm343_vm0, %v8613_v59 }
  0xda   : > { %v396_v5 = vpop.f32.mrf.mxu0  ;;  %v439_v6 = vpop.f32.mrf.mxu1  ;;  %8578 = vmatmul.mubr.msk.bf16.vlgmr.msra.gmra.mxu0 %vm339_vm1, %v2766_v43  ;;  %8615 = vmatmul.mubr.msk.bf16.vlgmr.msra.gmra.mxu1 %vm339_vm1, %v3022_v62 }
  0xdb   : > { %3189 = vmatpush1.bf16.msra.mxu0 %v3124_v1  ;;  %3232 = vmatpush1.bf16.msra.mxu1 %v3130_v2 }
  0xdc   : > { %v398_v9 = vpop.f32.mrf.mxu0  ;;  %v441_v10 = vpop.f32.mrf.mxu1  ;;  %3190 = vmatprep.subr.bf16.mxu0 %v9880_v63  ;;  %3233 = vmatprep.subr.bf16.mxu1 %v9883_v0 }
  0xdd   : > { %3210 = vmatprep.mubr.bf16.mxu0 %v10762_v14  ;;  %3253 = vmatprep.mubr.bf16.mxu1 %v10762_v14 }
  0xde   : > { %v400_v13 = vpop.f32.mrf.mxu0  ;;  %v443_v15 = vpop.f32.mrf.mxu1 }
  0xdf   : > { %3191 = vmatpush1.bf16.msra.mxu0 %v9878_v3  ;;  %3234 = vmatpush1.bf16.msra.mxu1 %v9881_v4 }
  0xe0   : > { %3192 = vmatprep.subr.bf16.mxu0 %v9886_v7  ;;  %3235 = vmatprep.subr.bf16.mxu1 %v9889_v8  ;;  %v402_v16 = vpop.f32.mrf.mxu0  ;;  %v445_v17 = vpop.f32.mrf.mxu1 }
  0xe3   : > { %3193 = vmatpush1.bf16.msra.mxu0 %v9884_v11  ;;  %3236 = vmatpush1.bf16.msra.mxu1 %v9887_v12 }
  0xe6   : > { %v482_v18 = vpop.f32.mrf.mxu0  ;;  %v621_v19 = vpop.f32.mrf.mxu1  ;;  %8617 = vmatmul.mubr.msk.bf16.vlgmr.msra.gmra.mxu0 %vm339_vm1, %v3022_v62  ;;  %8619 = vmatmul.mubr.msk.bf16.vlgmr.msra.gmra.mxu1 %vm339_vm1, %v3022_v62 }
  0xe7   : > { %v622_v20 = vadd.f32 %v621_v19, %v396_v5 }
  0xe8   : > { %v484_v21 = vpop.f32.mrf.mxu0  ;;  %v623_v22 = vpop.f32.mrf.mxu1 }
  0xe9   : > { %v624_v14 = vadd.f32 %v623_v22, %v398_v9 }
  0xea   : > { %v625_v23 = vpop.f32.mrf.mxu1  ;;  %v486_v25 = vpop.f32.mrf.mxu0 }
  0xeb   : > { %v626_v24 = vadd.f32 %v625_v23, %v400_v13 }
  0xec   : > { %v627_v26 = vpop.f32.mrf.mxu1  ;;  %v488_v28 = vpop.f32.mrf.mxu0 }
  0xed   : > { %v628_v27 = vadd.f32 %v627_v26, %v402_v16 }
  0xf2   : > { %v664_v29 = vpop.f32.mrf.mxu0  ;;  %v707_v30 = vpop.f32.mrf.mxu1 }
  0xf3   : > { %v665_v31 = vadd.f32 %v664_v29, %v439_v6  ;;  %v708_v32 = vadd.f32 %v707_v30, %v482_v18 }
  0xf4   : > { %v666_v33 = vpop.f32.mrf.mxu0  ;;  %v709_v34 = vpop.f32.mrf.mxu1 }
  0xf5   : > { %v667_v35 = vadd.f32 %v666_v33, %v441_v10  ;;  %v710_v36 = vadd.f32 %v709_v34, %v484_v21 }
  0xf6   : > { %v668_v37 = vpop.f32.mrf.mxu0  ;;  %v711_v38 = vpop.f32.mrf.mxu1 }
  0xf7   : > { %v669_v39 = vadd.f32 %v668_v37, %v443_v15  ;;  %v712_v40 = vadd.f32 %v711_v38, %v486_v25 }
  0xf8   : > { %v670_v41 = vpop.f32.mrf.mxu0  ;;  %v713_v42 = vpop.f32.mrf.mxu1 }
  0xf9   : > { %v671_v43 = vadd.f32 %v670_v41, %v445_v17  ;;  %v714_v44 = vadd.f32 %v713_v42, %v488_v28 }
  0xfe   : > { %v865_v45 = vpop.f32.mrf.mxu0  ;;  %v908_v46 = vpop.f32.mrf.mxu1 }
  0xff   : > { %v960_v47 = vadd.f32 %v865_v45, %v622_v20  ;;  %v962_v48 = vadd.f32 %v908_v46, %v665_v31 }
 0x100   : > { %v867_v49 = vpop.f32.mrf.mxu0  ;;  %v910_v50 = vpop.f32.mrf.mxu1 }
 0x101   : > { %v961_v51 = vadd.f32 %v867_v49, %v624_v14  ;;  %v963_v52 = vadd.f32 %v910_v50, %v667_v35 }
 0x102   : > { %v869_v53 = vpop.f32.mrf.mxu0  ;;  %v912_v54 = vpop.f32.mrf.mxu1 }
 0x103   : > { %v966_v55 = vadd.f32 %v869_v53, %v626_v24  ;;  %v968_v56 = vadd.f32 %v912_v54, %v669_v39 }
 0x104   : > { %v871_v57 = vpop.f32.mrf.mxu0  ;;  %v914_v58 = vpop.f32.mrf.mxu1 }
 0x105   : > { %v967_v59 = vadd.f32 %v871_v57, %v628_v27  ;;  %v969_v60 = vadd.f32 %v914_v58, %v671_v43 }
 0x10a   : > { %v951_v61 = vpop.f32.mrf.mxu0  ;;  %v1121_v62 = vpop.f32.mrf.mxu1 }
 0x10b   : > { %v964_v63 = vadd.f32 %v951_v61, %v708_v32  ;;  %v1216_v0 = vadd.f32 %v1121_v62, %v960_v47 }
 0x10c   : > { %v953_v1 = vpop.f32.mrf.mxu0  ;;  %v1123_v2 = vpop.f32.mrf.mxu1 }
 0x10d   : > { %v965_v3 = vadd.f32 %v953_v1, %v710_v36  ;;  %v1217_v4 = vadd.f32 %v1123_v2, %v961_v51 }
 0x10e   : > { %v955_v5 = vpop.f32.mrf.mxu0  ;;  %v1125_v6 = vpop.f32.mrf.mxu1 }
 0x10f   : > { %v970_v7 = vadd.f32 %v955_v5, %v712_v40  ;;  %v1222_v8 = vadd.f32 %v1125_v6, %v966_v55 }
 0x110   : > { %v957_v9 = vpop.f32.mrf.mxu0  ;;  %v1127_v10 = vpop.f32.mrf.mxu1 }
 0x111   : > { %v971_v11 = vadd.f32 %v957_v9, %v714_v44  ;;  %v1223_v12 = vadd.f32 %v1127_v10, %v967_v59 }
 0x116   : > { %v1164_v13 = vpop.f32.mrf.mxu0  ;;  %v1207_v15 = vpop.f32.mrf.mxu1 }
 0x117   : > { %v1218_v16 = vadd.f32 %v1164_v13, %v962_v48  ;;  %v1220_v17 = vadd.f32 %v1207_v15, %v964_v63  ;;  %v9892_v13 = vld [vmem:[%s13771_s2 + $0x754] ss:$24 sps:$4 sm:$0xff]   ;;  %v9893_v15 = vld [vmem:[%s13771_s2 + $0xa50] ss:$24 sps:$4 sm:$0xff]  }
 0x118   : > { %v1166_v18 = vpop.f32.mrf.mxu0  ;;  %v1209_v19 = vpop.f32.mrf.mxu1  ;;  %5005 = vmatprep.subr.bf16.mxu0 %v9892_v13  ;;  %v9929_v13 = vld [vmem:[%s13771_s2 + $0x930] ss:$24 sps:$4 sm:$0xff]  }
 0x119   : > { %v1219_v20 = vadd.f32 %v1166_v18, %v963_v52  ;;  %v1221_v21 = vadd.f32 %v1209_v19, %v965_v3 }
 0x11a   : > { %v1168_v22 = vpop.f32.mrf.mxu0  ;;  %v1211_v14 = vpop.f32.mrf.mxu1 }
 0x11b   : > { %v1224_v23 = vadd.f32 %v1168_v22, %v968_v56  ;;  %v1226_v24 = vadd.f32 %v1211_v14, %v970_v7  ;;  %v9899_v22 = vld [vmem:[%s13771_s2 + $0xa20] ss:$24 sps:$4 sm:$0xff]   ;;  %v9904_v14 = vld [vmem:[%s13771_s2 + $0x6f4] ss:$24 sps:$4 sm:$0xff]  }
 0x11c   : > { %v1170_v25 = vpop.f32.mrf.mxu0  ;;  %v1213_v26 = vpop.f32.mrf.mxu1 }
 0x11d   : > { %v1225_v27 = vadd.f32 %v1170_v25, %v969_v60  ;;  %v1227_v28 = vadd.f32 %v1213_v26, %v971_v11  ;;  %v9902_v26 = vld [vmem:[%s13771_s2 + $0x6f0] ss:$24 sps:$4 sm:$0xff]  }
 0x122   : > { %v1377_v29 = vpop.f32.mrf.mxu0  ;;  %v1420_v30 = vpop.f32.mrf.mxu1 }
 0x123   : > { %v1472_v31 = vadd.f32 %v1377_v29, %v1216_v0  ;;  %v11520_v32 = vadd.f32 %v1420_v30, %v1218_v16  ;;  %v9895_v16 = vld [vmem:[%s13771_s2 + $0xa54] ss:$24 sps:$4 sm:$0xff]   ;;  %v9905_v29 = vld [vmem:[%s13771_s2 + $0x9f0] ss:$24 sps:$4 sm:$0xff]   ;;  %v9910_v30 = vld [vmem:[%s13771_s2 + $0x6c4] ss:$24 sps:$4 sm:$0xff]  }
 0x124   : > { %v1379_v33 = vpop.f32.mrf.mxu0  ;;  %v1422_v34 = vpop.f32.mrf.mxu1  ;;  %5046 = vmatprep.subr.bf16.mxu1 %v9895_v16  ;;  %v9937_v16 = vld [vmem:[%s13771_s2 + $0x904] ss:$24 sps:$4 sm:$0xff]  }
 0x125   : > { %v1473_v35 = vadd.f32 %v1379_v33, %v1217_v4  ;;  %v11522_v36 = vadd.f32 %v1422_v34, %v1219_v20  ;;  %v9901_v20 = vld [vmem:[%s13771_s2 + $0xa24] ss:$24 sps:$4 sm:$0xff]   ;;  %5047 = vmatpush1.bf16.msra.mxu1 %v9893_v15 }
 0x126   : > { %v1381_v37 = vpop.f32.mrf.mxu0  ;;  %v1424_v38 = vpop.f32.mrf.mxu1  ;;  %5048 = vmatprep.subr.bf16.mxu1 %v9901_v20  ;;  %v9934_v15 = vld [vmem:[%s13771_s2 + $0x604] ss:$24 sps:$4 sm:$0xff]  }
 0x127   : > { %v1478_v39 = vadd.f32 %v1381_v37, %v1222_v8  ;;  %v1480_v40 = vadd.f32 %v1424_v38, %v1224_v23  ;;  %v9907_v23 = vld [vmem:[%s13771_s2 + $0x9f4] ss:$24 sps:$4 sm:$0xff]   ;;  %v9911_v37 = vld [vmem:[%s13771_s2 + $0x9c0] ss:$24 sps:$4 sm:$0xff]  }
 0x128   : > { %v1383_v41 = vpop.f32.mrf.mxu0  ;;  %v1426_v42 = vpop.f32.mrf.mxu1  ;;  %v9916_v38 = vld [vmem:[%s13771_s2 + $0x694] ss:$24 sps:$4 sm:$0xff]  }
 0x129   : > { %v1479_v43 = vadd.f32 %v1383_v41, %v1223_v12  ;;  %v11524_v44 = vadd.f32 %v1426_v42, %v1225_v27  ;;  %v9890_v12 = vld [vmem:[%s13771_s2 + $0x750] ss:$24 sps:$4 sm:$0xff]   ;;  %5049 = vmatpush1.bf16.msra.mxu1 %v9899_v22  ;;  %v10763_v42 = vmov 0.0   ;;  %v9935_v22 = vld [vmem:[%s13771_s2 + $0x900] ss:$24 sps:$4 sm:$0xff]  }
 0x12a   : > { %5006 = vmatpush1.bf16.msra.mxu0 %v9890_v12  ;;  %5050 = vmatprep.subr.bf16.mxu1 %v9907_v23  ;;  %3422 = vst [vmem:[#allocation2] sm:$0xff] %v10763_v42  ;;  %3423 = vst [vmem:[#allocation2 + $0x8] sm:$0xff] %v10763_v42  ;;  %v9926_v12 = vld [vmem:[%s13771_s2 + $0x630] ss:$24 sps:$4 sm:$0xff]   ;;  %v9943_v23 = vld [vmem:[%s13771_s2 + $0xbd4] ss:$24 sps:$4 sm:$0xff]  }
 0x12b   : > { %3424 = vst [vmem:[#allocation2 + $0x10] sm:$0xff] %v10763_v42  ;;  %3425 = vst [vmem:[#allocation2 + $0x18] sm:$0xff] %v10763_v42 }
 0x12d   : > { %5051 = vmatpush1.bf16.msra.mxu1 %v9905_v29 }
 0x12e   : > { %v1463_v45 = vpop.f32.mrf.mxu0  ;;  %v1633_v46 = vpop.f32.mrf.mxu1 }
 0x12f   : > { %v11526_v47 = vadd.f32 %v1463_v45, %v1220_v17  ;;  %v11528_v48 = vadd.f32 %v1633_v46, %v1472_v31  ;;  %v9898_v17 = vld [vmem:[%s13771_s2 + $0x724] ss:$24 sps:$4 sm:$0xff]   ;;  %v9917_v45 = vld [vmem:[%s13771_s2 + $0x990] ss:$24 sps:$4 sm:$0xff]  }
 0x130   : > { %v1465_v49 = vpop.f32.mrf.mxu0  ;;  %v1635_v50 = vpop.f32.mrf.mxu1  ;;  %5007 = vmatprep.subr.bf16.mxu0 %v9898_v17  ;;  %v9913_v31 = vld [vmem:[%s13771_s2 + $0x9c4] ss:$24 sps:$4 sm:$0xff]  }
 0x131   : > { %v11530_v51 = vadd.f32 %v1465_v49, %v1221_v21  ;;  %v11532_v52 = vadd.f32 %v1635_v50, %v1473_v35  ;;  %v9896_v21 = vld [vmem:[%s13771_s2 + $0x720] ss:$24 sps:$4 sm:$0xff]   ;;  %5052 = vmatprep.subr.bf16.mxu1 %v9913_v31  ;;  %v9922_v46 = vld [vmem:[%s13771_s2 + $0x664] ss:$24 sps:$4 sm:$0xff]  }
 0x132   : > { %v1467_v53 = vpop.f32.mrf.mxu0  ;;  %v1637_v54 = vpop.f32.mrf.mxu1  ;;  %5008 = vmatpush1.bf16.msra.mxu0 %v9896_v21  ;;  %v9908_v35 = vld [vmem:[%s13771_s2 + $0x6c0] ss:$24 sps:$4 sm:$0xff]   ;;  %5053 = vmatpush1.bf16.msra.mxu1 %v9911_v37  ;;  %v9925_v49 = vld [vmem:[%s13771_s2 + $0x964] ss:$24 sps:$4 sm:$0xff]   ;;  %v9941_v37 = vld [vmem:[%s13771_s2 + $0xbd0] ss:$24 sps:$4 sm:$0xff]  }
 0x133   : > { %v1482_v55 = vadd.f32 %v1467_v53, %v1226_v24  ;;  %v11534_v56 = vadd.f32 %v1637_v54, %v1478_v39  ;;  %5009 = vmatprep.subr.bf16.mxu0 %v9904_v14  ;;  %v9919_v39 = vld [vmem:[%s13771_s2 + $0x994] ss:$24 sps:$4 sm:$0xff]   ;;  %v9920_v54 = vld [vmem:[%s13771_s2 + $0x660] ss:$24 sps:$4 sm:$0xff]  }
 0x134   : > { %v1469_v57 = vpop.f32.mrf.mxu0  ;;  %v1639_v58 = vpop.f32.mrf.mxu1  ;;  %5054 = vmatprep.subr.bf16.mxu1 %v9919_v39  ;;  %v9932_v21 = vld [vmem:[%s13771_s2 + $0x600] ss:$24 sps:$4 sm:$0xff]   ;;  %v9940_v14 = vld [vmem:[%s13771_s2 + $0x8d4] ss:$24 sps:$4 sm:$0xff]   ;;  %v9949_v39 = vld [vmem:[%s13771_s2 + $0xba4] ss:$24 sps:$4 sm:$0xff]  }
 0x135   : > { %v1483_v59 = vadd.f32 %v1469_v57, %v1227_v28  ;;  %v11536_v60 = vadd.f32 %v1639_v58, %v1479_v43  ;;  %v9914_v43 = vld [vmem:[%s13771_s2 + $0x690] ss:$24 sps:$4 sm:$0xff]   ;;  %v9923_v58 = vld [vmem:[%s13771_s2 + $0x960] ss:$24 sps:$4 sm:$0xff]  }
 0x136   : > { %5010 = vmatpush1.bf16.msra.mxu0 %v9902_v26  ;;  %5055 = vmatpush1.bf16.msra.mxu1 %v9917_v45  ;;  %v9944_v45 = vld [vmem:[%s13771_s2 + $0x8a0] ss:$24 sps:$4 sm:$0xff]  }
 0x137   : > { %5011 = vmatprep.subr.bf16.mxu0 %v9910_v30  ;;  %5056 = vmatprep.subr.bf16.mxu1 %v9925_v49  ;;  %v9938_v30 = vld [vmem:[%s13771_s2 + $0x8d0] ss:$24 sps:$4 sm:$0xff]  }
 0x13a   : > { %v11538_v61 = vpop.f32.mrf.mxu0  ;;  %v11540_v62 = vpop.f32.mrf.mxu1  ;;  %5012 = vmatpush1.bf16.msra.mxu0 %v9908_v35  ;;  %5057 = vmatpush1.bf16.msra.mxu1 %v9923_v58 }
 0x13b   : > { %5013 = vmatprep.subr.bf16.mxu0 %v9916_v38  ;;  %v9946_v38 = vld [vmem:[%s13771_s2 + $0x8a4] ss:$24 sps:$4 sm:$0xff]  }
 0x13c   : > { %v11542_v63 = vpop.f32.mrf.mxu0  ;;  %v11544_v0 = vpop.f32.mrf.mxu1 }
 0x13e   : > { %v1680_v1 = vpop.f32.mrf.mxu0  ;;  %v1723_v2 = vpop.f32.mrf.mxu1  ;;  %5014 = vmatpush1.bf16.msra.mxu0 %v9914_v43 }
 0x13f   : > { %v11546_v3 = vadd.f32 %v1680_v1, %v1480_v40  ;;  %v11548_v4 = vadd.f32 %v1723_v2, %v1482_v55  ;;  %5015 = vmatprep.subr.bf16.mxu0 %v9922_v46  ;;  %v9931_v1 = vld [vmem:[%s13771_s2 + $0x934] ss:$24 sps:$4 sm:$0xff]   ;;  %v9947_v46 = vld [vmem:[%s13771_s2 + $0xba0] ss:$24 sps:$4 sm:$0xff]  }
 0x140   : > { %v1725_v5 = vpop.f32.mrf.mxu1  ;;  %v11552_v7 = vpop.f32.mrf.mxu0  ;;  %5058 = vmatprep.subr.bf16.mxu1 %v9931_v1 }
 0x141   : > { %v11550_v6 = vadd.f32 %v1725_v5, %v1483_v59  ;;  %v9928_v59 = vld [vmem:[%s13771_s2 + $0x634] ss:$24 sps:$4 sm:$0xff]   ;;  %5059 = vmatpush1.bf16.msra.mxu1 %v9929_v13 }
 0x142   : > { %5016 = vmatpush1.bf16.msra.mxu0 %v9920_v54  ;;  %5060 = vmatprep.subr.bf16.mxu1 %v9937_v16 }
 0x143   : > { %5017 = vmatprep.subr.bf16.mxu0 %v9928_v59 }
 0x145   : > { %5061 = vmatpush1.bf16.msra.mxu1 %v9935_v22 }
 0x146   : > { %v11554_v8 = vpop.f32.mrf.mxu0  ;;  %v11556_v9 = vpop.f32.mrf.mxu1  ;;  %5018 = vmatpush1.bf16.msra.mxu0 %v9926_v12  ;;  %5062 = vmatprep.subr.bf16.mxu1 %v9943_v23 }
 0x147   : > { %5019 = vmatprep.subr.bf16.mxu0 %v9934_v15 }
 0x148   : > { %v11558_v10 = vpop.f32.mrf.mxu0  ;;  %v11560_v11 = vpop.f32.mrf.mxu1 }
 0x149   : > { %5063 = vmatpush2.bf16.msra.mxu1 %v9941_v37  ;;  %v13775_v37 = vlaneseq }
 0x14a   : > { %v11577_v18 = vpop.f32.mrf.mxu0  ;;  %v11579_v19 = vpop.f32.mrf.mxu1  ;;  %5020 = vmatpush1.bf16.msra.mxu0 %v9932_v21  ;;  %5064 = vmatprep.subr.bf16.mxu1 %v9949_v39 }
 0x14b   : > { %5021 = vmatprep.subr.bf16.mxu0 %v9940_v14 }
 0x14c   : > { %v11596_v24 = vpop.f32.mrf.mxu0  ;;  %v11598_v25 = vpop.f32.mrf.mxu1 }
 0x14d   : > { %5065 = vmatpush2.bf16.msra.mxu1 %v9947_v46 }
 0x14e   : > { %5022 = vmatpush2.bf16.msra.mxu0 %v9938_v30 }
 0x14f   : > { %5023 = vmatprep.subr.bf16.mxu0 %v9946_v38 }
 0x152   : > { %v11603_v27 = vpop.f32.mrf.mxu0  ;;  %v11605_v28 = vpop.f32.mrf.mxu1  ;;  %5024 = vmatpush2.bf16.msra.mxu0 %v9944_v45  ;;  %v3279_v45 = vshrl.u32 %v13775_v37, 7  ;;  %v8620_v37 = vld [vmem:[%s13772_s3 + $0x1] ss:$4 sm:$0x3f] }
 0x154   : > { %v11616_v33 = vpop.f32.mrf.mxu0  ;;  %v11618_v34 = vpop.f32.mrf.mxu1 }
 0x156   : > { %v11632_v40 = vpop.f32.mrf.mxu0  ;;  %v11634_v41 = vpop.f32.mrf.mxu1 }
 0x158   : > { %v11648_v50 = vpop.f32.mrf.mxu0  ;;  %v11650_v53 = vpop.f32.mrf.mxu1 }
 0x15e   : > { %v11655_v55 = vpop.f32.mrf.mxu0  ;;  %v11657_v57 = vpop.f32.mrf.mxu1 }
 0x160   : > { %v11668_v2 = vpop.f32.mrf.mxu0  ;;  %v11670_v5 = vpop.f32.mrf.mxu1 }
 0x162   : > { %v11684_v17 = vpop.f32.mrf.mxu0  ;;  %v11686_v20 = vpop.f32.mrf.mxu1 }
 0x163   : > { %13793 = vst [vmem:[#allocation3_spill] sm:$0xff] %v11684_v17  ;;  %13794 = vst [vmem:[#allocation4_spill] sm:$0xff] %v11686_v20 }
 0x164   : > { %v11700_v26 = vpop.f32.mrf.mxu0  ;;  %v11702_v29 = vpop.f32.mrf.mxu1 }
 0x165   : > { %13795 = vst [vmem:[#allocation5_spill] sm:$0xff] %v11700_v26  ;;  %13796 = vst [vmem:[#allocation6_spill] sm:$0xff] %v11702_v29 }
 0x16a   : > { %v11707_v31 = vpop.f32.mrf.mxu0  ;;  %v11709_v35 = vpop.f32.mrf.mxu1 }
 0x16b   : > { %13797 = vst [vmem:[#allocation7_spill] sm:$0xff] %v11709_v35 }
 0x16c   : > { %v11720_v42 = vpop.f32.mrf.mxu0  ;;  %v11722_v43 = vpop.f32.mrf.mxu1 }
 0x16d   : > { %13798 = vst [vmem:[#allocation8_spill] sm:$0xff] %v11722_v43 }
 0x16e   : > { %v11730_v49 = vpop.f32.mrf.mxu0  ;;  %v11732_v54 = vpop.f32.mrf.mxu1 }
 0x16f   : > { %13799 = vst [vmem:[#allocation9_spill] sm:$0xff] %v11732_v54  ;;  %v11790_v54 = vsub.s32 5, %v3279_v45 }
 0x170   : > { %v11734_v58 = vpop.f32.mrf.mxu0  ;;  %v11736_v59 = vpop.f32.mrf.mxu1 }
 0x171   : > { %13800 = vst [vmem:[#allocation10_spill] sm:$0xff] %v11734_v58  ;;  %13801 = vst [vmem:[#allocation11_spill] sm:$0xff] %v11736_v59 }
 0x172   : > { %13818 = vst [vmem:[#allocation28_spill] sm:$0xff] %v11790_v54 }
 0x176   : > { %v11738_v1 = vpop.f32.mrf.mxu0  ;;  %v11740_v12 = vpop.f32.mrf.mxu1 }
 0x177   : > { %13802 = vst [vmem:[#allocation12_spill] sm:$0xff] %v11738_v1 }
 0x178   : > { %v11742_v13 = vpop.f32.mrf.mxu0  ;;  %v11744_v15 = vpop.f32.mrf.mxu1 }
 0x179   : > { %13803 = vst [vmem:[#allocation13_spill] sm:$0xff] %v11742_v13  ;;  %v10764_v13 = vmov 1966171168  }
 0x17a   : > { %v11746_v16 = vpop.f32.mrf.mxu0  ;;  %v11748_v21 = vpop.f32.mrf.mxu1  ;;  %v3458_v1 = vunpack.c.l.s4 %v10764_v13  ;;  %v8621_v13 = vld [vmem:[%s13772_s3 + $0x2] ss:$4 sm:$0x3f] }
 0x17b   : > { %13804 = vst [vmem:[#allocation14_spill] sm:$0xff] %v11746_v16 }
 0x17c   : > { %v11750_v22 = vpop.f32.mrf.mxu0  ;;  %v11752_v14 = vpop.f32.mrf.mxu1 }
 0x17d   : > { %13805 = vst [vmem:[#allocation15_spill] sm:$0xff] %v11750_v22  ;;  %13806 = vst [vmem:[#allocation16_spill] sm:$0xff] %v11752_v14  ;;  %v3276_v22 = vld [vmem:[%s13772_s3] ss:$4 sm:$0x3f] }
 0x182   : > { %v11754_v23 = vpop.f32.mrf.mxu0  ;;  %v11756_v30 = vpop.f32.mrf.mxu1 }
 0x183   : > { %13807 = vst [vmem:[#allocation17_spill] sm:$0xff] %v11754_v23  ;;  %13808 = vst [vmem:[#allocation18_spill] sm:$0xff] %v11756_v30  ;;  %v11770_v23 = vsub.s32 0, %v3279_v45  ;;  %v11772_v30 = vsub.s32 1, %v3279_v45 }
 0x184   : > { %v11758_v38 = vpop.f32.mrf.mxu0  ;;  %v11760_v39 = vpop.f32.mrf.mxu1 }
 0x185   : > { %13809 = vst [vmem:[#allocation19_spill] sm:$0xff] %v11758_v38  ;;  %13810 = vst [vmem:[#allocation20_spill] sm:$0xff] %v11760_v39  ;;  %v11788_v39 = vsub.s32 3, %v3279_v45  ;;  %v11795_v14 = vrot.slane %v3276_v22, %v11770_v23  ;;  %v11798_v35 = vrot.slane %v8620_v37, %v11770_v23  ;;  %v11801_v29 = vrot.slane %v3276_v22, %v11772_v30 }
 0x186   : > { %v11763_v46 = vpop.f32.mrf.mxu0  ;;  %v11765_v16 = vpop.f32.mrf.mxu1  ;;  %13813 = vst [vmem:[#allocation23_spill] sm:$0xff] %v11770_v23  ;;  %13814 = vst [vmem:[#allocation24_spill] sm:$0xff] %v11772_v30  ;;  %v11806_v58 = vrot.slane %v8621_v13, %v11770_v23  ;;  %v11809_v17 = vrot.slane %v8620_v37, %v11772_v30  ;;  %v11826_v23 = vrot.slane %v3276_v22, %v11790_v54 }
 0x187   : > { %13811 = vst [vmem:[#allocation21_spill] sm:$0xff] %v11763_v46  ;;  %13812 = vst [vmem:[#allocation22_spill] sm:$0xff] %v11765_v16  ;;  %v11781_v46 = vsub.s32 2, %v3279_v45  ;;  %v11786_v16 = vsub.s32 4, %v3279_v45 }
 0x188   : > { %v11774_v59 = vpop.f32.mrf.mxu0  ;;  %v11776_v38 = vpop.f32.mrf.mxu1  ;;  %13820 = vst [vmem:[#allocation30_spill] sm:$0xff] %v11798_v35  ;;  %13821 = vst [vmem:[#allocation31_spill] sm:$0xff] %v11801_v29  ;;  %v1984_v35 = vadd.f32 %v11554_v8, %v11528_v48  ;;  %v1985_v48 = vadd.f32 %v11558_v10, %v11532_v52  ;;  %v11859_v52 = vrot.slane %v8621_v13, %v11790_v54 }
 0x189   : > { %13815 = vst [vmem:[#allocation25_spill] sm:$0xff] %v11774_v59  ;;  %13816 = vst [vmem:[#allocation26_spill] sm:$0xff] %v11776_v38  ;;  %v3459_v38 = vunpack.c.0.s8 %v3458_v1  ;;  %v11812_v1 = vrot.slane %v8621_v13, %v11772_v30  ;;  %v11820_v29 = vrot.slane %v3276_v22, %v11786_v16  ;;  %v11831_v30 = vrot.slane %v8620_v37, %v11781_v46 }
 0x18a   : > { %13817 = vst [vmem:[#allocation27_spill] sm:$0xff] %v11781_v46  ;;  %13823 = vst [vmem:[#allocation33_spill] sm:$0xff] %v11806_v58  ;;  %v2240_v8 = vadd.f32 %v11605_v28, %v1984_v35  ;;  %v1731_v10 = vadd.f32 %v11542_v63, %v11522_v36  ;;  %v1990_v28 = vadd.f32 %v11577_v18, %v11534_v56 }
 0x18b   : > { %13824 = vst [vmem:[#allocation34_spill] sm:$0xff] %v11812_v1  ;;  %v11828_v58 = vsub.s32 %v3459_v38, %v3279_v45  ;;  %v11834_v1 = vrot.slane %v8621_v13, %v11781_v46  ;;  %v1730_v38 = vadd.f32 %v11538_v61, %v11520_v32  ;;  %v2241_v32 = vadd.f32 %v11618_v34, %v1985_v48  ;;  %v13831_v48 = vld [vmem:[#allocation4_spill] sm:$0xff] }
 0x18c   : > { %v2496_v61 = vadd.f32 %v11707_v31, %v2240_v8  ;;  %v1732_v35 = vadd.f32 %v11540_v62, %v11526_v47  ;;  %v1987_v36 = vadd.f32 %v11560_v11, %v1731_v10  ;;  %v2246_v63 = vadd.f32 %v11634_v41, %v1990_v28  ;;  %v13834_v28 = vld [vmem:[#allocation7_spill] sm:$0xff] }
 0x18d   : > { %13827 = vst [vmem:[#allocation37_spill] sm:$0xff] %v11828_v58  ;;  %13828 = vst [vmem:[#allocation38_spill] sm:$0xff] %v11834_v1  ;;  %v11853_v58 = vrot.slane %v8621_v13, %v11788_v39  ;;  %v11856_v1 = vrot.slane %v8620_v37, %v11790_v54  ;;  %v1986_v54 = vadd.f32 %v11556_v9, %v1730_v38  ;;  %v13832_v38 = vld [vmem:[#allocation5_spill] sm:$0xff] }
 0x18e   : > { %v2913_v43 = vpop.f32.mrf.mxu0  ;;  %v11792_v59 = vpop.f32.mrf.mxu1  ;;  %v2497_v56 = vadd.f32 %v11720_v42, %v2241_v32  ;;  %v2752_v18 = vadd.f32 %v11740_v12, %v2496_v61  ;;  %v1992_v34 = vadd.f32 %v11579_v19, %v11546_v3  ;;  %v1991_v47 = vadd.f32 %v11596_v24, %v11536_v60  ;;  %v13835_v32 = vld [vmem:[#allocation16_spill] sm:$0xff] }
 0x18f   : > { %13819 = vst [vmem:[#allocation29_spill] sm:$0xff] %v11792_v59  ;;  %v11815_v59 = vrot.slane %v3276_v22, %v11781_v46  ;;  %v2502_v9 = vadd.f32 %v11730_v49, %v2246_v63  ;;  %v1994_v3 = vadd.f32 %v11632_v40, %v11548_v4  ;;  %v1995_v60 = vadd.f32 %v11648_v50, %v11550_v6  ;;  %v13829_v4 = vld [vmem:[#allocation3_spill] sm:$0xff] }
 0x190   : > { %v2915_v26 = vpop.f32.mrf.mxu0  ;;  %v11803_v20 = vpop.f32.mrf.mxu1  ;;  %v2753_v11 = vadd.f32 %v11744_v15, %v2497_v56  ;;  %v3008_v41 = vadd.f32 %v2913_v43, %v2752_v18  ;;  %v2247_v19 = vadd.f32 %v11650_v53, %v1991_v47  ;;  %v2242_v24 = vadd.f32 %v11655_v55, %v1986_v54  ;;  %v13830_v15 = vld [vmem:[#allocation10_spill] sm:$0xff]  ;;  %v13838_v18 = vld [vmem:[#allocation9_spill] sm:$0xff] }
 0x191   : > { %13822 = vst [vmem:[#allocation32_spill] sm:$0xff] %v11803_v20  ;;  %13825 = vst [vmem:[#allocation35_spill] sm:$0xff] %v11815_v59  ;;  %v11823_v20 = vrot.slane %v3276_v22, %v11788_v39  ;;  %v11837_v59 = vrot.slane %v8620_v37, %v11786_v16  ;;  %v11846_v22 = vrot.slane %v8620_v37, %v11788_v39 }
 0x192   : > { %v2917_v45 = vpop.f32.mrf.mxu0  ;;  %v11850_v46 = vpop.f32.mrf.mxu1  ;;  %v1733_v37 = vadd.f32 %v11544_v0, %v11530_v51  ;;  %v3009_v42 = vadd.f32 %v2915_v26, %v2753_v11  ;;  %v2243_v43 = vadd.f32 %v11668_v2, %v1987_v36  ;;  %v2248_v40 = vadd.f32 %v13829_v4, %v1992_v34  ;;  %v13833_v26 = vld [vmem:[#allocation6_spill] sm:$0xff]  ;;  %v13837_v36 = vld [vmem:[#allocation31_spill] sm:$0xff]  ;;  %v13845_v4 = vld [vmem:[#allocation17_spill] sm:$0xff] }
 0x193   : > { %13826 = vst [vmem:[#allocation36_spill] sm:$0xff] %v11823_v20  ;;  %v11843_v20 = vrot.slane %v8621_v13, %v11786_v16  ;;  %v1737_v13 = vadd.f32 %v11552_v7, %v11524_v44  ;;  %v1988_v44 = vadd.f32 %v11603_v27, %v1732_v35  ;;  %v2503_v6 = vadd.f32 %v13830_v15, %v2247_v19  ;;  %v13836_v35 = vld [vmem:[#allocation8_spill] sm:$0xff]  ;;  %v13839_v34 = vld [vmem:[#allocation11_spill] sm:$0xff] }
 0x194   : > { %v2919_v62 = vpop.f32.mrf.mxu0  ;;  %v11884_v0 = vpop.f32.mrf.mxu1  ;;  %v1989_v7 = vadd.f32 %v11616_v33, %v1733_v37  ;;  %v2758_v33 = vadd.f32 %v11748_v21, %v2502_v9  ;;  %v2250_v55 = vadd.f32 %v13831_v48, %v1994_v3  ;;  %v2251_v10 = vadd.f32 %v13833_v26, %v1995_v60  ;;  %v13842_v60 = vld [vmem:[#allocation30_spill] sm:$0xff] }
 0x195   : > { %v1993_v51 = vadd.f32 %v11598_v25, %v1737_v13  ;;  %v2244_v31 = vadd.f32 %v11657_v57, %v1988_v44  ;;  %v2498_v2 = vadd.f32 %v13834_v28, %v2242_v24  ;;  %v2499_v37 = vadd.f32 %v13836_v35, %v2243_v43  ;;  %v13840_v44 = vld [vmem:[#allocation12_spill] sm:$0xff]  ;;  %v13854_v35 = vld [vmem:[#allocation34_spill] sm:$0xff] }
 0x196   : > { %v2245_v12 = vadd.f32 %v11670_v5, %v1989_v7  ;;  %v3014_v54 = vadd.f32 %v2917_v45, %v2758_v33  ;;  %v2759_v5 = vadd.f32 %v13835_v32, %v2503_v6  ;;  %v2504_v45 = vadd.f32 %v13838_v18, %v2248_v40  ;;  %v13843_v33 = vld [vmem:[#allocation14_spill] sm:$0xff] }
 0x197   : > { %v2249_v21 = vadd.f32 %v13832_v38, %v1993_v51  ;;  %v2500_v7 = vadd.f32 %v13840_v44, %v2244_v31  ;;  %v2754_v40 = vadd.f32 %v13845_v4, %v2498_v2  ;;  %v13846_v6 = vld [vmem:[#allocation18_spill] sm:$0xff]  ;;  %v13847_v31 = vld [vmem:[#allocation33_spill] sm:$0xff] }
 0x198   : > { %v3015_v51 = vadd.f32 %v2919_v62, %v2759_v5  ;;  %v13852_v2 = vld [vmem:[#allocation25_spill] sm:$0xff] }
 0x199   : > { %v2505_v47 = vadd.f32 %v13839_v34, %v2249_v21  ;;  %v13850_v21 = vld [vmem:[#allocation21_spill] sm:$0xff] }
 0x19a   : > { %v2999_v25 = vpop.f32.mrf.mxu0  ;;  %v3169_v27 = vpop.f32.mrf.mxu1  ;;  %v13853_v5 = vld [vmem:[#allocation29_spill] sm:$0xff] }
 0x19b   : > { %v3264_v49 = vadd.f32 %v3169_v27, %v3008_v41  ;;  %v13841_v41 = vld [vmem:[#allocation13_spill] sm:$0xff]  ;;  %v2761_v32 = vadd.f32 %v13852_v2, %v2505_v47 }
 0x19c   : > { %v3001_v50 = vpop.f32.mrf.mxu0  ;;  %v3171_v53 = vpop.f32.mrf.mxu1  ;;  %v2501_v3 = vadd.f32 %v13841_v41, %v2245_v12  ;;  %v13848_v12 = vld [vmem:[#allocation19_spill] sm:$0xff] }
 0x19d   : > { %v3308_v8 = vadd.f32 %v11795_v14, %v3264_v49  ;;  %v3265_v57 = vadd.f32 %v3171_v53, %v3009_v42  ;;  %v2506_v42 = vadd.f32 %v13843_v33, %v2250_v55  ;;  %v13844_v49 = vld [vmem:[#allocation15_spill] sm:$0xff]  ;;  %v2756_v53 = vadd.f32 %v13846_v6, %v2500_v7 }
 0x19e   : > { %v3173_v61 = vpop.f32.mrf.mxu1  ;;  %v3003_v9 = vpop.f32.mrf.mxu0  ;;  %v2507_v43 = vadd.f32 %v13844_v49, %v2251_v10  ;;  %v13851_v10 = vld [vmem:[#allocation22_spill] sm:$0xff]  ;;  %v3017_v47 = vadd.f32 %v11884_v0, %v2761_v32  ;;  %v13857_v49 = vld [vmem:[#allocation35_spill] sm:$0xff] }
 0x19f   : > { %v3320_v13 = vmax.f32 %v3308_v8, 0.0  ;;  %v3309_v63 = vadd.f32 %v13837_v36, %v3265_v57  ;;  %v3270_v56 = vadd.f32 %v3173_v61, %v3014_v54  ;;  %v2755_v8 = vadd.f32 %v13848_v12, %v2499_v37  ;;  %v13849_v57 = vld [vmem:[#allocation20_spill] sm:$0xff]  ;;  %v13859_v32 = vld [vmem:[#allocation38_spill] sm:$0xff] }
 0x1a0   : > { %v3175_v11 = vpop.f32.mrf.mxu1  ;;  %v2757_v38 = vadd.f32 %v13849_v57, %v2501_v3  ;;  %v3005_v26 = vpop.f32.mrf.mxu0  ;;  %v2762_v28 = vadd.f32 %v13851_v10, %v2506_v42  ;;  %v3010_v61 = vadd.f32 %v13853_v5, %v2754_v40  ;;  %v3012_v18 = vadd.f32 %v2999_v25, %v2756_v53 }
 0x1a1   : > { %v3365_v19 = vmul.f32 %v13842_v60, %v3320_v13  ;;  %v3321_v24 = vmax.f32 %v3309_v63, 0.0  ;;  %v3314_v27 = vadd.f32 %v11795_v14, %v3270_v56  ;;  %v3271_v15 = vadd.f32 %v3175_v11, %v3015_v51  ;;  %v13855_v63 = vld [vmem:[#allocation26_spill] sm:$0xff]  ;;  %v13856_v51 = vld [vmem:[#allocation32_spill] sm:$0xff] }
 0x1a2   : > { %v2760_v14 = vadd.f32 %v13850_v21, %v2504_v45  ;;  %v2763_v56 = vadd.f32 %v13855_v63, %v2507_v43  ;;  %v3011_v45 = vadd.f32 %v13856_v51, %v2755_v8  ;;  %v3013_v3 = vadd.f32 %v3001_v50, %v2757_v38 }
 0x1a3   : > { %v3410_v62 = vadd.f32 %v13847_v31, %v3365_v19  ;;  %v3366_v48 = vmul.f32 %v11809_v17, %v3321_v24  ;;  %v3326_v54 = vmax.f32 %v3314_v27, 0.0  ;;  %v3315_v55 = vadd.f32 %v13837_v36, %v3271_v15 }
 0x1a4   : > { %v3016_v11 = vadd.f32 %v11850_v46, %v2760_v14  ;;  %v3018_v42 = vadd.f32 %v3003_v9, %v2762_v28  ;;  %v3019_v25 = vadd.f32 %v3005_v26, %v2763_v56 }
 0x1a5   : > { %v3411_v13 = vadd.f32 %v13854_v35, %v3366_v48  ;;  %v3432_v34 = vrot.slane %v3410_v62, 1  ;;  %v3327_v37 = vmax.f32 %v3315_v55, 0.0  ;;  %v3371_v36 = vmul.f32 %v13842_v60, %v3326_v54  ;;  %v13858_v48 = vld [vmem:[#allocation36_spill] sm:$0xff] }
 0x1a6   : > { %v3212_v44 = vpop.f32.mrf.mxu0  ;;  %v3255_v7 = vpop.f32.mrf.mxu1 }
 0x1a7   : > { %v3266_v41 = vadd.f32 %v3212_v44, %v3010_v61  ;;  %v3433_v19 = vrot.slane %v3411_v13, 1  ;;  %v3268_v24 = vadd.f32 %v3255_v7, %v3012_v18  ;;  %v3444_v40 = vmax.f32 %v3410_v62, %v3432_v34 }
 0x1a8   : > { %v3214_v27 = vpop.f32.mrf.mxu0  ;;  %v3257_v33 = vpop.f32.mrf.mxu1  ;;  %v3372_v15 = vmul.f32 %v11809_v17, %v3327_v37  ;;  %v3416_v0 = vadd.f32 %v13847_v31, %v3371_v36 }
 0x1a9   : > { %v3310_v43 = vadd.f32 %v13857_v49, %v3266_v41  ;;  %v3267_v4 = vadd.f32 %v3214_v27, %v3011_v45  ;;  %v3312_v46 = vadd.f32 %v11820_v29, %v3268_v24  ;;  %v3269_v6 = vadd.f32 %v3257_v33, %v3013_v3 }
 0x1aa   : > { %v3216_v60 = vpop.f32.mrf.mxu0  ;;  %v3259_v53 = vpop.f32.mrf.mxu1  ;;  %v3445_v8 = vmax.f32 %v3411_v13, %v3433_v19  ;;  %v3417_v10 = vadd.f32 %v13854_v35, %v3372_v15 }
 0x1ab   : > { %v3322_v50 = vmax.f32 %v3310_v43, 0.0  ;;  %v3311_v54 = vadd.f32 %v13858_v48, %v3267_v4  ;;  %v3272_v12 = vadd.f32 %v3216_v60, %v3016_v11  ;;  %v3324_v9 = vmax.f32 %v3312_v46, 0.0 }
 0x1ac   : > { %v3313_v57 = vadd.f32 %v11826_v23, %v3269_v6  ;;  %v3274_v38 = vadd.f32 %v3259_v53, %v3018_v42  ;;  %v3218_v21 = vpop.f32.mrf.mxu0  ;;  %v3261_v55 = vpop.f32.mrf.mxu1  ;;  %v3549_v41 = vrot.slane %v3417_v10, 1 }
 0x1ad   : > { %v3367_v62 = vmul.f32 %v11831_v30, %v3322_v50  ;;  %v3323_v17 = vmax.f32 %v3311_v54, 0.0  ;;  %v3316_v14 = vadd.f32 %v13857_v49, %v3272_v12  ;;  %v3273_v26 = vadd.f32 %v3218_v21, %v3017_v47  ;;  %v13860_v21 = vld [vmem:[#allocation37_spill] sm:$0xff] }
 0x1ae   : > { %v3369_v31 = vmul.f32 %v11837_v59, %v3324_v9  ;;  %v3325_v28 = vmax.f32 %v3313_v57, 0.0  ;;  %v3318_v2 = vadd.f32 %v11820_v29, %v3274_v38  ;;  %v3275_v37 = vadd.f32 %v3261_v55, %v3019_v25 }
 0x1af   : > { %v3412_v5 = vadd.f32 %v13859_v32, %v3367_v62  ;;  %v3368_v61 = vmul.f32 %v11846_v22, %v3323_v17  ;;  %v3328_v13 = vmax.f32 %v3316_v14, 0.0  ;;  %v3317_v63 = vadd.f32 %v13858_v48, %v3273_v26 }
 0x1b0   : > { %v3414_v56 = vadd.f32 %v11843_v20, %v3369_v31  ;;  %v3370_v18 = vmul.f32 %v11856_v1, %v3325_v28  ;;  %v3330_v34 = vmax.f32 %v3318_v2, 0.0  ;;  %v3319_v36 = vadd.f32 %v11826_v23, %v3275_v37  ;;  %v9956_v31 = vld [vmem:[%s13771_s2 + $0x840] ss:$24 sps:$4 sm:$0xff]   ;;  %v9958_v28 = vld [vmem:[%s13771_s2 + $0x844] ss:$24 sps:$4 sm:$0xff]  }
 0x1b1   : > { %v3434_v44 = vrot.slane %v3412_v5, 1  ;;  %v3413_v35 = vadd.f32 %v11853_v58, %v3368_v61  ;;  %v3373_v7 = vmul.f32 %v11831_v30, %v3328_v13  ;;  %v3329_v51 = vmax.f32 %v3317_v63, 0.0  ;;  %v9959_v2 = vld [vmem:[%s13771_s2 + $0xb40] ss:$24 sps:$4 sm:$0xff]   ;;  %v9961_v61 = vld [vmem:[%s13771_s2 + $0xb44] ss:$24 sps:$4 sm:$0xff]  }
 0x1b2   : > { %v3436_v29 = vrot.slane %v3414_v56, 1  ;;  %v3415_v45 = vadd.f32 %v11859_v52, %v3370_v18  ;;  %v3375_v11 = vmul.f32 %v11837_v59, %v3330_v34  ;;  %v3331_v42 = vmax.f32 %v3319_v36, 0.0 }
 0x1b3   : > { %v3435_v47 = vrot.slane %v3413_v35, 1  ;;  %v3418_v3 = vadd.f32 %v13859_v32, %v3373_v7  ;;  %v3374_v19 = vmul.f32 %v11846_v22, %v3329_v51  ;;  %v3548_v30 = vrot.slane %v3416_v0, 1  ;;  %v9965_v7 = vld [vmem:[%s13771_s2 + $0xb10] ss:$24 sps:$4 sm:$0xff]   ;;  %v9967_v51 = vld [vmem:[%s13771_s2 + $0xb14] ss:$24 sps:$4 sm:$0xff]  }
 0x1b4   : > { %v3448_v24 = vmax.f32 %v3414_v56, %v3436_v29  ;;  %v3437_v27 = vrot.slane %v3415_v45, 1  ;;  %v3420_v33 = vadd.f32 %v11843_v20, %v3375_v11  ;;  %v3446_v25 = vmax.f32 %v3412_v5, %v3434_v44  ;;  %v9950_v20 = vld [vmem:[%s13771_s2 + $0x870] ss:$24 sps:$4 sm:$0xff]   ;;  %v9970_v29 = vld [vmem:[%s13771_s2 + $0x7e4] ss:$24 sps:$4 sm:$0xff]  }
 0x1b5   : > { %v3447_v49 = vmax.f32 %v3413_v35, %v3435_v47  ;;  %v3419_v43 = vadd.f32 %v11853_v58, %v3374_v19  ;;  %v3376_v23 = vmul.f32 %v11856_v1, %v3331_v42  ;;  %v3550_v46 = vrot.slane %v3418_v3, 1  ;;  %v9952_v58 = vld [vmem:[%s13771_s2 + $0x874] ss:$24 sps:$4 sm:$0xff]   ;;  %v9953_v1 = vld [vmem:[%s13771_s2 + $0xb70] ss:$24 sps:$4 sm:$0xff]  }
 0x1b6   : > { %v3449_v4 = vmax.f32 %v3415_v45, %v3437_v27  ;;  %v3552_v59 = vrot.slane %v3420_v33, 1  ;;  %v3451_v15 = vmax.f32 %v3445_v8, %v3448_v24  ;;  %v3561_v53 = vmax.f32 %v3417_v10, %v3549_v41  ;;  %5025 = vmatprep.subr.bf16.mxu0 %v9952_v58  ;;  %v9962_v44 = vld [vmem:[%s13771_s2 + $0x810] ss:$24 sps:$4 sm:$0xff]   ;;  %v9964_v35 = vld [vmem:[%s13771_s2 + $0x814] ss:$24 sps:$4 sm:$0xff]  }
 0x1b7   : > { %v3551_v6 = vrot.slane %v3419_v43, 1  ;;  %v3450_v60 = vmax.f32 %v3444_v40, %v3447_v49  ;;  %v3421_v50 = vadd.f32 %v11859_v52, %v3376_v23  ;;  %v3560_v54 = vmax.f32 %v3416_v0, %v3548_v30  ;;  %v9955_v52 = vld [vmem:[%s13771_s2 + $0xb74] ss:$24 sps:$4 sm:$0xff]   ;;  %5026 = vmatpush2.bf16.msra.mxu0 %v9950_v20  ;;  %v9973_v11 = vld [vmem:[%s13771_s2 + $0xae4] ss:$24 sps:$4 sm:$0xff]  }
 0x1b8   : > { %v3564_v22 = vmax.f32 %v3420_v33, %v3552_v59  ;;  %v3452_v48 = vmax.f32 %v3446_v25, %v3449_v4  ;;  %5066 = vmatprep.subr.bf16.mxu1 %v9955_v52  ;;  %v3562_v0 = vmax.f32 %v3418_v3, %v3550_v46  ;;  %5027 = vmatprep.subr.bf16.mxu0 %v9958_v28  ;;  %v9968_v41 = vld [vmem:[%s13771_s2 + $0x7e0] ss:$24 sps:$4 sm:$0xff]   ;;  %v9976_v24 = vld [vmem:[%s13771_s2 + $0x7b4] ss:$24 sps:$4 sm:$0xff]   ;;  %v9974_v33 = vld [vmem:[%s13771_s2 + $0x7b0] ss:$24 sps:$4 sm:$0xff]  }
 0x1b9   : > { %v3563_v12 = vmax.f32 %v3419_v43, %v3551_v6  ;;  %v3501_v40 = vcombine.high %v3450_v60, %v3451_v15  ;;  %v3456_v8 = vcombine.low %v3450_v60, %v3451_v15  ;;  %v3553_v57 = vrot.slane %v3421_v50, 1  ;;  %5067 = vmatpush2.bf16.msra.mxu1 %v9953_v1  ;;  %v9971_v19 = vld [vmem:[%s13771_s2 + $0xae0] ss:$24 sps:$4 sm:$0xff]   ;;  %v9979_v27 = vld [vmem:[%s13771_s2 + $0xab4] ss:$24 sps:$4 sm:$0xff]  }
 0x1ba   : > { %v3567_v9 = vmax.f32 %v3561_v53, %v3564_v22  ;;  %v3502_v38 = vcombine.high %v3452_v48, %v3452_v48  ;;  %v3470_v62 = vrot.slane %v3452_v48, %v13860_v21  ;;  %5068 = vmatprep.subr.bf16.mxu1 %v9961_v61  ;;  %v9977_v30 = vld [vmem:[%s13771_s2 + $0xab0] ss:$24 sps:$4 sm:$0xff]   ;;  %v9982_v25 = vld [vmem:[%s13771_s2 + $0x784] ss:$24 sps:$4 sm:$0xff]   ;;  %v9980_v43 = vld [vmem:[%s13771_s2 + $0x780] ss:$24 sps:$4 sm:$0xff]   ;;  %v13861_v15 = vlaneseq }
 0x1bb   : > { %v3566_v17 = vmax.f32 %v3560_v54, %v3563_v12  ;;  %v3509_v14 = vrot.slane %v3501_v40, %v13860_v21  ;;  %v3463_v26 = vrot.slane %v3456_v8, %v13860_v21  ;;  %v3565_v55 = vmax.f32 %v3421_v50, %v3553_v57  ;;  %5028 = vmatpush2.bf16.msra.mxu0 %v9956_v31  ;;  %v9985_v49 = vld [vmem:[%s13771_s2 + $0xa84] ss:$24 sps:$4 sm:$0xff]   ;;  %v9983_v4 = vld [vmem:[%s13771_s2 + $0xa80] ss:$24 sps:$4 sm:$0xff]  }
 0x1bc   : > { %v3516_v10 = vrot.slane %v3502_v38, %v13860_v21  ;;  %5029 = vmatprep.subr.bf16.mxu0 %v9964_v35  ;;  %v9988_v59 = vld [vmem:[%s13771_s2 + $0x75c] ss:$24 sps:$4 sm:$0xff]   ;;  %vm3486_vm2 = vcmp.ge.s32.totalorder %v13861_v15, 64  ;;  %vm3487_vm3 = vcmp.lt.s32.totalorder %v13861_v15, 448  ;;  %v10018_v6 = vld [vmem:[%s13771_s2 + $0x66c] ss:$24 sps:$4 sm:$0xff]  }
 0x1bd   : > { %v3471_v32 = vcombine.low %v3463_v26, %v3470_v62  ;;  %v3572_v5 = vcombine.low %v3566_v17, %v3567_v9  ;;  %v3568_v13 = vmax.f32 %v3562_v0, %v3565_v55  ;;  %5069 = vmatpush2.bf16.msra.mxu1 %v9959_v2  ;;  %v9991_v23 = vld [vmem:[%s13771_s2 + $0xa5c] ss:$24 sps:$4 sm:$0xff]   ;;  %vm12056_vm5 = vmand %vm3486_vm2, %vm3487_vm3  ;;  %vm8059_vm6 = vcmp.lt.s32.totalorder %v13861_v15, 384 }
 0x1be   : > { %v3517_v63 = vcombine.low %v3509_v14, %v3516_v10  ;;  %5070 = vmatprep.subr.bf16.mxu1 %v9967_v51 }
 0x1bf   : > { %v3478_v56 = vrot.slane %v3471_v32, %v13860_v21  ;;  %v3579_v18 = vrot.slane %v3572_v5, %v13860_v21  ;;  %v3586_v37 = vrot.slane %v3568_v13, %v13860_v21  ;;  %5030 = vmatpush2.bf16.msra.mxu0 %v9962_v44 }
 0x1c0   : > { %v3524_v34 = vrot.slane %v3517_v63, %v13860_v21  ;;  %5031 = vmatprep.subr.bf16.mxu0 %v9970_v29  ;;  %v9986_v29 = vld [vmem:[%s13771_s2 + $0x758] ss:$24 sps:$4 sm:$0xff]  }
 0x1c1   : > { %3479 = vrot.lane.b32.xlu0 %v3478_v56, %s10765_s22  ;;  %v3587_v45 = vcombine.low %v3579_v18, %v3586_v37  ;;  %v3492_v36 = vcombine.high %v3478_v56, %v3478_v56  ;;  %5071 = vmatpush2.bf16.msra.mxu1 %v9965_v7 }
 0x1c2   : > { %3525 = vrot.lane.b32.xlu1 %v3524_v34, %s10765_s22  ;;  %v3533_v47 = vcombine.high %v3524_v34, %v3524_v34  ;;  %5072 = vmatprep.subr.bf16.mxu1 %v9973_v11 }
 0x1c3   : > { %v3594_v3 = vrot.slane %v3587_v45, %v13860_v21  ;;  %5032 = vmatpush2.bf16.msra.mxu0 %v9968_v41  ;;  %v9989_v45 = vld [vmem:[%s13771_s2 + $0xa58] ss:$24 sps:$4 sm:$0xff]   ;;  %v9994_v41 = vld [vmem:[%s13771_s2 + $0x72c] ss:$24 sps:$4 sm:$0xff]  }
 0x1c4   : > { %5033 = vmatprep.subr.bf16.mxu0 %v9976_v24  ;;  %v10000_v24 = vld [vmem:[%s13771_s2 + $0x6fc] ss:$24 sps:$4 sm:$0xff]  }
 0x1c5   : > { %3493 = vrot.lane.b32.xlu0 %v3492_v36, %s10765_s22  ;;  %v3603_v42 = vcombine.high %v3594_v3, %v3594_v3  ;;  %5073 = vmatpush2.bf16.msra.mxu1 %v9971_v19  ;;  %v9995_v19 = vld [vmem:[%s13771_s2 + $0xa28] ss:$24 sps:$4 sm:$0xff]  }
 0x1c6   : > { %3534 = vrot.lane.b32.xlu1 %v3533_v47, %s10765_s22  ;;  %5074 = vmatprep.subr.bf16.mxu1 %v9979_v27  ;;  %v9997_v47 = vld [vmem:[%s13771_s2 + $0xa2c] ss:$24 sps:$4 sm:$0xff]   ;;  %v10003_v27 = vld [vmem:[%s13771_s2 + $0x9fc] ss:$24 sps:$4 sm:$0xff]  }
 0x1c7   : > { %5034 = vmatpush2.bf16.msra.mxu0 %v9974_v33  ;;  %v9998_v33 = vld [vmem:[%s13771_s2 + $0x6f8] ss:$24 sps:$4 sm:$0xff]  }
 0x1c8   : > { %5035 = vmatprep.subr.bf16.mxu0 %v9982_v25  ;;  %v10009_v25 = vld [vmem:[%s13771_s2 + $0x9cc] ss:$24 sps:$4 sm:$0xff]  }
 0x1c9   : > { %3595 = vrot.lane.b32.xlu0 %v3594_v3, %s10765_s22  ;;  %5075 = vmatpush2.bf16.msra.mxu1 %v9977_v30  ;;  %v9992_v3 = vld [vmem:[%s13771_s2 + $0x728] ss:$24 sps:$4 sm:$0xff]   ;;  %v10006_v30 = vld [vmem:[%s13771_s2 + $0x6cc] ss:$24 sps:$4 sm:$0xff]  }
 0x1ca   : > { %3604 = vrot.lane.b32.xlu1 %v3603_v42, %s10765_s22  ;;  %5076 = vmatprep.subr.bf16.mxu1 %v9985_v49  ;;  %v10001_v42 = vld [vmem:[%s13771_s2 + $0x9f8] ss:$24 sps:$4 sm:$0xff]   ;;  %v10004_v49 = vld [vmem:[%s13771_s2 + $0x6c8] ss:$24 sps:$4 sm:$0xff]  }
 0x1cb   : > { %5036 = vmatpush2.bf16.msra.mxu0 %v9980_v43  ;;  %v10007_v43 = vld [vmem:[%s13771_s2 + $0x9c8] ss:$24 sps:$4 sm:$0xff]  }
 0x1cc   : > { %5087 = vmatprep.subr.bf16.mxu0 %v9988_v59  ;;  %v10015_v59 = vld [vmem:[%s13771_s2 + $0x99c] ss:$24 sps:$4 sm:$0xff]  }
 0x1cd   : > { %5077 = vmatpush2.bf16.msra.mxu1 %v9983_v4  ;;  %v10012_v4 = vld [vmem:[%s13771_s2 + $0x69c] ss:$24 sps:$4 sm:$0xff]  }
 0x1ce   : > { %5128 = vmatprep.subr.bf16.mxu1 %v9991_v23  ;;  %v10010_v23 = vld [vmem:[%s13771_s2 + $0x698] ss:$24 sps:$4 sm:$0xff]  }
 0x233   : > { %v3480_v46 = vpop.permute.xlu0 %3479 }
 0x234   : > { %v3526_v60 = vpop.permute.xlu1 %3525  ;;  %v3481_v53 = vrot.slane %v3480_v46, 7 }
 0x235   : > { %v3527_v22 = vrot.slane %v3526_v60, 7 }
 0x236   : > { %v3483_v50 = vsel %vm3482_vm4, %v3481_v53, %v3480_v46  ;;  %v10013_v46 = vld [vmem:[%s13771_s2 + $0x998] ss:$24 sps:$4 sm:$0xff]   ;;  %v10016_v53 = vld [vmem:[%s13771_s2 + $0x668] ss:$24 sps:$4 sm:$0xff]  }
 0x237   : > { %v3528_v48 = vsel %vm3482_vm4, %v3527_v22, %v3526_v60  ;;  %3490 = vst.msk [vmem:[#allocation2 + $0x1] ss:$8 sm:$0xf] %vm12056_vm5, %v3483_v50  ;;  %v3494_v20 = vpop.permute.xlu0 %3493  ;;  %v10021_v60 = vld [vmem:[%s13771_s2 + $0x96c] ss:$24 sps:$4 sm:$0xff]  }
 0x238   : > { %3531 = vst.msk [vmem:[#allocation2 + $0x3] ss:$8 sm:$0xf] %vm12056_vm5, %v3528_v48  ;;  %v3535_v58 = vpop.permute.xlu1 %3534  ;;  %v3495_v1 = vrot.slane %v3494_v20, 7  ;;  %v10019_v22 = vld [vmem:[%s13771_s2 + $0x968] ss:$24 sps:$4 sm:$0xff]  }
 0x239   : > { %v3536_v54 = vrot.slane %v3535_v58, 7  ;;  %v10024_v50 = vld [vmem:[%s13771_s2 + $0x63c] ss:$24 sps:$4 sm:$0xff]  }
 0x23a   : > { %v3496_v12 = vsel %vm3482_vm4, %v3495_v1, %v3494_v20  ;;  %v10027_v48 = vld [vmem:[%s13771_s2 + $0x93c] ss:$24 sps:$4 sm:$0xff]   ;;  %v10022_v20 = vld [vmem:[%s13771_s2 + $0x638] ss:$24 sps:$4 sm:$0xff]   ;;  %v10030_v1 = vld [vmem:[%s13771_s2 + $0x60c] ss:$24 sps:$4 sm:$0xff]  }
 0x23b   : > { %v3537_v40 = vsel %vm3482_vm4, %v3536_v54, %v3535_v58  ;;  %3499 = vst.msk [vmem:[#allocation2 + $0x2] ss:$8 sm:$0xf] %vm12056_vm5, %v3496_v12  ;;  %v3596_v8 = vpop.permute.xlu0 %3595  ;;  %v10025_v58 = vld [vmem:[%s13771_s2 + $0x938] ss:$24 sps:$4 sm:$0xff]  }
 0x23c   : > { %3540 = vst.msk [vmem:[#allocation2 + $0x4] ss:$8 sm:$0xf] %vm12056_vm5, %v3537_v40  ;;  %v3605_v52 = vpop.permute.xlu1 %3604  ;;  %v3597_v9 = vrot.slane %v3596_v8, 7  ;;  %v10033_v54 = vld [vmem:[%s13771_s2 + $0x90c] ss:$24 sps:$4 sm:$0xff]  }
 0x23d   : > { %v3606_v57 = vrot.slane %v3605_v52, 7  ;;  %v10028_v12 = vld [vmem:[%s13771_s2 + $0x608] ss:$24 sps:$4 sm:$0xff]  }
 0x23e   : > { %v3598_v38 = vsel %vm3482_vm4, %v3597_v9, %v3596_v8  ;;  %v10031_v40 = vld [vmem:[%s13771_s2 + $0x908] ss:$24 sps:$4 sm:$0xff]   ;;  %v10036_v8 = vld [vmem:[%s13771_s2 + $0x8dc] ss:$24 sps:$4 sm:$0xff]   ;;  %v10034_v9 = vld [vmem:[%s13771_s2 + $0x8d8] ss:$24 sps:$4 sm:$0xff]  }
 0x23f   : > { %v3607_v62 = vsel %vm3482_vm4, %v3606_v57, %v3605_v52  ;;  %3601 = vst.msk [vmem:[#allocation2 + $0x5] ss:$8 sm:$0xf] %vm12056_vm5, %v3598_v38  ;;  %v10039_v52 = vld [vmem:[%s13771_s2 + $0xbdc] ss:$24 sps:$4 sm:$0xff]  }
 0x240   : > { %3610 = vst.msk [vmem:[#allocation2 + $0x6] ss:$8 sm:$0xf] %vm12056_vm5, %v3607_v62  ;;  %v10037_v57 = vld [vmem:[%s13771_s2 + $0xbd8] ss:$24 sps:$4 sm:$0xff]  }
 0x241   : > { %v10042_v38 = vld [vmem:[%s13771_s2 + $0x8ac] ss:$24 sps:$4 sm:$0xff]  }
 0x242   : > { %v10045_v62 = vld [vmem:[%s13771_s2 + $0xbac] ss:$24 sps:$4 sm:$0xff]  }
 0x247   : > { %v3813_v17 = vld [vmem:[#allocation2 + $0x8] sm:$0x7e]  ;;  %v3815_v14 = vld [vmem:[#allocation2 + $0x18] sm:$0x7e]  ;;  %v3812_v26 = vld [vmem:[#allocation2] sm:$0x7e] }
 0x248   : > { %v3817_v0 = vpack.c.bf16 %v3813_v17, %v3813_v17  ;;  %v3819_v55 = vpack.c.bf16 %v3815_v14, %v3815_v14  ;;  %v3816_v10 = vpack.c.bf16 %v3812_v26, %v3812_v26  ;;  %v3814_v31 = vld [vmem:[#allocation2 + $0x10] sm:$0x7e]  ;;  %v10040_v17 = vld [vmem:[%s13771_s2 + $0x8a8] ss:$24 sps:$4 sm:$0xff]  }
 0x249   : > { %v3818_v28 = vpack.c.bf16 %v3814_v31, %v3814_v31  ;;  %v10043_v14 = vld [vmem:[%s13771_s2 + $0xba8] ss:$24 sps:$4 sm:$0xff]   ;;  %v10048_v26 = vld [vmem:[%s13771_s2 + $0x87c] ss:$24 sps:$4 sm:$0xff]   ;;  %v10054_v31 = vld [vmem:[%s13771_s2 + $0x84c] ss:$24 sps:$4 sm:$0xff]  }
 0x24a   : > { %v4023_v2 = vshll.u32 %v3817_v0, 16  ;;  %v4037_v32 = vshll.u32 %v3819_v55, 16  ;;  %v4016_v5 = vshll.u32 %v3816_v10, 16  ;;  %v4021_v13 = vshrl.u32 %v3817_v0, 16  ;;  %v10051_v0 = vld [vmem:[%s13771_s2 + $0xb7c] ss:$24 sps:$4 sm:$0xff]  }
 0x24b   : > { %v4030_v61 = vshll.u32 %v3818_v28, 16  ;;  %v4035_v56 = vshrl.u32 %v3819_v55, 16  ;;  %v4014_v34 = vshrl.u32 %v3816_v10, 16  ;;  %v4028_v44 = vshrl.u32 %v3818_v28, 16  ;;  %v10046_v55 = vld [vmem:[%s13771_s2 + $0x878] ss:$24 sps:$4 sm:$0xff]  }
 0x24c   : > { %v4025_v63 = vrot.slane %v4023_v2, 1  ;;  %v4039_v18 = vrot.slane %v4037_v32, 1  ;;  %v4018_v37 = vrot.slane %v4016_v5, 1  ;;  %v10049_v10 = vld [vmem:[%s13771_s2 + $0xb78] ss:$24 sps:$4 sm:$0xff]  }
 0x24d   : > { %v4032_v35 = vrot.slane %v4030_v61, 1  ;;  %v10057_v28 = vld [vmem:[%s13771_s2 + $0xb4c] ss:$24 sps:$4 sm:$0xff]   ;;  %v10052_v2 = vld [vmem:[%s13771_s2 + $0x848] ss:$24 sps:$4 sm:$0xff]  }
 0x24e   : > { %v12078_v7 = vor.u32 %v4025_v63, %v4021_v13  ;;  %v12080_v51 = vor.u32 %v4039_v18, %v4035_v56  ;;  %v12088_v11 = vor.u32 %v4018_v37, %v4014_v34  ;;  %v10055_v32 = vld [vmem:[%s13771_s2 + $0xb48] ss:$24 sps:$4 sm:$0xff]   ;;  %v10060_v5 = vld [vmem:[%s13771_s2 + $0x81c] ss:$24 sps:$4 sm:$0xff]   ;;  %v10058_v13 = vld [vmem:[%s13771_s2 + $0x818] ss:$24 sps:$4 sm:$0xff]  }
 0x24f   : > { %v12090_v36 = vor.u32 %v4032_v35, %v4028_v44  ;;  %v10063_v61 = vld [vmem:[%s13771_s2 + $0xb1c] ss:$24 sps:$4 sm:$0xff]   ;;  %v10061_v63 = vld [vmem:[%s13771_s2 + $0xb18] ss:$24 sps:$4 sm:$0xff]   ;;  %v10066_v56 = vld [vmem:[%s13771_s2 + $0x7ec] ss:$24 sps:$4 sm:$0xff]  }
 0x250   : > { %5037 = vmatprep.mubr.bf16.mxu0 %v12078_v7  ;;  %5078 = vmatprep.mubr.bf16.mxu1 %v12080_v51  ;;  %v10069_v18 = vld [vmem:[%s13771_s2 + $0xaec] ss:$24 sps:$4 sm:$0xff]   ;;  %v10064_v34 = vld [vmem:[%s13771_s2 + $0x7e8] ss:$24 sps:$4 sm:$0xff]   ;;  %v10072_v44 = vld [vmem:[%s13771_s2 + $0x7bc] ss:$24 sps:$4 sm:$0xff]  }
 0x251   : > { %5038 = vmatmul.mubr.bf16.vlgmr.msra.gmra.mxu0 %v12088_v11  ;;  %5079 = vmatmul.mubr.bf16.vlgmr.msra.gmra.mxu1 %v12090_v36  ;;  %v10067_v37 = vld [vmem:[%s13771_s2 + $0xae8] ss:$24 sps:$4 sm:$0xff]   ;;  %v10075_v35 = vld [vmem:[%s13771_s2 + $0xabc] ss:$24 sps:$4 sm:$0xff]  }
 0x252   : > { %5088 = vmatpush1.bf16.msra.mxu0 %v9986_v29  ;;  %5129 = vmatpush1.bf16.msra.mxu1 %v9989_v45  ;;  %v10070_v29 = vld [vmem:[%s13771_s2 + $0x7b8] ss:$24 sps:$4 sm:$0xff]  }
 0x253   : > { %5119 = vmatprep.mubr.bf16.mxu0 %v12078_v7  ;;  %5160 = vmatprep.mubr.bf16.mxu1 %v12080_v51  ;;  %v10073_v45 = vld [vmem:[%s13771_s2 + $0xab8] ss:$24 sps:$4 sm:$0xff]  }
 0x254   : > { %5089 = vmatprep.subr.bf16.mxu0 %v9994_v41  ;;  %5130 = vmatprep.subr.bf16.mxu1 %v9997_v47  ;;  %v10078_v41 = vld [vmem:[%s13771_s2 + $0x78c] ss:$24 sps:$4 sm:$0xff]  }
 0x255   : > { %v10081_v47 = vld [vmem:[%s13771_s2 + $0xa8c] ss:$24 sps:$4 sm:$0xff]  }
 0x256   : > { %5090 = vmatpush1.bf16.msra.mxu0 %v9992_v3  ;;  %5131 = vmatpush1.bf16.msra.mxu1 %v9995_v19  ;;  %v10076_v3 = vld [vmem:[%s13771_s2 + $0x788] ss:$24 sps:$4 sm:$0xff]  }
 0x257   : > { %5091 = vmatprep.subr.bf16.mxu0 %v10000_v24  ;;  %5132 = vmatprep.subr.bf16.mxu1 %v10003_v27  ;;  %v10079_v19 = vld [vmem:[%s13771_s2 + $0xa88] ss:$24 sps:$4 sm:$0xff]   ;;  %v10084_v24 = vld [vmem:[%s13771_s2 + $0x764] ss:$24 sps:$4 sm:$0xff]  }
 0x258   : > { %v10087_v27 = vld [vmem:[%s13771_s2 + $0xa64] ss:$24 sps:$4 sm:$0xff]  }
 0x25a   : > { %5092 = vmatpush1.bf16.msra.mxu0 %v9998_v33  ;;  %5133 = vmatpush1.bf16.msra.mxu1 %v10001_v42  ;;  %v10082_v33 = vld [vmem:[%s13771_s2 + $0x760] ss:$24 sps:$4 sm:$0xff]  }
 0x25b   : > { %5093 = vmatprep.subr.bf16.mxu0 %v10006_v30  ;;  %5134 = vmatprep.subr.bf16.mxu1 %v10009_v25  ;;  %v10085_v42 = vld [vmem:[%s13771_s2 + $0xa60] ss:$24 sps:$4 sm:$0xff]   ;;  %v10090_v30 = vld [vmem:[%s13771_s2 + $0x734] ss:$24 sps:$4 sm:$0xff]  }
 0x25c   : > { %v10093_v25 = vld [vmem:[%s13771_s2 + $0xa34] ss:$24 sps:$4 sm:$0xff]  }
 0x25e   : > { %5094 = vmatpush1.bf16.msra.mxu0 %v10004_v49  ;;  %5135 = vmatpush1.bf16.msra.mxu1 %v10007_v43  ;;  %v10088_v49 = vld [vmem:[%s13771_s2 + $0x730] ss:$24 sps:$4 sm:$0xff]  }
 0x25f   : > { %5095 = vmatprep.subr.bf16.mxu0 %v10012_v4  ;;  %5136 = vmatprep.subr.bf16.mxu1 %v10015_v59  ;;  %v10091_v43 = vld [vmem:[%s13771_s2 + $0xa30] ss:$24 sps:$4 sm:$0xff]   ;;  %v10096_v4 = vld [vmem:[%s13771_s2 + $0x704] ss:$24 sps:$4 sm:$0xff]   ;;  %v10094_v59 = vld [vmem:[%s13771_s2 + $0x700] ss:$24 sps:$4 sm:$0xff]  }
 0x262   : > { %5096 = vmatpush1.bf16.msra.mxu0 %v10010_v23  ;;  %5137 = vmatpush1.bf16.msra.mxu1 %v10013_v46  ;;  %v10102_v23 = vld [vmem:[%s13771_s2 + $0x6d4] ss:$24 sps:$4 sm:$0xff]  }
 0x263   : > { %5097 = vmatprep.subr.bf16.mxu0 %v10018_v6  ;;  %5138 = vmatprep.subr.bf16.mxu1 %v10021_v60  ;;  %v10105_v46 = vld [vmem:[%s13771_s2 + $0x9d4] ss:$24 sps:$4 sm:$0xff]   ;;  %v10100_v6 = vld [vmem:[%s13771_s2 + $0x6d0] ss:$24 sps:$4 sm:$0xff]  }
 0x264   : > { %v10103_v60 = vld [vmem:[%s13771_s2 + $0x9d0] ss:$24 sps:$4 sm:$0xff]  }
 0x266   : > { %5098 = vmatpush1.bf16.msra.mxu0 %v10016_v53  ;;  %5139 = vmatpush1.bf16.msra.mxu1 %v10019_v22  ;;  %v10108_v53 = vld [vmem:[%s13771_s2 + $0x6a4] ss:$24 sps:$4 sm:$0xff]  }
 0x267   : > { %5099 = vmatprep.subr.bf16.mxu0 %v10024_v50  ;;  %5140 = vmatprep.subr.bf16.mxu1 %v10027_v48  ;;  %v10111_v22 = vld [vmem:[%s13771_s2 + $0x9a4] ss:$24 sps:$4 sm:$0xff]   ;;  %v10106_v50 = vld [vmem:[%s13771_s2 + $0x6a0] ss:$24 sps:$4 sm:$0xff]  }
 0x268   : > { %v10109_v48 = vld [vmem:[%s13771_s2 + $0x9a0] ss:$24 sps:$4 sm:$0xff]  }
 0x26a   : > { %5100 = vmatpush1.bf16.msra.mxu0 %v10022_v20  ;;  %5141 = vmatpush1.bf16.msra.mxu1 %v10025_v58  ;;  %v10114_v20 = vld [vmem:[%s13771_s2 + $0x674] ss:$24 sps:$4 sm:$0xff]  }
 0x26b   : > { %5101 = vmatprep.subr.bf16.mxu0 %v10030_v1  ;;  %5142 = vmatprep.subr.bf16.mxu1 %v10033_v54  ;;  %v10117_v58 = vld [vmem:[%s13771_s2 + $0x974] ss:$24 sps:$4 sm:$0xff]   ;;  %v10112_v1 = vld [vmem:[%s13771_s2 + $0x670] ss:$24 sps:$4 sm:$0xff]  }
 0x26c   : > { %v10115_v54 = vld [vmem:[%s13771_s2 + $0x970] ss:$24 sps:$4 sm:$0xff]  }
 0x26e   : > { %5102 = vmatpush1.bf16.msra.mxu0 %v10028_v12  ;;  %5143 = vmatpush1.bf16.msra.mxu1 %v10031_v40  ;;  %v10120_v12 = vld [vmem:[%s13771_s2 + $0x644] ss:$24 sps:$4 sm:$0xff]  }
 0x26f   : > { %5103 = vmatprep.subr.bf16.mxu0 %v10036_v8  ;;  %5144 = vmatprep.subr.bf16.mxu1 %v10039_v52  ;;  %v10123_v40 = vld [vmem:[%s13771_s2 + $0x944] ss:$24 sps:$4 sm:$0xff]   ;;  %v10118_v8 = vld [vmem:[%s13771_s2 + $0x640] ss:$24 sps:$4 sm:$0xff]  }
 0x270   : > { %v10121_v52 = vld [vmem:[%s13771_s2 + $0x940] ss:$24 sps:$4 sm:$0xff]  }
 0x272   : > { %5104 = vmatpush2.bf16.msra.mxu0 %v10034_v9  ;;  %5145 = vmatpush2.bf16.msra.mxu1 %v10037_v57  ;;  %v10126_v9 = vld [vmem:[%s13771_s2 + $0x614] ss:$24 sps:$4 sm:$0xff]  }
 0x273   : > { %5105 = vmatprep.subr.bf16.mxu0 %v10042_v38  ;;  %5146 = vmatprep.subr.bf16.mxu1 %v10045_v62  ;;  %v10129_v57 = vld [vmem:[%s13771_s2 + $0x914] ss:$24 sps:$4 sm:$0xff]   ;;  %v10124_v38 = vld [vmem:[%s13771_s2 + $0x610] ss:$24 sps:$4 sm:$0xff]  }
 0x274   : > { %v10127_v62 = vld [vmem:[%s13771_s2 + $0x910] ss:$24 sps:$4 sm:$0xff]  }
 0x276   : > { %5106 = vmatpush2.bf16.msra.mxu0 %v10040_v17  ;;  %5147 = vmatpush2.bf16.msra.mxu1 %v10043_v14  ;;  %v10132_v17 = vld [vmem:[%s13771_s2 + $0x8e4] ss:$24 sps:$4 sm:$0xff]  }
 0x277   : > { %5107 = vmatprep.subr.bf16.mxu0 %v10048_v26  ;;  %5148 = vmatprep.subr.bf16.mxu1 %v10051_v0  ;;  %v10135_v14 = vld [vmem:[%s13771_s2 + $0xbe4] ss:$24 sps:$4 sm:$0xff]   ;;  %v10130_v26 = vld [vmem:[%s13771_s2 + $0x8e0] ss:$24 sps:$4 sm:$0xff]  }
 0x278   : > { %v10133_v0 = vld [vmem:[%s13771_s2 + $0xbe0] ss:$24 sps:$4 sm:$0xff]  }
 0x27a   : > { %5108 = vmatpush2.bf16.msra.mxu0 %v10046_v55  ;;  %5149 = vmatpush2.bf16.msra.mxu1 %v10049_v10  ;;  %v10138_v55 = vld [vmem:[%s13771_s2 + $0x8b4] ss:$24 sps:$4 sm:$0xff]  }
 0x27b   : > { %5109 = vmatprep.subr.bf16.mxu0 %v10054_v31  ;;  %5150 = vmatprep.subr.bf16.mxu1 %v10057_v28  ;;  %v10141_v10 = vld [vmem:[%s13771_s2 + $0xbb4] ss:$24 sps:$4 sm:$0xff]   ;;  %v10136_v31 = vld [vmem:[%s13771_s2 + $0x8b0] ss:$24 sps:$4 sm:$0xff]  }
 0x27c   : > { %v10139_v28 = vld [vmem:[%s13771_s2 + $0xbb0] ss:$24 sps:$4 sm:$0xff]  }
 0x27e   : > { %5110 = vmatpush2.bf16.msra.mxu0 %v10052_v2  ;;  %5151 = vmatpush2.bf16.msra.mxu1 %v10055_v32  ;;  %v10144_v2 = vld [vmem:[%s13771_s2 + $0x884] ss:$24 sps:$4 sm:$0xff]  }
 0x27f   : > { %5111 = vmatprep.subr.bf16.mxu0 %v10060_v5  ;;  %5152 = vmatprep.subr.bf16.mxu1 %v10063_v61  ;;  %v10147_v32 = vld [vmem:[%s13771_s2 + $0xb84] ss:$24 sps:$4 sm:$0xff]   ;;  %v10142_v5 = vld [vmem:[%s13771_s2 + $0x880] ss:$24 sps:$4 sm:$0xff]  }
 0x280   : > { %v10145_v61 = vld [vmem:[%s13771_s2 + $0xb80] ss:$24 sps:$4 sm:$0xff]  }
 0x282   : > { %5112 = vmatpush2.bf16.msra.mxu0 %v10058_v13  ;;  %5153 = vmatpush2.bf16.msra.mxu1 %v10061_v63  ;;  %v10150_v13 = vld [vmem:[%s13771_s2 + $0x854] ss:$24 sps:$4 sm:$0xff]  }
 0x283   : > { %5113 = vmatprep.subr.bf16.mxu0 %v10066_v56  ;;  %5154 = vmatprep.subr.bf16.mxu1 %v10069_v18  ;;  %v10153_v63 = vld [vmem:[%s13771_s2 + $0xb54] ss:$24 sps:$4 sm:$0xff]   ;;  %v10148_v56 = vld [vmem:[%s13771_s2 + $0x850] ss:$24 sps:$4 sm:$0xff]  }
 0x284   : > { %v10151_v18 = vld [vmem:[%s13771_s2 + $0xb50] ss:$24 sps:$4 sm:$0xff]  }
 0x286   : > { %5114 = vmatpush2.bf16.msra.mxu0 %v10064_v34  ;;  %5155 = vmatpush2.bf16.msra.mxu1 %v10067_v37  ;;  %v10156_v34 = vld [vmem:[%s13771_s2 + $0x824] ss:$24 sps:$4 sm:$0xff]  }
 0x287   : > { %5115 = vmatprep.subr.bf16.mxu0 %v10072_v44  ;;  %5156 = vmatprep.subr.bf16.mxu1 %v10075_v35  ;;  %v10159_v37 = vld [vmem:[%s13771_s2 + $0xb24] ss:$24 sps:$4 sm:$0xff]   ;;  %v10154_v44 = vld [vmem:[%s13771_s2 + $0x820] ss:$24 sps:$4 sm:$0xff]  }
 0x288   : > { %v10157_v35 = vld [vmem:[%s13771_s2 + $0xb20] ss:$24 sps:$4 sm:$0xff]  }
 0x28a   : > { %5116 = vmatpush2.bf16.msra.mxu0 %v10070_v29  ;;  %5157 = vmatpush2.bf16.msra.mxu1 %v10073_v45  ;;  %v10162_v29 = vld [vmem:[%s13771_s2 + $0x7f4] ss:$24 sps:$4 sm:$0xff]  }
 0x28b   : > { %5117 = vmatprep.subr.bf16.mxu0 %v10078_v41  ;;  %5158 = vmatprep.subr.bf16.mxu1 %v10081_v47  ;;  %v10165_v45 = vld [vmem:[%s13771_s2 + $0xaf4] ss:$24 sps:$4 sm:$0xff]   ;;  %v10160_v41 = vld [vmem:[%s13771_s2 + $0x7f0] ss:$24 sps:$4 sm:$0xff]  }
 0x28c   : > { %v10163_v47 = vld [vmem:[%s13771_s2 + $0xaf0] ss:$24 sps:$4 sm:$0xff]  }
 0x28e   : > { %5118 = vmatpush2.bf16.msra.mxu0 %v10076_v3  ;;  %5159 = vmatpush2.bf16.msra.mxu1 %v10079_v19  ;;  %v10168_v3 = vld [vmem:[%s13771_s2 + $0x7c4] ss:$24 sps:$4 sm:$0xff]  }
 0x28f   : > { %5169 = vmatprep.subr.bf16.mxu0 %v10084_v24  ;;  %5210 = vmatprep.subr.bf16.mxu1 %v10087_v27  ;;  %v10171_v19 = vld [vmem:[%s13771_s2 + $0xac4] ss:$24 sps:$4 sm:$0xff]   ;;  %v10166_v24 = vld [vmem:[%s13771_s2 + $0x7c0] ss:$24 sps:$4 sm:$0xff]  }
 0x290   : > { %v10169_v27 = vld [vmem:[%s13771_s2 + $0xac0] ss:$24 sps:$4 sm:$0xff]  }
 0x291   : > { %5120 = vmatmul.mubr.bf16.vlgmr.msra.gmra.mxu0 %v12088_v11  ;;  %5161 = vmatmul.mubr.bf16.vlgmr.msra.gmra.mxu1 %v12090_v36 }
 0x292   : > { %5170 = vmatpush1.bf16.msra.mxu0 %v10082_v33  ;;  %5201 = vmatprep.mubr.bf16.mxu0 %v12078_v7  ;;  %v10099_v7 = vld [vmem:[%s13771_s2 + $0xa04] ss:$24 sps:$4 sm:$0xff]   ;;  %v10174_v33 = vld [vmem:[%s13771_s2 + $0x794] ss:$24 sps:$4 sm:$0xff]  }
 0x293   : > { %5211 = vmatpush1.bf16.msra.mxu1 %v10085_v42  ;;  %5242 = vmatprep.mubr.bf16.mxu1 %v12080_v51  ;;  %v10097_v51 = vld [vmem:[%s13771_s2 + $0xa00] ss:$24 sps:$4 sm:$0xff]   ;;  %v10177_v42 = vld [vmem:[%s13771_s2 + $0xa94] ss:$24 sps:$4 sm:$0xff]  }
 0x294   : > { %5171 = vmatprep.subr.bf16.mxu0 %v10090_v30  ;;  %5212 = vmatprep.subr.bf16.mxu1 %v10093_v25  ;;  %v10172_v30 = vld [vmem:[%s13771_s2 + $0x790] ss:$24 sps:$4 sm:$0xff]  }
 0x295   : > { %v10175_v25 = vld [vmem:[%s13771_s2 + $0xa90] ss:$24 sps:$4 sm:$0xff]  }
 0x296   : > { %5172 = vmatpush1.bf16.msra.mxu0 %v10088_v49  ;;  %v10180_v49 = vld [vmem:[%s13771_s2 + $0x154] ss:$24 sps:$4 sm:$0xff]  }
 0x297   : > { %5213 = vmatpush1.bf16.msra.mxu1 %v10091_v43  ;;  %5173 = vmatprep.subr.bf16.mxu0 %v10096_v4  ;;  %v10183_v43 = vld [vmem:[%s13771_s2 + $0x454] ss:$24 sps:$4 sm:$0xff]   ;;  %v10178_v4 = vld [vmem:[%s13771_s2 + $0x150] ss:$24 sps:$4 sm:$0xff]  }
 0x298   : > { %5214 = vmatprep.subr.bf16.mxu1 %v10099_v7  ;;  %v3613_v7 = vld [vmem:[#allocation2 + $0x8] sm:$0x3f] }
 0x29a   : > { %5174 = vmatpush1.bf16.msra.mxu0 %v10094_v59  ;;  %v10181_v59 = vld [vmem:[%s13771_s2 + $0x450] ss:$24 sps:$4 sm:$0xff]  }
 0x29b   : > { %5215 = vmatpush1.bf16.msra.mxu1 %v10097_v51  ;;  %5175 = vmatprep.subr.bf16.mxu0 %v10102_v23  ;;  %v3615_v51 = vld [vmem:[#allocation2 + $0x18] sm:$0x3f] }
 0x29c   : > { %5216 = vmatprep.subr.bf16.mxu1 %v10105_v46  ;;  %v10186_v23 = vld [vmem:[%s13771_s2 + $0x124] ss:$24 sps:$4 sm:$0xff]   ;;  %v12490_v46 = vpack.c.bf16 %v3613_v7, %v3613_v7  ;;  %v10265_v7 = vld [vmem:[%s13771_s2 + $0x4b0] ss:$24 sps:$4 sm:$0xff]  }
 0x29e   : > { %5176 = vmatpush1.bf16.msra.mxu0 %v10100_v6  ;;  %v10189_v6 = vld [vmem:[%s13771_s2 + $0x424] ss:$24 sps:$4 sm:$0xff]  }
 0x29f   : > { %5217 = vmatpush1.bf16.msra.mxu1 %v10103_v60  ;;  %5177 = vmatprep.subr.bf16.mxu0 %v10108_v53  ;;  %v12496_v60 = vpack.c.bf16 %v3615_v51, %v3615_v51  ;;  %v10184_v53 = vld [vmem:[%s13771_s2 + $0x120] ss:$24 sps:$4 sm:$0xff]   ;;  %v10273_v51 = vld [vmem:[%s13771_s2 + $0x484] ss:$24 sps:$4 sm:$0xff]  }
 0x2a0   : > { %5218 = vmatprep.subr.bf16.mxu1 %v10111_v22  ;;  %v10192_v22 = vld [vmem:[%s13771_s2 + $0xf4] ss:$24 sps:$4 sm:$0xff]  }
 0x2a2   : > { %5178 = vmatpush1.bf16.msra.mxu0 %v10106_v50  ;;  %v10190_v50 = vld [vmem:[%s13771_s2 + $0xf0] ss:$24 sps:$4 sm:$0xff]  }
 0x2a3   : > { %5219 = vmatpush1.bf16.msra.mxu1 %v10109_v48  ;;  %5179 = vmatprep.subr.bf16.mxu0 %v10114_v20  ;;  %v10193_v48 = vld [vmem:[%s13771_s2 + $0x3f0] ss:$24 sps:$4 sm:$0xff]   ;;  %v10198_v20 = vld [vmem:[%s13771_s2 + $0xc4] ss:$24 sps:$4 sm:$0xff]  }
 0x2a4   : > { %5220 = vmatprep.subr.bf16.mxu1 %v10117_v58  ;;  %v10201_v58 = vld [vmem:[%s13771_s2 + $0x3c4] ss:$24 sps:$4 sm:$0xff]  }
 0x2a6   : > { %5180 = vmatpush1.bf16.msra.mxu0 %v10112_v1  ;;  %v10196_v1 = vld [vmem:[%s13771_s2 + $0xc0] ss:$24 sps:$4 sm:$0xff]  }
 0x2a7   : > { %5221 = vmatpush1.bf16.msra.mxu1 %v10115_v54  ;;  %5181 = vmatprep.subr.bf16.mxu0 %v10120_v12  ;;  %v10199_v54 = vld [vmem:[%s13771_s2 + $0x3c0] ss:$24 sps:$4 sm:$0xff]   ;;  %v10204_v12 = vld [vmem:[%s13771_s2 + $0x94] ss:$24 sps:$4 sm:$0xff]  }
 0x2a8   : > { %5222 = vmatprep.subr.bf16.mxu1 %v10123_v40  ;;  %v10207_v40 = vld [vmem:[%s13771_s2 + $0x394] ss:$24 sps:$4 sm:$0xff]  }
 0x2aa   : > { %5182 = vmatpush1.bf16.msra.mxu0 %v10118_v8  ;;  %v10202_v8 = vld [vmem:[%s13771_s2 + $0x90] ss:$24 sps:$4 sm:$0xff]  }
 0x2ab   : > { %5223 = vmatpush1.bf16.msra.mxu1 %v10121_v52  ;;  %5183 = vmatprep.subr.bf16.mxu0 %v10126_v9  ;;  %v10205_v52 = vld [vmem:[%s13771_s2 + $0x390] ss:$24 sps:$4 sm:$0xff]   ;;  %v10210_v9 = vld [vmem:[%s13771_s2 + $0x64] ss:$24 sps:$4 sm:$0xff]  }
 0x2ac   : > { %5224 = vmatprep.subr.bf16.mxu1 %v10129_v57  ;;  %v10213_v57 = vld [vmem:[%s13771_s2 + $0x364] ss:$24 sps:$4 sm:$0xff]  }
 0x2ae   : > { %5184 = vmatpush1.bf16.msra.mxu0 %v10124_v38  ;;  %v10208_v38 = vld [vmem:[%s13771_s2 + $0x60] ss:$24 sps:$4 sm:$0xff]  }
 0x2af   : > { %5225 = vmatpush1.bf16.msra.mxu1 %v10127_v62  ;;  %5185 = vmatprep.subr.bf16.mxu0 %v10132_v17  ;;  %v10211_v62 = vld [vmem:[%s13771_s2 + $0x360] ss:$24 sps:$4 sm:$0xff]   ;;  %v10216_v17 = vld [vmem:[%s13771_s2 + $0x34] ss:$24 sps:$4 sm:$0xff]  }
 0x2b0   : > { %5226 = vmatprep.subr.bf16.mxu1 %v10135_v14  ;;  %v10219_v14 = vld [vmem:[%s13771_s2 + $0x334] ss:$24 sps:$4 sm:$0xff]  }
 0x2b2   : > { %5186 = vmatpush2.bf16.msra.mxu0 %v10130_v26  ;;  %v10214_v26 = vld [vmem:[%s13771_s2 + $0x30] ss:$24 sps:$4 sm:$0xff]  }
 0x2b3   : > { %5227 = vmatpush2.bf16.msra.mxu1 %v10133_v0  ;;  %5187 = vmatprep.subr.bf16.mxu0 %v10138_v55  ;;  %v10217_v0 = vld [vmem:[%s13771_s2 + $0x330] ss:$24 sps:$4 sm:$0xff]   ;;  %v10222_v55 = vld [vmem:[%s13771_s2 + $0x4] ss:$24 sps:$4 sm:$0xff]  }
 0x2b4   : > { %5228 = vmatprep.subr.bf16.mxu1 %v10141_v10  ;;  %v10225_v10 = vld [vmem:[%s13771_s2 + $0x304] ss:$24 sps:$4 sm:$0xff]  }
 0x2b6   : > { %5188 = vmatpush2.bf16.msra.mxu0 %v10136_v31  ;;  %v10220_v31 = vld [vmem:[%s13771_s2] ss:$24 sps:$4 sm:$0xff]  }
 0x2b7   : > { %5229 = vmatpush2.bf16.msra.mxu1 %v10139_v28  ;;  %5189 = vmatprep.subr.bf16.mxu0 %v10144_v2  ;;  %v10223_v28 = vld [vmem:[%s13771_s2 + $0x300] ss:$24 sps:$4 sm:$0xff]   ;;  %v10228_v2 = vld [vmem:[%s13771_s2 + $0x2d4] ss:$24 sps:$4 sm:$0xff]  }
 0x2b8   : > { %5230 = vmatprep.subr.bf16.mxu1 %v10147_v32  ;;  %v10231_v32 = vld [vmem:[%s13771_s2 + $0x5d4] ss:$24 sps:$4 sm:$0xff]  }
 0x2ba   : > { %5190 = vmatpush2.bf16.msra.mxu0 %v10142_v5  ;;  %v10226_v5 = vld [vmem:[%s13771_s2 + $0x2d0] ss:$24 sps:$4 sm:$0xff]  }
 0x2bb   : > { %5231 = vmatpush2.bf16.msra.mxu1 %v10145_v61  ;;  %5191 = vmatprep.subr.bf16.mxu0 %v10150_v13  ;;  %v10229_v61 = vld [vmem:[%s13771_s2 + $0x5d0] ss:$24 sps:$4 sm:$0xff]   ;;  %v10234_v13 = vld [vmem:[%s13771_s2 + $0x2a4] ss:$24 sps:$4 sm:$0xff]  }
 0x2bc   : > { %5232 = vmatprep.subr.bf16.mxu1 %v10153_v63  ;;  %v10237_v63 = vld [vmem:[%s13771_s2 + $0x5a4] ss:$24 sps:$4 sm:$0xff]  }
 0x2be   : > { %5192 = vmatpush2.bf16.msra.mxu0 %v10148_v56  ;;  %v10232_v56 = vld [vmem:[%s13771_s2 + $0x2a0] ss:$24 sps:$4 sm:$0xff]  }
 0x2bf   : > { %5233 = vmatpush2.bf16.msra.mxu1 %v10151_v18  ;;  %5193 = vmatprep.subr.bf16.mxu0 %v10156_v34  ;;  %v10235_v18 = vld [vmem:[%s13771_s2 + $0x5a0] ss:$24 sps:$4 sm:$0xff]   ;;  %v10240_v34 = vld [vmem:[%s13771_s2 + $0x274] ss:$24 sps:$4 sm:$0xff]  }
 0x2c0   : > { %5234 = vmatprep.subr.bf16.mxu1 %v10159_v37  ;;  %v10243_v37 = vld [vmem:[%s13771_s2 + $0x574] ss:$24 sps:$4 sm:$0xff]  }
 0x2c2   : > { %5194 = vmatpush2.bf16.msra.mxu0 %v10154_v44  ;;  %v10238_v44 = vld [vmem:[%s13771_s2 + $0x270] ss:$24 sps:$4 sm:$0xff]  }
 0x2c3   : > { %5235 = vmatpush2.bf16.msra.mxu1 %v10157_v35  ;;  %5195 = vmatprep.subr.bf16.mxu0 %v10162_v29  ;;  %v10241_v35 = vld [vmem:[%s13771_s2 + $0x570] ss:$24 sps:$4 sm:$0xff]   ;;  %v10246_v29 = vld [vmem:[%s13771_s2 + $0x244] ss:$24 sps:$4 sm:$0xff]  }
 0x2c4   : > { %5236 = vmatprep.subr.bf16.mxu1 %v10165_v45  ;;  %v10249_v45 = vld [vmem:[%s13771_s2 + $0x544] ss:$24 sps:$4 sm:$0xff]  }
 0x2c6   : > { %5196 = vmatpush2.bf16.msra.mxu0 %v10160_v41  ;;  %v10244_v41 = vld [vmem:[%s13771_s2 + $0x240] ss:$24 sps:$4 sm:$0xff]  }
 0x2c7   : > { %5237 = vmatpush2.bf16.msra.mxu1 %v10163_v47  ;;  %5197 = vmatprep.subr.bf16.mxu0 %v10168_v3  ;;  %v10247_v47 = vld [vmem:[%s13771_s2 + $0x540] ss:$24 sps:$4 sm:$0xff]   ;;  %v10252_v3 = vld [vmem:[%s13771_s2 + $0x214] ss:$24 sps:$4 sm:$0xff]  }
 0x2c8   : > { %5238 = vmatprep.subr.bf16.mxu1 %v10171_v19  ;;  %v10255_v19 = vld [vmem:[%s13771_s2 + $0x514] ss:$24 sps:$4 sm:$0xff]  }
 0x2ca   : > { %5198 = vmatpush2.bf16.msra.mxu0 %v10166_v24  ;;  %v10250_v24 = vld [vmem:[%s13771_s2 + $0x210] ss:$24 sps:$4 sm:$0xff]  }
 0x2cb   : > { %5239 = vmatpush2.bf16.msra.mxu1 %v10169_v27  ;;  %5199 = vmatprep.subr.bf16.mxu0 %v10174_v33  ;;  %v10253_v27 = vld [vmem:[%s13771_s2 + $0x510] ss:$24 sps:$4 sm:$0xff]   ;;  %v10258_v33 = vld [vmem:[%s13771_s2 + $0x1e4] ss:$24 sps:$4 sm:$0xff]  }
 0x2cc   : > { %5240 = vmatprep.subr.bf16.mxu1 %v10177_v42  ;;  %v10261_v42 = vld [vmem:[%s13771_s2 + $0x4e4] ss:$24 sps:$4 sm:$0xff]  }
 0x2ce   : > { %5200 = vmatpush2.bf16.msra.mxu0 %v10172_v30  ;;  %v10256_v30 = vld [vmem:[%s13771_s2 + $0x1e0] ss:$24 sps:$4 sm:$0xff]  }
 0x2cf   : > { %5241 = vmatpush2.bf16.msra.mxu1 %v10175_v25  ;;  %6211 = vmatprep.subr.bf16.mxu0 %v10180_v49  ;;  %v10259_v25 = vld [vmem:[%s13771_s2 + $0x4e0] ss:$24 sps:$4 sm:$0xff]   ;;  %v10264_v49 = vld [vmem:[%s13771_s2 + $0x1b4] ss:$24 sps:$4 sm:$0xff]  }
 0x2d0   : > { %6252 = vmatprep.subr.bf16.mxu1 %v10183_v43  ;;  %v10267_v43 = vld [vmem:[%s13771_s2 + $0x4b4] ss:$24 sps:$4 sm:$0xff]  }
 0x2d1   : > { %5202 = vmatmul.mubr.bf16.vlgmr.msra.gmra.mxu0 %v12088_v11  ;;  %v10187_v11 = vld [vmem:[%s13771_s2 + $0x420] ss:$24 sps:$4 sm:$0xff]  }
 0x2d2   : > { %5243 = vmatmul.mubr.bf16.vlgmr.msra.gmra.mxu1 %v12090_v36  ;;  %6212 = vmatpush1.bf16.msra.mxu0 %v10178_v4  ;;  %v10195_v36 = vld [vmem:[%s13771_s2 + $0x3f4] ss:$24 sps:$4 sm:$0xff]   ;;  %v10262_v4 = vld [vmem:[%s13771_s2 + $0x1b0] ss:$24 sps:$4 sm:$0xff]  }
 0x2d3   : > { %6243 = vmatprep.mubr.bf16.mxu0 %v12490_v46  ;;  %6253 = vmatpush1.bf16.msra.mxu1 %v10181_v59  ;;  %v10270_v59 = vld [vmem:[%s13771_s2 + $0x184] ss:$24 sps:$4 sm:$0xff]  }
 0x2d4   : > { %6284 = vmatprep.mubr.bf16.mxu1 %v12496_v60  ;;  %6213 = vmatprep.subr.bf16.mxu0 %v10186_v23  ;;  %v10268_v23 = vld [vmem:[%s13771_s2 + $0x180] ss:$24 sps:$4 sm:$0xff]  }
 0x2d5   : > { %6254 = vmatprep.subr.bf16.mxu1 %v10189_v6  ;;  %v10271_v6 = vld [vmem:[%s13771_s2 + $0x480] ss:$24 sps:$4 sm:$0xff]  }
 0x2d6   : > { %6214 = vmatpush1.bf16.msra.mxu0 %v10184_v53  ;;  %v10276_v53 = vld [vmem:[%s13771_s2 + $0x15c] ss:$24 sps:$4 sm:$0xff]  }
 0x2d7   : > { %6255 = vmatpush1.bf16.msra.mxu1 %v10187_v11  ;;  %6215 = vmatprep.subr.bf16.mxu0 %v10192_v22  ;;  %v3612_v11 = vld [vmem:[#allocation2] sm:$0x3f]  ;;  %v10279_v22 = vld [vmem:[%s13771_s2 + $0x45c] ss:$24 sps:$4 sm:$0xff]  }
 0x2d8   : > { %6256 = vmatprep.subr.bf16.mxu1 %v10195_v36  ;;  %v3614_v36 = vld [vmem:[#allocation2 + $0x10] sm:$0x3f] }
 0x2da   : > { %6216 = vmatpush1.bf16.msra.mxu0 %v10190_v50  ;;  %v10274_v50 = vld [vmem:[%s13771_s2 + $0x158] ss:$24 sps:$4 sm:$0xff]  }
 0x2db   : > { %6257 = vmatpush1.bf16.msra.mxu1 %v10193_v48  ;;  %6217 = vmatprep.subr.bf16.mxu0 %v10198_v20  ;;  %v12683_v48 = vpack.c.bf16 %v3612_v11, %v3612_v11  ;;  %v10277_v20 = vld [vmem:[%s13771_s2 + $0x458] ss:$24 sps:$4 sm:$0xff]   ;;  %v10345_v11 = vld [vmem:[%s13771_s2 + $0x54c] ss:$24 sps:$4 sm:$0xff]  }
 0x2dc   : > { %6258 = vmatprep.subr.bf16.mxu1 %v10201_v58  ;;  %v12688_v58 = vpack.c.bf16 %v3614_v36, %v3614_v36  ;;  %v10343_v36 = vld [vmem:[%s13771_s2 + $0x548] ss:$24 sps:$4 sm:$0xff]  }
 0x2de   : > { %6218 = vmatpush1.bf16.msra.mxu0 %v10196_v1  ;;  %v10282_v1 = vld [vmem:[%s13771_s2 + $0x12c] ss:$24 sps:$4 sm:$0xff]  }
 0x2df   : > { %6259 = vmatpush1.bf16.msra.mxu1 %v10199_v54  ;;  %6219 = vmatprep.subr.bf16.mxu0 %v10204_v12 }
 0x2e0   : > { %6260 = vmatprep.subr.bf16.mxu1 %v10207_v40  ;;  %v10285_v40 = vld [vmem:[%s13771_s2 + $0x42c] ss:$24 sps:$4 sm:$0xff]  }
 0x2e2   : > { %6220 = vmatpush1.bf16.msra.mxu0 %v10202_v8 }
 0x2e3   : > { %6261 = vmatpush1.bf16.msra.mxu1 %v10205_v52  ;;  %6221 = vmatprep.subr.bf16.mxu0 %v10210_v9  ;;  %v10280_v52 = vld [vmem:[%s13771_s2 + $0x128] ss:$24 sps:$4 sm:$0xff]  }
 0x2e4   : > { %6262 = vmatprep.subr.bf16.mxu1 %v10213_v57 }
 0x2e6   : > { %6222 = vmatpush1.bf16.msra.mxu0 %v10208_v38  ;;  %v10283_v38 = vld [vmem:[%s13771_s2 + $0x428] ss:$24 sps:$4 sm:$0xff]  }
 0x2e7   : > { %6263 = vmatpush1.bf16.msra.mxu1 %v10211_v62  ;;  %6223 = vmatprep.subr.bf16.mxu0 %v10216_v17  ;;  %v10288_v62 = vld [vmem:[%s13771_s2 + $0xfc] ss:$24 sps:$4 sm:$0xff]  }
 0x2e8   : > { %6264 = vmatprep.subr.bf16.mxu1 %v10219_v14  ;;  %v10291_v14 = vld [vmem:[%s13771_s2 + $0x3fc] ss:$24 sps:$4 sm:$0xff]  }
 0x2ea   : > { %6224 = vmatpush1.bf16.msra.mxu0 %v10214_v26 }
 0x2eb   : > { %6265 = vmatpush1.bf16.msra.mxu1 %v10217_v0  ;;  %6225 = vmatprep.subr.bf16.mxu0 %v10222_v55  ;;  %v10286_v55 = vld [vmem:[%s13771_s2 + $0xf8] ss:$24 sps:$4 sm:$0xff]  }
 0x2ec   : > { %6266 = vmatprep.subr.bf16.mxu1 %v10225_v10 }
 0x2ee   : > { %6226 = vmatpush1.bf16.msra.mxu0 %v10220_v31 }
 0x2ef   : > { %6267 = vmatpush1.bf16.msra.mxu1 %v10223_v28  ;;  %6227 = vmatprep.subr.bf16.mxu0 %v10228_v2  ;;  %v10289_v28 = vld [vmem:[%s13771_s2 + $0x3f8] ss:$24 sps:$4 sm:$0xff]   ;;  %v10294_v2 = vld [vmem:[%s13771_s2 + $0xcc] ss:$24 sps:$4 sm:$0xff]  }
 0x2f0   : > { %6268 = vmatprep.subr.bf16.mxu1 %v10231_v32  ;;  %v10297_v32 = vld [vmem:[%s13771_s2 + $0x3cc] ss:$24 sps:$4 sm:$0xff]  }
 0x2f2   : > { %6228 = vmatpush2.bf16.msra.mxu0 %v10226_v5  ;;  %v10292_v5 = vld [vmem:[%s13771_s2 + $0xc8] ss:$24 sps:$4 sm:$0xff]  }
 0x2f3   : > { %6269 = vmatpush2.bf16.msra.mxu1 %v10229_v61  ;;  %6229 = vmatprep.subr.bf16.mxu0 %v10234_v13  ;;  %v10295_v61 = vld [vmem:[%s13771_s2 + $0x3c8] ss:$24 sps:$4 sm:$0xff]   ;;  %v10300_v13 = vld [vmem:[%s13771_s2 + $0x9c] ss:$24 sps:$4 sm:$0xff]  }
 0x2f4   : > { %6270 = vmatprep.subr.bf16.mxu1 %v10237_v63  ;;  %v10303_v63 = vld [vmem:[%s13771_s2 + $0x39c] ss:$24 sps:$4 sm:$0xff]  }
 0x2f6   : > { %6230 = vmatpush2.bf16.msra.mxu0 %v10232_v56  ;;  %v10298_v56 = vld [vmem:[%s13771_s2 + $0x98] ss:$24 sps:$4 sm:$0xff]  }
 0x2f7   : > { %6271 = vmatpush2.bf16.msra.mxu1 %v10235_v18  ;;  %6231 = vmatprep.subr.bf16.mxu0 %v10240_v34  ;;  %v10301_v18 = vld [vmem:[%s13771_s2 + $0x398] ss:$24 sps:$4 sm:$0xff]   ;;  %v10306_v34 = vld [vmem:[%s13771_s2 + $0x6c] ss:$24 sps:$4 sm:$0xff]  }
 0x2f8   : > { %6272 = vmatprep.subr.bf16.mxu1 %v10243_v37  ;;  %v10309_v37 = vld [vmem:[%s13771_s2 + $0x36c] ss:$24 sps:$4 sm:$0xff]  }
 0x2fa   : > { %6232 = vmatpush2.bf16.msra.mxu0 %v10238_v44  ;;  %v10304_v44 = vld [vmem:[%s13771_s2 + $0x68] ss:$24 sps:$4 sm:$0xff]  }
 0x2fb   : > { %6273 = vmatpush2.bf16.msra.mxu1 %v10241_v35  ;;  %6233 = vmatprep.subr.bf16.mxu0 %v10246_v29  ;;  %v10307_v35 = vld [vmem:[%s13771_s2 + $0x368] ss:$24 sps:$4 sm:$0xff]   ;;  %v10312_v29 = vld [vmem:[%s13771_s2 + $0x3c] ss:$24 sps:$4 sm:$0xff]  }
 0x2fc   : > { %6274 = vmatprep.subr.bf16.mxu1 %v10249_v45  ;;  %v10315_v45 = vld [vmem:[%s13771_s2 + $0x33c] ss:$24 sps:$4 sm:$0xff]  }
 0x2fe   : > { %6234 = vmatpush2.bf16.msra.mxu0 %v10244_v41  ;;  %v10310_v41 = vld [vmem:[%s13771_s2 + $0x38] ss:$24 sps:$4 sm:$0xff]  }
 0x2ff   : > { %6275 = vmatpush2.bf16.msra.mxu1 %v10247_v47  ;;  %6235 = vmatprep.subr.bf16.mxu0 %v10252_v3  ;;  %v10313_v47 = vld [vmem:[%s13771_s2 + $0x338] ss:$24 sps:$4 sm:$0xff]   ;;  %v10318_v3 = vld [vmem:[%s13771_s2 + $0xc] ss:$24 sps:$4 sm:$0xff]  }
 0x300   : > { %6276 = vmatprep.subr.bf16.mxu1 %v10255_v19  ;;  %v10321_v19 = vld [vmem:[%s13771_s2 + $0x30c] ss:$24 sps:$4 sm:$0xff]  }
 0x302   : > { %6236 = vmatpush2.bf16.msra.mxu0 %v10250_v24  ;;  %v10316_v24 = vld [vmem:[%s13771_s2 + $0x8] ss:$24 sps:$4 sm:$0xff]  }
 0x303   : > { %6277 = vmatpush2.bf16.msra.mxu1 %v10253_v27  ;;  %6237 = vmatprep.subr.bf16.mxu0 %v10258_v33  ;;  %v10319_v27 = vld [vmem:[%s13771_s2 + $0x308] ss:$24 sps:$4 sm:$0xff]   ;;  %v10324_v33 = vld [vmem:[%s13771_s2 + $0x2dc] ss:$24 sps:$4 sm:$0xff]  }
 0x304   : > { %6278 = vmatprep.subr.bf16.mxu1 %v10261_v42  ;;  %v10327_v42 = vld [vmem:[%s13771_s2 + $0x5dc] ss:$24 sps:$4 sm:$0xff]  }
 0x306   : > { %6238 = vmatpush2.bf16.msra.mxu0 %v10256_v30  ;;  %v10322_v30 = vld [vmem:[%s13771_s2 + $0x2d8] ss:$24 sps:$4 sm:$0xff]  }
 0x307   : > { %6279 = vmatpush2.bf16.msra.mxu1 %v10259_v25  ;;  %6239 = vmatprep.subr.bf16.mxu0 %v10264_v49  ;;  %v10325_v25 = vld [vmem:[%s13771_s2 + $0x5d8] ss:$24 sps:$4 sm:$0xff]   ;;  %v10330_v49 = vld [vmem:[%s13771_s2 + $0x2ac] ss:$24 sps:$4 sm:$0xff]  }
 0x308   : > { %6280 = vmatprep.subr.bf16.mxu1 %v10267_v43  ;;  %v10333_v43 = vld [vmem:[%s13771_s2 + $0x5ac] ss:$24 sps:$4 sm:$0xff]  }
 0x30a   : > { %6240 = vmatpush2.bf16.msra.mxu0 %v10262_v4  ;;  %v10328_v4 = vld [vmem:[%s13771_s2 + $0x2a8] ss:$24 sps:$4 sm:$0xff]  }
 0x30b   : > { %6281 = vmatpush2.bf16.msra.mxu1 %v10265_v7  ;;  %6241 = vmatprep.subr.bf16.mxu0 %v10270_v59  ;;  %v10331_v7 = vld [vmem:[%s13771_s2 + $0x5a8] ss:$24 sps:$4 sm:$0xff]   ;;  %v10336_v59 = vld [vmem:[%s13771_s2 + $0x27c] ss:$24 sps:$4 sm:$0xff]  }
 0x30c   : > { %6282 = vmatprep.subr.bf16.mxu1 %v10273_v51  ;;  %v10339_v51 = vld [vmem:[%s13771_s2 + $0x57c] ss:$24 sps:$4 sm:$0xff]  }
 0x30e   : > { %6242 = vmatpush2.bf16.msra.mxu0 %v10268_v23  ;;  %v10334_v23 = vld [vmem:[%s13771_s2 + $0x278] ss:$24 sps:$4 sm:$0xff]  }
 0x30f   : > { %6283 = vmatpush2.bf16.msra.mxu1 %v10271_v6  ;;  %6293 = vmatprep.subr.bf16.mxu0 %v10276_v53  ;;  %v10337_v6 = vld [vmem:[%s13771_s2 + $0x578] ss:$24 sps:$4 sm:$0xff]   ;;  %v10342_v53 = vld [vmem:[%s13771_s2 + $0x24c] ss:$24 sps:$4 sm:$0xff]  }
 0x310   : > { %6334 = vmatprep.subr.bf16.mxu1 %v10279_v22  ;;  %v10340_v22 = vld [vmem:[%s13771_s2 + $0x248] ss:$24 sps:$4 sm:$0xff]  }
 0x311   : > { %6244 = vmatmul.mubr.bf16.vlgmr.msra.gmra.mxu0 %v12683_v48  ;;  %v5039_v54 = vpop.f32.mrf.mxu0  ;;  %v5080_v12 = vpop.f32.mrf.mxu1 }
 0x312   : > { %6285 = vmatmul.mubr.bf16.vlgmr.msra.gmra.mxu1 %v12688_v58  ;;  %v12698_v8 = vadd.f32 %v5080_v12, %v5039_v54  ;;  %6294 = vmatpush1.bf16.msra.mxu0 %v10274_v50  ;;  %v10348_v50 = vld [vmem:[%s13771_s2 + $0x21c] ss:$24 sps:$4 sm:$0xff]   ;;  %v10349_v54 = vld [vmem:[%s13771_s2 + $0x518] ss:$24 sps:$4 sm:$0xff]   ;;  %v10354_v12 = vld [vmem:[%s13771_s2 + $0x1ec] ss:$24 sps:$4 sm:$0xff]  }
 0x313   : > { %6325 = vmatprep.mubr.bf16.mxu0 %v12490_v46  ;;  %6335 = vmatpush1.bf16.msra.mxu1 %v10277_v20  ;;  %v5041_v9 = vpop.f32.mrf.mxu0  ;;  %v5082_v57 = vpop.f32.mrf.mxu1  ;;  %v10351_v20 = vld [vmem:[%s13771_s2 + $0x51c] ss:$24 sps:$4 sm:$0xff]  }
 0x314   : > { %6366 = vmatprep.mubr.bf16.mxu1 %v12496_v60  ;;  %v12711_v17 = vadd.f32 %v5082_v57, %v5041_v9  ;;  %6295 = vmatprep.subr.bf16.mxu0 %v10282_v1  ;;  %v10346_v1 = vld [vmem:[%s13771_s2 + $0x218] ss:$24 sps:$4 sm:$0xff]   ;;  %v10355_v9 = vld [vmem:[%s13771_s2 + $0x4e8] ss:$24 sps:$4 sm:$0xff]   ;;  %v10360_v57 = vld [vmem:[%s13771_s2 + $0x1bc] ss:$24 sps:$4 sm:$0xff]  }
 0x315   : > { %6336 = vmatprep.subr.bf16.mxu1 %v10285_v40  ;;  %v5043_v26 = vpop.f32.mrf.mxu0  ;;  %v5084_v0 = vpop.f32.mrf.mxu1  ;;  %v10357_v40 = vld [vmem:[%s13771_s2 + $0x4ec] ss:$24 sps:$4 sm:$0xff]  }
 0x316   : > { %6296 = vmatpush1.bf16.msra.mxu0 %v10280_v52  ;;  %v10352_v52 = vld [vmem:[%s13771_s2 + $0x1e8] ss:$24 sps:$4 sm:$0xff]   ;;  %v10366_v26 = vld [vmem:[%s13771_s2 + $0x18c] ss:$24 sps:$4 sm:$0xff]  }
 0x317   : > { %6337 = vmatpush1.bf16.msra.mxu1 %v10283_v38  ;;  %v5044_v10 = vpop.f32.mrf.mxu0  ;;  %v5085_v31 = vpop.f32.mrf.mxu1  ;;  %6297 = vmatprep.subr.bf16.mxu0 %v10288_v62  ;;  %v10363_v38 = vld [vmem:[%s13771_s2 + $0x4bc] ss:$24 sps:$4 sm:$0xff]   ;;  %v10358_v62 = vld [vmem:[%s13771_s2 + $0x1b8] ss:$24 sps:$4 sm:$0xff]   ;;  %v10369_v0 = vld [vmem:[%s13771_s2 + $0x48c] ss:$24 sps:$4 sm:$0xff]  }
 0x318   : > { %6338 = vmatprep.subr.bf16.mxu1 %v10291_v14  ;;  %v10361_v14 = vld [vmem:[%s13771_s2 + $0x4b8] ss:$24 sps:$4 sm:$0xff]   ;;  %v10367_v10 = vld [vmem:[%s13771_s2 + $0x488] ss:$24 sps:$4 sm:$0xff]   ;;  %v10372_v31 = vld [vmem:[%s13771_s2 + $0x164] ss:$24 sps:$4 sm:$0xff]  }
 0x31a   : > { %6298 = vmatpush1.bf16.msra.mxu0 %v10286_v55  ;;  %v10364_v55 = vld [vmem:[%s13771_s2 + $0x188] ss:$24 sps:$4 sm:$0xff]  }
 0x31b   : > { %6339 = vmatpush1.bf16.msra.mxu1 %v10289_v28  ;;  %6299 = vmatprep.subr.bf16.mxu0 %v10294_v2  ;;  %v10375_v28 = vld [vmem:[%s13771_s2 + $0x464] ss:$24 sps:$4 sm:$0xff]   ;;  %v10370_v2 = vld [vmem:[%s13771_s2 + $0x160] ss:$24 sps:$4 sm:$0xff]  }
 0x31c   : > { %6340 = vmatprep.subr.bf16.mxu1 %v10297_v32  ;;  %v10373_v32 = vld [vmem:[%s13771_s2 + $0x460] ss:$24 sps:$4 sm:$0xff]  }
 0x31e   : > { %6300 = vmatpush1.bf16.msra.mxu0 %v10292_v5  ;;  %v10378_v5 = vld [vmem:[%s13771_s2 + $0x134] ss:$24 sps:$4 sm:$0xff]  }
 0x31f   : > { %6341 = vmatpush1.bf16.msra.mxu1 %v10295_v61  ;;  %6301 = vmatprep.subr.bf16.mxu0 %v10300_v13 }
 0x320   : > { %6342 = vmatprep.subr.bf16.mxu1 %v10303_v63  ;;  %v10381_v63 = vld [vmem:[%s13771_s2 + $0x434] ss:$24 sps:$4 sm:$0xff]  }
 0x322   : > { %6302 = vmatpush1.bf16.msra.mxu0 %v10298_v56 }
 0x323   : > { %6343 = vmatpush1.bf16.msra.mxu1 %v10301_v18  ;;  %6303 = vmatprep.subr.bf16.mxu0 %v10306_v34  ;;  %v10376_v18 = vld [vmem:[%s13771_s2 + $0x130] ss:$24 sps:$4 sm:$0xff]  }
 0x324   : > { %6344 = vmatprep.subr.bf16.mxu1 %v10309_v37 }
 0x326   : > { %6304 = vmatpush1.bf16.msra.mxu0 %v10304_v44  ;;  %v10379_v44 = vld [vmem:[%s13771_s2 + $0x430] ss:$24 sps:$4 sm:$0xff]  }
 0x327   : > { %6345 = vmatpush1.bf16.msra.mxu1 %v10307_v35  ;;  %6305 = vmatprep.subr.bf16.mxu0 %v10312_v29  ;;  %v10384_v35 = vld [vmem:[%s13771_s2 + $0x104] ss:$24 sps:$4 sm:$0xff]  }
 0x328   : > { %6346 = vmatprep.subr.bf16.mxu1 %v10315_v45 }
 0x32a   : > { %6306 = vmatpush1.bf16.msra.mxu0 %v10310_v41 }
 0x32b   : > { %6347 = vmatpush1.bf16.msra.mxu1 %v10313_v47  ;;  %6307 = vmatprep.subr.bf16.mxu0 %v10318_v3  ;;  %v10382_v47 = vld [vmem:[%s13771_s2 + $0x100] ss:$24 sps:$4 sm:$0xff]  }
 0x32c   : > { %6348 = vmatprep.subr.bf16.mxu1 %v10321_v19 }
 0x32e   : > { %6308 = vmatpush1.bf16.msra.mxu0 %v10316_v24  ;;  %v10390_v24 = vld [vmem:[%s13771_s2 + $0xd4] ss:$24 sps:$4 sm:$0xff]  }
 0x32f   : > { %6349 = vmatpush1.bf16.msra.mxu1 %v10319_v27  ;;  %6309 = vmatprep.subr.bf16.mxu0 %v10324_v33  ;;  %v10393_v27 = vld [vmem:[%s13771_s2 + $0x3d4] ss:$24 sps:$4 sm:$0xff]   ;;  %v10388_v33 = vld [vmem:[%s13771_s2 + $0xd0] ss:$24 sps:$4 sm:$0xff]  }
 0x330   : > { %6350 = vmatprep.subr.bf16.mxu1 %v10327_v42  ;;  %v10391_v42 = vld [vmem:[%s13771_s2 + $0x3d0] ss:$24 sps:$4 sm:$0xff]  }
 0x332   : > { %6310 = vmatpush2.bf16.msra.mxu0 %v10322_v30  ;;  %v10396_v30 = vld [vmem:[%s13771_s2 + $0xa4] ss:$24 sps:$4 sm:$0xff]  }
 0x333   : > { %6351 = vmatpush2.bf16.msra.mxu1 %v10325_v25  ;;  %6311 = vmatprep.subr.bf16.mxu0 %v10330_v49  ;;  %v10399_v25 = vld [vmem:[%s13771_s2 + $0x3a4] ss:$24 sps:$4 sm:$0xff]   ;;  %v10394_v49 = vld [vmem:[%s13771_s2 + $0xa0] ss:$24 sps:$4 sm:$0xff]  }
 0x334   : > { %6352 = vmatprep.subr.bf16.mxu1 %v10333_v43  ;;  %v10397_v43 = vld [vmem:[%s13771_s2 + $0x3a0] ss:$24 sps:$4 sm:$0xff]  }
 0x336   : > { %6312 = vmatpush2.bf16.msra.mxu0 %v10328_v4  ;;  %v10402_v4 = vld [vmem:[%s13771_s2 + $0x74] ss:$24 sps:$4 sm:$0xff]  }
 0x337   : > { %6353 = vmatpush2.bf16.msra.mxu1 %v10331_v7  ;;  %6313 = vmatprep.subr.bf16.mxu0 %v10336_v59  ;;  %v10405_v7 = vld [vmem:[%s13771_s2 + $0x374] ss:$24 sps:$4 sm:$0xff]   ;;  %v10400_v59 = vld [vmem:[%s13771_s2 + $0x70] ss:$24 sps:$4 sm:$0xff]  }
 0x338   : > { %6354 = vmatprep.subr.bf16.mxu1 %v10339_v51  ;;  %v10403_v51 = vld [vmem:[%s13771_s2 + $0x370] ss:$24 sps:$4 sm:$0xff]  }
 0x33a   : > { %6314 = vmatpush2.bf16.msra.mxu0 %v10334_v23  ;;  %v10408_v23 = vld [vmem:[%s13771_s2 + $0x44] ss:$24 sps:$4 sm:$0xff]  }
 0x33b   : > { %6355 = vmatpush2.bf16.msra.mxu1 %v10337_v6  ;;  %6315 = vmatprep.subr.bf16.mxu0 %v10342_v53  ;;  %v10411_v6 = vld [vmem:[%s13771_s2 + $0x344] ss:$24 sps:$4 sm:$0xff]   ;;  %v10406_v53 = vld [vmem:[%s13771_s2 + $0x40] ss:$24 sps:$4 sm:$0xff]  }
 0x33c   : > { %6356 = vmatprep.subr.bf16.mxu1 %v10345_v11  ;;  %v10409_v11 = vld [vmem:[%s13771_s2 + $0x340] ss:$24 sps:$4 sm:$0xff]  }
 0x33e   : > { %6316 = vmatpush2.bf16.msra.mxu0 %v10340_v22  ;;  %v10414_v22 = vld [vmem:[%s13771_s2 + $0x14] ss:$24 sps:$4 sm:$0xff]  }
 0x33f   : > { %6357 = vmatpush2.bf16.msra.mxu1 %v10343_v36  ;;  %6317 = vmatprep.subr.bf16.mxu0 %v10348_v50  ;;  %v10417_v36 = vld [vmem:[%s13771_s2 + $0x314] ss:$24 sps:$4 sm:$0xff]   ;;  %v10412_v50 = vld [vmem:[%s13771_s2 + $0x10] ss:$24 sps:$4 sm:$0xff]  }
 0x340   : > { %6358 = vmatprep.subr.bf16.mxu1 %v10351_v20  ;;  %v10415_v20 = vld [vmem:[%s13771_s2 + $0x310] ss:$24 sps:$4 sm:$0xff]  }
 0x342   : > { %6318 = vmatpush2.bf16.msra.mxu0 %v10346_v1  ;;  %v10420_v1 = vld [vmem:[%s13771_s2 + $0x2e4] ss:$24 sps:$4 sm:$0xff]  }
 0x343   : > { %6359 = vmatpush2.bf16.msra.mxu1 %v10349_v54  ;;  %6319 = vmatprep.subr.bf16.mxu0 %v10354_v12  ;;  %v10423_v54 = vld [vmem:[%s13771_s2 + $0x5e4] ss:$24 sps:$4 sm:$0xff]   ;;  %v10418_v12 = vld [vmem:[%s13771_s2 + $0x2e0] ss:$24 sps:$4 sm:$0xff]  }
 0x344   : > { %6360 = vmatprep.subr.bf16.mxu1 %v10357_v40  ;;  %v10421_v40 = vld [vmem:[%s13771_s2 + $0x5e0] ss:$24 sps:$4 sm:$0xff]  }
 0x346   : > { %6320 = vmatpush2.bf16.msra.mxu0 %v10352_v52  ;;  %v10426_v52 = vld [vmem:[%s13771_s2 + $0x2b4] ss:$24 sps:$4 sm:$0xff]  }
 0x347   : > { %6361 = vmatpush2.bf16.msra.mxu1 %v10355_v9  ;;  %6321 = vmatprep.subr.bf16.mxu0 %v10360_v57  ;;  %v10429_v9 = vld [vmem:[%s13771_s2 + $0x5b4] ss:$24 sps:$4 sm:$0xff]   ;;  %v10424_v57 = vld [vmem:[%s13771_s2 + $0x2b0] ss:$24 sps:$4 sm:$0xff]  }
 0x348   : > { %6362 = vmatprep.subr.bf16.mxu1 %v10363_v38  ;;  %v10427_v38 = vld [vmem:[%s13771_s2 + $0x5b0] ss:$24 sps:$4 sm:$0xff]  }
 0x34a   : > { %6322 = vmatpush2.bf16.msra.mxu0 %v10358_v62  ;;  %v10432_v62 = vld [vmem:[%s13771_s2 + $0x284] ss:$24 sps:$4 sm:$0xff]  }
 0x34b   : > { %6363 = vmatpush2.bf16.msra.mxu1 %v10361_v14  ;;  %6323 = vmatprep.subr.bf16.mxu0 %v10366_v26  ;;  %v10435_v14 = vld [vmem:[%s13771_s2 + $0x584] ss:$24 sps:$4 sm:$0xff]   ;;  %v10430_v26 = vld [vmem:[%s13771_s2 + $0x280] ss:$24 sps:$4 sm:$0xff]  }
 0x34c   : > { %6364 = vmatprep.subr.bf16.mxu1 %v10369_v0  ;;  %v10433_v0 = vld [vmem:[%s13771_s2 + $0x580] ss:$24 sps:$4 sm:$0xff]  }
 0x34e   : > { %6324 = vmatpush2.bf16.msra.mxu0 %v10364_v55  ;;  %v10438_v55 = vld [vmem:[%s13771_s2 + $0x254] ss:$24 sps:$4 sm:$0xff]  }
 0x34f   : > { %6365 = vmatpush2.bf16.msra.mxu1 %v10367_v10  ;;  %6375 = vmatprep.subr.bf16.mxu0 %v10372_v31  ;;  %v10441_v10 = vld [vmem:[%s13771_s2 + $0x554] ss:$24 sps:$4 sm:$0xff]   ;;  %v10436_v31 = vld [vmem:[%s13771_s2 + $0x250] ss:$24 sps:$4 sm:$0xff]  }
 0x350   : > { %6416 = vmatprep.subr.bf16.mxu1 %v10375_v28  ;;  %v10439_v28 = vld [vmem:[%s13771_s2 + $0x550] ss:$24 sps:$4 sm:$0xff]  }
 0x351   : > { %v5121_v61 = vpop.f32.mrf.mxu0  ;;  %v5162_v13 = vpop.f32.mrf.mxu1  ;;  %6326 = vmatmul.mubr.bf16.vlgmr.msra.gmra.mxu0 %v12683_v48 }
 0x352   : > { %v12897_v56 = vadd.f32 %v5162_v13, %v5121_v61  ;;  %6367 = vmatmul.mubr.bf16.vlgmr.msra.gmra.mxu1 %v12688_v58  ;;  %6376 = vmatpush1.bf16.msra.mxu0 %v10370_v2  ;;  %v10444_v2 = vld [vmem:[%s13771_s2 + $0x224] ss:$24 sps:$4 sm:$0xff]   ;;  %v10445_v61 = vld [vmem:[%s13771_s2 + $0x520] ss:$24 sps:$4 sm:$0xff]   ;;  %v10450_v13 = vld [vmem:[%s13771_s2 + $0x1f4] ss:$24 sps:$4 sm:$0xff]  }
 0x353   : > { %6407 = vmatprep.mubr.bf16.mxu0 %v12490_v46  ;;  %6417 = vmatpush1.bf16.msra.mxu1 %v10373_v32  ;;  %v5123_v34 = vpop.f32.mrf.mxu0  ;;  %v5164_v37 = vpop.f32.mrf.mxu1  ;;  %v10387_v46 = vld [vmem:[%s13771_s2 + $0x404] ss:$24 sps:$4 sm:$0xff]  }
 0x354   : > { %6448 = vmatprep.mubr.bf16.mxu1 %v12496_v60  ;;  %v12911_v29 = vadd.f32 %v5164_v37, %v5123_v34  ;;  %6377 = vmatprep.subr.bf16.mxu0 %v10378_v5  ;;  %v10385_v60 = vld [vmem:[%s13771_s2 + $0x400] ss:$24 sps:$4 sm:$0xff]   ;;  %v10447_v32 = vld [vmem:[%s13771_s2 + $0x524] ss:$24 sps:$4 sm:$0xff]   ;;  %v10451_v34 = vld [vmem:[%s13771_s2 + $0x4f0] ss:$24 sps:$4 sm:$0xff]  }
 0x355   : > { %v5125_v45 = vpop.f32.mrf.mxu0  ;;  %v5166_v41 = vpop.f32.mrf.mxu1  ;;  %6418 = vmatprep.subr.bf16.mxu1 %v10381_v63  ;;  %v10442_v5 = vld [vmem:[%s13771_s2 + $0x220] ss:$24 sps:$4 sm:$0xff]   ;;  %v10453_v63 = vld [vmem:[%s13771_s2 + $0x4f4] ss:$24 sps:$4 sm:$0xff]   ;;  %v10456_v37 = vld [vmem:[%s13771_s2 + $0x1c4] ss:$24 sps:$4 sm:$0xff]  }
 0x356   : > { %6378 = vmatpush1.bf16.msra.mxu0 %v10376_v18  ;;  %v10448_v18 = vld [vmem:[%s13771_s2 + $0x1f0] ss:$24 sps:$4 sm:$0xff]   ;;  %v10462_v45 = vld [vmem:[%s13771_s2 + $0x194] ss:$24 sps:$4 sm:$0xff]  }
 0x357   : > { %6419 = vmatpush1.bf16.msra.mxu1 %v10379_v44  ;;  %v5126_v3 = vpop.f32.mrf.mxu0  ;;  %v5167_v19 = vpop.f32.mrf.mxu1  ;;  %6379 = vmatprep.subr.bf16.mxu0 %v10384_v35  ;;  %v10459_v44 = vld [vmem:[%s13771_s2 + $0x4c4] ss:$24 sps:$4 sm:$0xff]   ;;  %v10454_v35 = vld [vmem:[%s13771_s2 + $0x1c0] ss:$24 sps:$4 sm:$0xff]   ;;  %v10465_v41 = vld [vmem:[%s13771_s2 + $0x494] ss:$24 sps:$4 sm:$0xff]  }
 0x358   : > { %6420 = vmatprep.subr.bf16.mxu1 %v10387_v46  ;;  %v10457_v46 = vld [vmem:[%s13771_s2 + $0x4c0] ss:$24 sps:$4 sm:$0xff]   ;;  %v6458_v3 = vld [vmem:[#allocation2 + $0x8] sm:$0xfc] }
 0x359   : > { %v10463_v19 = vld [vmem:[%s13771_s2 + $0x490] ss:$24 sps:$4 sm:$0xff]  }
 0x35a   : > { %6380 = vmatpush1.bf16.msra.mxu0 %v10382_v47  ;;  %v10460_v47 = vld [vmem:[%s13771_s2 + $0x190] ss:$24 sps:$4 sm:$0xff]  }
 0x35b   : > { %6421 = vmatpush1.bf16.msra.mxu1 %v10385_v60  ;;  %6381 = vmatprep.subr.bf16.mxu0 %v10390_v24  ;;  %v10468_v60 = vld [vmem:[%s13771_s2 + $0xd54] ss:$24 sps:$4 sm:$0xff]   ;;  %v6460_v24 = vld [vmem:[#allocation2 + $0x18] sm:$0xfc] }
 0x35c   : > { %6422 = vmatprep.subr.bf16.mxu1 %v10393_v27  ;;  %v10471_v27 = vld [vmem:[%s13771_s2 + $0x1054] ss:$24 sps:$4 sm:$0xff]  }
 0x35e   : > { %6382 = vmatpush1.bf16.msra.mxu0 %v10388_v33  ;;  %v6462_v33 = vpack.c.bf16 %v6458_v3, %v6458_v3  ;;  %v10523_v3 = vld [vmem:[%s13771_s2 + $0x11a0] ss:$24 sps:$4 sm:$0xff]  }
 0x35f   : > { %6423 = vmatpush1.bf16.msra.mxu1 %v10391_v42  ;;  %6383 = vmatprep.subr.bf16.mxu0 %v10396_v30  ;;  %v10466_v42 = vld [vmem:[%s13771_s2 + $0xd50] ss:$24 sps:$4 sm:$0xff]   ;;  %v6464_v30 = vpack.c.bf16 %v6460_v24, %v6460_v24 }
 0x360   : > { %6424 = vmatprep.subr.bf16.mxu1 %v10399_v25  ;;  %v10469_v25 = vld [vmem:[%s13771_s2 + $0x1050] ss:$24 sps:$4 sm:$0xff]  }
 0x361   : > { %v10526_v24 = vld [vmem:[%s13771_s2 + $0xe70] ss:$24 sps:$4 sm:$0xff]  }
 0x362   : > { %6384 = vmatpush1.bf16.msra.mxu0 %v10394_v49  ;;  %v10474_v49 = vld [vmem:[%s13771_s2 + $0xd24] ss:$24 sps:$4 sm:$0xff]  }
 0x363   : > { %6425 = vmatpush1.bf16.msra.mxu1 %v10397_v43  ;;  %6385 = vmatprep.subr.bf16.mxu0 %v10402_v4  ;;  %v13094_v4 = vrot.slane %v6462_v33, 1  ;;  %v10534_v33 = vld [vmem:[%s13771_s2 + $0xe44] ss:$24 sps:$4 sm:$0xff]  }
 0x364   : > { %6426 = vmatprep.subr.bf16.mxu1 %v10405_v7  ;;  %v10477_v7 = vld [vmem:[%s13771_s2 + $0x1024] ss:$24 sps:$4 sm:$0xff]  }
 0x366   : > { %6386 = vmatpush1.bf16.msra.mxu0 %v10400_v59 }
 0x367   : > { %6427 = vmatpush1.bf16.msra.mxu1 %v10403_v51  ;;  %6387 = vmatprep.subr.bf16.mxu0 %v10408_v23  ;;  %v13100_v51 = vrot.slane %v6464_v30, 1  ;;  %v10472_v23 = vld [vmem:[%s13771_s2 + $0xd20] ss:$24 sps:$4 sm:$0xff]  }
 0x368   : > { %6428 = vmatprep.subr.bf16.mxu1 %v10411_v6  ;;  %v10532_v30 = vld [vmem:[%s13771_s2 + $0xe40] ss:$24 sps:$4 sm:$0xff]  }
 0x36a   : > { %6388 = vmatpush1.bf16.msra.mxu0 %v10406_v53  ;;  %v10475_v53 = vld [vmem:[%s13771_s2 + $0x1020] ss:$24 sps:$4 sm:$0xff]  }
 0x36b   : > { %6429 = vmatpush1.bf16.msra.mxu1 %v10409_v11  ;;  %6389 = vmatprep.subr.bf16.mxu0 %v10414_v22  ;;  %v10483_v22 = vld [vmem:[%s13771_s2 + $0xff4] ss:$24 sps:$4 sm:$0xff]  }
 0x36c   : > { %6430 = vmatprep.subr.bf16.mxu1 %v10417_v36 }
 0x36e   : > { %6390 = vmatpush1.bf16.msra.mxu0 %v10412_v50 }
 0x36f   : > { %6431 = vmatpush1.bf16.msra.mxu1 %v10415_v20  ;;  %6391 = vmatprep.subr.bf16.mxu0 %v10420_v1  ;;  %v10478_v1 = vld [vmem:[%s13771_s2 + $0xcf0] ss:$24 sps:$4 sm:$0xff]  }
 0x370   : > { %6432 = vmatprep.subr.bf16.mxu1 %v10423_v54 }
 0x372   : > { %6392 = vmatpush2.bf16.msra.mxu0 %v10418_v12  ;;  %v10481_v12 = vld [vmem:[%s13771_s2 + $0xff0] ss:$24 sps:$4 sm:$0xff]  }
 0x373   : > { %6433 = vmatpush2.bf16.msra.mxu1 %v10421_v40  ;;  %6393 = vmatprep.subr.bf16.mxu0 %v10426_v52  ;;  %v10486_v40 = vld [vmem:[%s13771_s2 + $0xcc4] ss:$24 sps:$4 sm:$0xff]  }
 0x374   : > { %6434 = vmatprep.subr.bf16.mxu1 %v10429_v9  ;;  %v10489_v9 = vld [vmem:[%s13771_s2 + $0xfc4] ss:$24 sps:$4 sm:$0xff]  }
 0x376   : > { %6394 = vmatpush2.bf16.msra.mxu0 %v10424_v57  ;;  %v10484_v57 = vld [vmem:[%s13771_s2 + $0xcc0] ss:$24 sps:$4 sm:$0xff]  }
 0x377   : > { %6435 = vmatpush2.bf16.msra.mxu1 %v10427_v38  ;;  %6395 = vmatprep.subr.bf16.mxu0 %v10432_v62  ;;  %v10487_v38 = vld [vmem:[%s13771_s2 + $0xfc0] ss:$24 sps:$4 sm:$0xff]   ;;  %v10492_v62 = vld [vmem:[%s13771_s2 + $0xc94] ss:$24 sps:$4 sm:$0xff]  }
 0x378   : > { %6436 = vmatprep.subr.bf16.mxu1 %v10435_v14  ;;  %v10495_v14 = vld [vmem:[%s13771_s2 + $0xf94] ss:$24 sps:$4 sm:$0xff]  }
 0x37a   : > { %6396 = vmatpush2.bf16.msra.mxu0 %v10430_v26  ;;  %v10490_v26 = vld [vmem:[%s13771_s2 + $0xc90] ss:$24 sps:$4 sm:$0xff]  }
 0x37b   : > { %6437 = vmatpush2.bf16.msra.mxu1 %v10433_v0  ;;  %6397 = vmatprep.subr.bf16.mxu0 %v10438_v55  ;;  %v10493_v0 = vld [vmem:[%s13771_s2 + $0xf90] ss:$24 sps:$4 sm:$0xff]   ;;  %v10498_v55 = vld [vmem:[%s13771_s2 + $0xc64] ss:$24 sps:$4 sm:$0xff]  }
 0x37c   : > { %6438 = vmatprep.subr.bf16.mxu1 %v10441_v10  ;;  %v10501_v10 = vld [vmem:[%s13771_s2 + $0xf64] ss:$24 sps:$4 sm:$0xff]  }
 0x37e   : > { %6398 = vmatpush2.bf16.msra.mxu0 %v10436_v31  ;;  %v10496_v31 = vld [vmem:[%s13771_s2 + $0xc60] ss:$24 sps:$4 sm:$0xff]  }
 0x37f   : > { %6439 = vmatpush2.bf16.msra.mxu1 %v10439_v28  ;;  %6399 = vmatprep.subr.bf16.mxu0 %v10444_v2  ;;  %v10499_v28 = vld [vmem:[%s13771_s2 + $0xf60] ss:$24 sps:$4 sm:$0xff]   ;;  %v10504_v2 = vld [vmem:[%s13771_s2 + $0xc34] ss:$24 sps:$4 sm:$0xff]  }
 0x380   : > { %6440 = vmatprep.subr.bf16.mxu1 %v10447_v32  ;;  %v10507_v32 = vld [vmem:[%s13771_s2 + $0xf34] ss:$24 sps:$4 sm:$0xff]  }
 0x382   : > { %6400 = vmatpush2.bf16.msra.mxu0 %v10442_v5  ;;  %v10502_v5 = vld [vmem:[%s13771_s2 + $0xc30] ss:$24 sps:$4 sm:$0xff]  }
 0x383   : > { %6441 = vmatpush2.bf16.msra.mxu1 %v10445_v61  ;;  %6401 = vmatprep.subr.bf16.mxu0 %v10450_v13  ;;  %v10505_v61 = vld [vmem:[%s13771_s2 + $0xf30] ss:$24 sps:$4 sm:$0xff]   ;;  %v10510_v13 = vld [vmem:[%s13771_s2 + $0xc04] ss:$24 sps:$4 sm:$0xff]  }
 0x384   : > { %6442 = vmatprep.subr.bf16.mxu1 %v10453_v63  ;;  %v10513_v63 = vld [vmem:[%s13771_s2 + $0xf04] ss:$24 sps:$4 sm:$0xff]  }
 0x386   : > { %6402 = vmatpush2.bf16.msra.mxu0 %v10448_v18  ;;  %v10508_v18 = vld [vmem:[%s13771_s2 + $0xc00] ss:$24 sps:$4 sm:$0xff]  }
 0x387   : > { %6443 = vmatpush2.bf16.msra.mxu1 %v10451_v34  ;;  %6403 = vmatprep.subr.bf16.mxu0 %v10456_v37  ;;  %v10511_v34 = vld [vmem:[%s13771_s2 + $0xf00] ss:$24 sps:$4 sm:$0xff]   ;;  %v10516_v37 = vld [vmem:[%s13771_s2 + $0xed4] ss:$24 sps:$4 sm:$0xff]  }
 0x388   : > { %6444 = vmatprep.subr.bf16.mxu1 %v10459_v44  ;;  %v10519_v44 = vld [vmem:[%s13771_s2 + $0x11d4] ss:$24 sps:$4 sm:$0xff]  }
 0x38a   : > { %6404 = vmatpush2.bf16.msra.mxu0 %v10454_v35  ;;  %v10514_v35 = vld [vmem:[%s13771_s2 + $0xed0] ss:$24 sps:$4 sm:$0xff]  }
 0x38b   : > { %6445 = vmatpush2.bf16.msra.mxu1 %v10457_v46  ;;  %6405 = vmatprep.subr.bf16.mxu0 %v10462_v45  ;;  %v10517_v46 = vld [vmem:[%s13771_s2 + $0x11d0] ss:$24 sps:$4 sm:$0xff]   ;;  %v10522_v45 = vld [vmem:[%s13771_s2 + $0xea4] ss:$24 sps:$4 sm:$0xff]  }
 0x38c   : > { %6446 = vmatprep.subr.bf16.mxu1 %v10465_v41  ;;  %v10525_v41 = vld [vmem:[%s13771_s2 + $0x11a4] ss:$24 sps:$4 sm:$0xff]  }
 0x38e   : > { %6406 = vmatpush2.bf16.msra.mxu0 %v10460_v47  ;;  %v10520_v47 = vld [vmem:[%s13771_s2 + $0xea0] ss:$24 sps:$4 sm:$0xff]  }
 0x38f   : > { %6447 = vmatpush2.bf16.msra.mxu1 %v10463_v19  ;;  %7630 = vmatprep.subr.bf16.mxu0 %v10468_v60  ;;  %v10528_v19 = vld [vmem:[%s13771_s2 + $0xe74] ss:$24 sps:$4 sm:$0xff]  }
 0x390   : > { %7671 = vmatprep.subr.bf16.mxu1 %v10471_v27  ;;  %v10531_v60 = vld [vmem:[%s13771_s2 + $0x1174] ss:$24 sps:$4 sm:$0xff]   ;;  %v10529_v27 = vld [vmem:[%s13771_s2 + $0x1170] ss:$24 sps:$4 sm:$0xff]  }
 0x391   : > { %v5203_v43 = vpop.f32.mrf.mxu0  ;;  %6408 = vmatmul.mubr.bf16.vlgmr.msra.gmra.mxu0 %v12683_v48 }
 0x392   : > { %v5244_v59 = vpop.f32.mrf.mxu1  ;;  %6449 = vmatmul.mubr.bf16.vlgmr.msra.gmra.mxu1 %v12688_v58  ;;  %7631 = vmatpush1.bf16.msra.mxu0 %v10466_v42  ;;  %v10480_v58 = vld [vmem:[%s13771_s2 + $0xcf4] ss:$24 sps:$4 sm:$0xff]   ;;  %v10537_v42 = vld [vmem:[%s13771_s2 + $0x1144] ss:$24 sps:$4 sm:$0xff]  }
 0x393   : > { %v13105_v6 = vadd.f32 %v5244_v59, %v5203_v43  ;;  %7662 = vmatprep.mubr.bf16.mxu0 %v13094_v4  ;;  %7672 = vmatpush1.bf16.msra.mxu1 %v10469_v25  ;;  %v5205_v48 = vpop.f32.mrf.mxu0  ;;  %v10535_v25 = vld [vmem:[%s13771_s2 + $0x1140] ss:$24 sps:$4 sm:$0xff]   ;;  %v10543_v43 = vld [vmem:[%s13771_s2 + $0x1114] ss:$24 sps:$4 sm:$0xff]   ;;  %v10541_v59 = vld [vmem:[%s13771_s2 + $0x1110] ss:$24 sps:$4 sm:$0xff]  }
 0x394   : > { %7703 = vmatprep.mubr.bf16.mxu1 %v13100_v51  ;;  %v5246_v11 = vpop.f32.mrf.mxu1  ;;  %7632 = vmatprep.subr.bf16.mxu0 %v10474_v49  ;;  %v10540_v49 = vld [vmem:[%s13771_s2 + $0xe14] ss:$24 sps:$4 sm:$0xff]  }
 0x395   : > { %v13118_v36 = vadd.f32 %v5246_v11, %v5205_v48  ;;  %v5207_v50 = vpop.f32.mrf.mxu0  ;;  %7673 = vmatprep.subr.bf16.mxu1 %v10477_v7  ;;  %v10538_v7 = vld [vmem:[%s13771_s2 + $0xe10] ss:$24 sps:$4 sm:$0xff]   ;;  %v10549_v48 = vld [vmem:[%s13771_s2 + $0x10e4] ss:$24 sps:$4 sm:$0xff]   ;;  %v10552_v11 = vld [vmem:[%s13771_s2 + $0xdb4] ss:$24 sps:$4 sm:$0xff]  }
 0x396   : > { %v5248_v20 = vpop.f32.mrf.mxu1  ;;  %7633 = vmatpush1.bf16.msra.mxu0 %v10472_v23  ;;  %v10546_v23 = vld [vmem:[%s13771_s2 + $0xde4] ss:$24 sps:$4 sm:$0xff]   ;;  %v10550_v50 = vld [vmem:[%s13771_s2 + $0xdb0] ss:$24 sps:$4 sm:$0xff]  }
 0x397   : > { %7674 = vmatpush1.bf16.msra.mxu1 %v10475_v53  ;;  %v5208_v54 = vpop.f32.mrf.mxu0  ;;  %7634 = vmatprep.subr.bf16.mxu0 %v10480_v58  ;;  %v10544_v53 = vld [vmem:[%s13771_s2 + $0xde0] ss:$24 sps:$4 sm:$0xff]   ;;  %v10553_v20 = vld [vmem:[%s13771_s2 + $0x10b0] ss:$24 sps:$4 sm:$0xff]  }
 0x398   : > { %v5249_v52 = vpop.f32.mrf.mxu1  ;;  %7675 = vmatprep.subr.bf16.mxu1 %v10483_v22  ;;  %v10547_v58 = vld [vmem:[%s13771_s2 + $0x10e0] ss:$24 sps:$4 sm:$0xff]   ;;  %v10555_v22 = vld [vmem:[%s13771_s2 + $0x10b4] ss:$24 sps:$4 sm:$0xff]   ;;  %v10561_v54 = vld [vmem:[%s13771_s2 + $0x1084] ss:$24 sps:$4 sm:$0xff]  }
 0x399   : > { %v10556_v52 = vld [vmem:[%s13771_s2 + $0xd80] ss:$24 sps:$4 sm:$0xff]  }
 0x39a   : > { %7635 = vmatpush1.bf16.msra.mxu0 %v10478_v1  ;;  %v10558_v1 = vld [vmem:[%s13771_s2 + $0xd84] ss:$24 sps:$4 sm:$0xff]  }
 0x39b   : > { %7676 = vmatpush1.bf16.msra.mxu1 %v10481_v12  ;;  %7636 = vmatprep.subr.bf16.mxu0 %v10486_v40  ;;  %v6457_v12 = vld [vmem:[#allocation2] sm:$0xfc]  ;;  %v6459_v40 = vld [vmem:[#allocation2 + $0x10] sm:$0xfc] }
 0x39c   : > { %7677 = vmatprep.subr.bf16.mxu1 %v10489_v9  ;;  %v10559_v9 = vld [vmem:[%s13771_s2 + $0x1080] ss:$24 sps:$4 sm:$0xff]  }
 0x39e   : > { %7637 = vmatpush1.bf16.msra.mxu0 %v10484_v57  ;;  %v6461_v57 = vpack.c.bf16 %v6457_v12, %v6457_v12  ;;  %v10610_v12 = vld [vmem:[%s13771_s2 + $0xed8] ss:$24 sps:$4 sm:$0xff]  }
 0x39f   : > { %7678 = vmatpush1.bf16.msra.mxu1 %v10487_v38  ;;  %7638 = vmatprep.subr.bf16.mxu0 %v10492_v62  ;;  %v10564_v38 = vld [vmem:[%s13771_s2 + $0xd5c] ss:$24 sps:$4 sm:$0xff]   ;;  %v6463_v62 = vpack.c.bf16 %v6459_v40, %v6459_v40  ;;  %v10613_v40 = vld [vmem:[%s13771_s2 + $0x11d8] ss:$24 sps:$4 sm:$0xff]  }
 0x3a0   : > { %7679 = vmatprep.subr.bf16.mxu1 %v10495_v14  ;;  %v10567_v14 = vld [vmem:[%s13771_s2 + $0x105c] ss:$24 sps:$4 sm:$0xff]  }
 0x3a2   : > { %7639 = vmatpush1.bf16.msra.mxu0 %v10490_v26  ;;  %v10562_v26 = vld [vmem:[%s13771_s2 + $0xd58] ss:$24 sps:$4 sm:$0xff]  }
 0x3a3   : > { %7680 = vmatpush1.bf16.msra.mxu1 %v10493_v0  ;;  %7640 = vmatprep.subr.bf16.mxu0 %v10498_v55  ;;  %v13291_v0 = vrot.slane %v6461_v57, 1  ;;  %v10565_v55 = vld [vmem:[%s13771_s2 + $0x1058] ss:$24 sps:$4 sm:$0xff]   ;;  %v10616_v57 = vld [vmem:[%s13771_s2 + $0xea8] ss:$24 sps:$4 sm:$0xff]  }
 0x3a4   : > { %7681 = vmatprep.subr.bf16.mxu1 %v10501_v10  ;;  %v13296_v10 = vrot.slane %v6463_v62, 1  ;;  %v10624_v62 = vld [vmem:[%s13771_s2 + $0xe7c] ss:$24 sps:$4 sm:$0xff]  }
 0x3a6   : > { %7641 = vmatpush1.bf16.msra.mxu0 %v10496_v31  ;;  %v10570_v31 = vld [vmem:[%s13771_s2 + $0xd2c] ss:$24 sps:$4 sm:$0xff]  }
 0x3a7   : > { %7682 = vmatpush1.bf16.msra.mxu1 %v10499_v28  ;;  %7642 = vmatprep.subr.bf16.mxu0 %v10504_v2  ;;  %v10573_v2 = vld [vmem:[%s13771_s2 + $0x102c] ss:$24 sps:$4 sm:$0xff]  }
 0x3a8   : > { %7683 = vmatprep.subr.bf16.mxu1 %v10507_v32 }
 0x3aa   : > { %7643 = vmatpush1.bf16.msra.mxu0 %v10502_v5 }
 0x3ab   : > { %7684 = vmatpush1.bf16.msra.mxu1 %v10505_v61  ;;  %7644 = vmatprep.subr.bf16.mxu0 %v10510_v13  ;;  %v10568_v61 = vld [vmem:[%s13771_s2 + $0xd28] ss:$24 sps:$4 sm:$0xff]  }
 0x3ac   : > { %7685 = vmatprep.subr.bf16.mxu1 %v10513_v63  ;;  %v10571_v63 = vld [vmem:[%s13771_s2 + $0x1028] ss:$24 sps:$4 sm:$0xff]  }
 0x3ae   : > { %7645 = vmatpush1.bf16.msra.mxu0 %v10508_v18 }
 0x3af   : > { %7686 = vmatpush1.bf16.msra.mxu1 %v10511_v34  ;;  %7646 = vmatprep.subr.bf16.mxu0 %v10516_v37 }
 0x3b0   : > { %7687 = vmatprep.subr.bf16.mxu1 %v10519_v44  ;;  %v10579_v44 = vld [vmem:[%s13771_s2 + $0xffc] ss:$24 sps:$4 sm:$0xff]  }
 0x3b2   : > { %7647 = vmatpush2.bf16.msra.mxu0 %v10514_v35 }
 0x3b3   : > { %7688 = vmatpush2.bf16.msra.mxu1 %v10517_v46  ;;  %7648 = vmatprep.subr.bf16.mxu0 %v10522_v45 }
 0x3b4   : > { %7689 = vmatprep.subr.bf16.mxu1 %v10525_v41  ;;  %v10574_v41 = vld [vmem:[%s13771_s2 + $0xcf8] ss:$24 sps:$4 sm:$0xff]  }
 0x3b6   : > { %7649 = vmatpush2.bf16.msra.mxu0 %v10520_v47 }
 0x3b7   : > { %7690 = vmatpush2.bf16.msra.mxu1 %v10523_v3  ;;  %7650 = vmatprep.subr.bf16.mxu0 %v10528_v19  ;;  %v10582_v3 = vld [vmem:[%s13771_s2 + $0xccc] ss:$24 sps:$4 sm:$0xff]  }
 0x3b8   : > { %7691 = vmatprep.subr.bf16.mxu1 %v10531_v60  ;;  %v10585_v60 = vld [vmem:[%s13771_s2 + $0xfcc] ss:$24 sps:$4 sm:$0xff]  }
 0x3ba   : > { %7651 = vmatpush2.bf16.msra.mxu0 %v10526_v24  ;;  %v10580_v24 = vld [vmem:[%s13771_s2 + $0xcc8] ss:$24 sps:$4 sm:$0xff]  }
 0x3bb   : > { %7692 = vmatpush2.bf16.msra.mxu1 %v10529_v27  ;;  %7652 = vmatprep.subr.bf16.mxu0 %v10534_v33  ;;  %v10583_v27 = vld [vmem:[%s13771_s2 + $0xfc8] ss:$24 sps:$4 sm:$0xff]   ;;  %v10588_v33 = vld [vmem:[%s13771_s2 + $0xc9c] ss:$24 sps:$4 sm:$0xff]  }
 0x3bc   : > { %7693 = vmatprep.subr.bf16.mxu1 %v10537_v42  ;;  %v10591_v42 = vld [vmem:[%s13771_s2 + $0xf9c] ss:$24 sps:$4 sm:$0xff]  }
 0x3be   : > { %7653 = vmatpush2.bf16.msra.mxu0 %v10532_v30  ;;  %v10586_v30 = vld [vmem:[%s13771_s2 + $0xc98] ss:$24 sps:$4 sm:$0xff]  }
 0x3bf   : > { %7694 = vmatpush2.bf16.msra.mxu1 %v10535_v25  ;;  %7654 = vmatprep.subr.bf16.mxu0 %v10540_v49  ;;  %v10589_v25 = vld [vmem:[%s13771_s2 + $0xf98] ss:$24 sps:$4 sm:$0xff]   ;;  %v10594_v49 = vld [vmem:[%s13771_s2 + $0xc6c] ss:$24 sps:$4 sm:$0xff]  }
 0x3c0   : > { %7695 = vmatprep.subr.bf16.mxu1 %v10543_v43  ;;  %v10597_v43 = vld [vmem:[%s13771_s2 + $0xf6c] ss:$24 sps:$4 sm:$0xff]  }
 0x3c2   : > { %7655 = vmatpush2.bf16.msra.mxu0 %v10538_v7  ;;  %v10592_v7 = vld [vmem:[%s13771_s2 + $0xc68] ss:$24 sps:$4 sm:$0xff]  }
 0x3c3   : > { %7696 = vmatpush2.bf16.msra.mxu1 %v10541_v59  ;;  %7656 = vmatprep.subr.bf16.mxu0 %v10546_v23  ;;  %v10595_v59 = vld [vmem:[%s13771_s2 + $0xf68] ss:$24 sps:$4 sm:$0xff]   ;;  %v10600_v23 = vld [vmem:[%s13771_s2 + $0xc3c] ss:$24 sps:$4 sm:$0xff]  }
 0x3c4   : > { %7697 = vmatprep.subr.bf16.mxu1 %v10549_v48  ;;  %v10603_v48 = vld [vmem:[%s13771_s2 + $0xf3c] ss:$24 sps:$4 sm:$0xff]  }
 0x3c6   : > { %7657 = vmatpush2.bf16.msra.mxu0 %v10544_v53  ;;  %v10598_v53 = vld [vmem:[%s13771_s2 + $0xc38] ss:$24 sps:$4 sm:$0xff]  }
 0x3c7   : > { %7698 = vmatpush2.bf16.msra.mxu1 %v10547_v58  ;;  %7658 = vmatprep.subr.bf16.mxu0 %v10552_v11  ;;  %v10601_v58 = vld [vmem:[%s13771_s2 + $0xf38] ss:$24 sps:$4 sm:$0xff]   ;;  %v10606_v11 = vld [vmem:[%s13771_s2 + $0xc0c] ss:$24 sps:$4 sm:$0xff]  }
 0x3c8   : > { %7699 = vmatprep.subr.bf16.mxu1 %v10555_v22  ;;  %v10609_v22 = vld [vmem:[%s13771_s2 + $0xf0c] ss:$24 sps:$4 sm:$0xff]  }
 0x3ca   : > { %7659 = vmatpush2.bf16.msra.mxu0 %v10550_v50  ;;  %v10604_v50 = vld [vmem:[%s13771_s2 + $0xc08] ss:$24 sps:$4 sm:$0xff]  }
 0x3cb   : > { %7700 = vmatpush2.bf16.msra.mxu1 %v10553_v20  ;;  %7660 = vmatprep.subr.bf16.mxu0 %v10558_v1  ;;  %v10607_v20 = vld [vmem:[%s13771_s2 + $0xf08] ss:$24 sps:$4 sm:$0xff]   ;;  %v10612_v1 = vld [vmem:[%s13771_s2 + $0xedc] ss:$24 sps:$4 sm:$0xff]  }
 0x3cc   : > { %7701 = vmatprep.subr.bf16.mxu1 %v10561_v54  ;;  %v10615_v54 = vld [vmem:[%s13771_s2 + $0x11dc] ss:$24 sps:$4 sm:$0xff]  }
 0x3ce   : > { %7661 = vmatpush2.bf16.msra.mxu0 %v10556_v52  ;;  %v10618_v52 = vld [vmem:[%s13771_s2 + $0xeac] ss:$24 sps:$4 sm:$0xff]  }
 0x3cf   : > { %7702 = vmatpush2.bf16.msra.mxu1 %v10559_v9  ;;  %7712 = vmatprep.subr.bf16.mxu0 %v10564_v38  ;;  %v10621_v9 = vld [vmem:[%s13771_s2 + $0x11ac] ss:$24 sps:$4 sm:$0xff]   ;;  %v10619_v38 = vld [vmem:[%s13771_s2 + $0x11a8] ss:$24 sps:$4 sm:$0xff]  }
 0x3d0   : > { %7753 = vmatprep.subr.bf16.mxu1 %v10567_v14  ;;  %v10627_v14 = vld [vmem:[%s13771_s2 + $0x117c] ss:$24 sps:$4 sm:$0xff]  }
 0x3d1   : > { %v6245_v28 = vpop.f32.mrf.mxu0  ;;  %7663 = vmatmul.mubr.bf16.vlgmr.msra.gmra.mxu0 %v13291_v0 }
 0x3d2   : > { %v6246_v32 = vadd.f32 %v6245_v28, %v12698_v8  ;;  %v6286_v5 = vpop.f32.mrf.mxu1  ;;  %7704 = vmatmul.mubr.bf16.vlgmr.msra.gmra.mxu1 %v13296_v10  ;;  %7713 = vmatpush1.bf16.msra.mxu0 %v10562_v26  ;;  %v10576_v8 = vld [vmem:[%s13771_s2 + $0xcfc] ss:$24 sps:$4 sm:$0xff]   ;;  %v10622_v26 = vld [vmem:[%s13771_s2 + $0xe78] ss:$24 sps:$4 sm:$0xff]   ;;  %v10633_v28 = vld [vmem:[%s13771_s2 + $0x114c] ss:$24 sps:$4 sm:$0xff]  }
 0x3d3   : > { %7744 = vmatprep.mubr.bf16.mxu0 %v13094_v4  ;;  %7754 = vmatpush1.bf16.msra.mxu1 %v10565_v55  ;;  %v6247_v13 = vpop.f32.mrf.mxu0  ;;  %v10625_v55 = vld [vmem:[%s13771_s2 + $0x1178] ss:$24 sps:$4 sm:$0xff]  }
 0x3d4   : > { %v13317_v18 = vadd.f32 %v6286_v5, %v6246_v32  ;;  %7785 = vmatprep.mubr.bf16.mxu1 %v13100_v51  ;;  %v6248_v34 = vadd.f32 %v6247_v13, %v12711_v17  ;;  %v6288_v37 = vpop.f32.mrf.mxu1  ;;  %7714 = vmatprep.subr.bf16.mxu0 %v10570_v31  ;;  %v10577_v17 = vld [vmem:[%s13771_s2 + $0xff8] ss:$24 sps:$4 sm:$0xff]   ;;  %v10630_v31 = vld [vmem:[%s13771_s2 + $0xe4c] ss:$24 sps:$4 sm:$0xff]   ;;  %v10631_v32 = vld [vmem:[%s13771_s2 + $0x1148] ss:$24 sps:$4 sm:$0xff]  }
 0x3d5   : > { %v6249_v35 = vpop.f32.mrf.mxu0  ;;  %7755 = vmatprep.subr.bf16.mxu1 %v10573_v2  ;;  %v10628_v2 = vld [vmem:[%s13771_s2 + $0xe48] ss:$24 sps:$4 sm:$0xff]   ;;  %v10636_v5 = vld [vmem:[%s13771_s2 + $0xe1c] ss:$24 sps:$4 sm:$0xff]   ;;  %v10634_v13 = vld [vmem:[%s13771_s2 + $0xe18] ss:$24 sps:$4 sm:$0xff]  }
 0x3d6   : > { %v13324_v46 = vadd.f32 %v6288_v37, %v6248_v34  ;;  %v6290_v45 = vpop.f32.mrf.mxu1  ;;  %7715 = vmatpush1.bf16.msra.mxu0 %v10568_v61  ;;  %v10639_v61 = vld [vmem:[%s13771_s2 + $0x111c] ss:$24 sps:$4 sm:$0xff]   ;;  %v10645_v34 = vld [vmem:[%s13771_s2 + $0x10ec] ss:$24 sps:$4 sm:$0xff]   ;;  %v10640_v37 = vld [vmem:[%s13771_s2 + $0xde8] ss:$24 sps:$4 sm:$0xff]  }
 0x3d7   : > { %7756 = vmatpush1.bf16.msra.mxu1 %v10571_v63  ;;  %v6250_v47 = vpop.f32.mrf.mxu0  ;;  %7716 = vmatprep.subr.bf16.mxu0 %v10576_v8  ;;  %v10637_v63 = vld [vmem:[%s13771_s2 + $0x1118] ss:$24 sps:$4 sm:$0xff]   ;;  %v10642_v8 = vld [vmem:[%s13771_s2 + $0xdec] ss:$24 sps:$4 sm:$0xff]   ;;  %v10648_v35 = vld [vmem:[%s13771_s2 + $0xdbc] ss:$24 sps:$4 sm:$0xff]  }
 0x3d8   : > { %v6291_v19 = vpop.f32.mrf.mxu1  ;;  %7757 = vmatprep.subr.bf16.mxu1 %v10579_v44  ;;  %v10643_v44 = vld [vmem:[%s13771_s2 + $0x10e8] ss:$24 sps:$4 sm:$0xff]   ;;  %v10651_v45 = vld [vmem:[%s13771_s2 + $0x10bc] ss:$24 sps:$4 sm:$0xff]   ;;  %v10649_v47 = vld [vmem:[%s13771_s2 + $0x10b8] ss:$24 sps:$4 sm:$0xff]  }
 0x3d9   : > { %v10652_v19 = vld [vmem:[%s13771_s2 + $0xd88] ss:$24 sps:$4 sm:$0xff]  }
 0x3da   : > { %7717 = vmatpush1.bf16.msra.mxu0 %v10574_v41  ;;  %v10646_v41 = vld [vmem:[%s13771_s2 + $0xdb8] ss:$24 sps:$4 sm:$0xff]  }
 0x3db   : > { %7758 = vmatpush1.bf16.msra.mxu1 %v10577_v17  ;;  %7718 = vmatprep.subr.bf16.mxu0 %v10582_v3  ;;  %v10654_v17 = vld [vmem:[%s13771_s2 + $0xd8c] ss:$24 sps:$4 sm:$0xff]  }
 0x3dc   : > { %7759 = vmatprep.subr.bf16.mxu1 %v10585_v60  ;;  %v10657_v3 = vld [vmem:[%s13771_s2 + $0x108c] ss:$24 sps:$4 sm:$0xff]   ;;  %v10655_v60 = vld [vmem:[%s13771_s2 + $0x1088] ss:$24 sps:$4 sm:$0xff]  }
 0x3de   : > { %7719 = vmatpush1.bf16.msra.mxu0 %v10580_v24  ;;  %v10660_v24 = vld [vmem:[%s13771_s2 + $0xd64] ss:$24 sps:$4 sm:$0xff]  }
 0x3df   : > { %7760 = vmatpush1.bf16.msra.mxu1 %v10583_v27  ;;  %7720 = vmatprep.subr.bf16.mxu0 %v10588_v33  ;;  %v10663_v27 = vld [vmem:[%s13771_s2 + $0x1064] ss:$24 sps:$4 sm:$0xff]   ;;  %v10658_v33 = vld [vmem:[%s13771_s2 + $0xd60] ss:$24 sps:$4 sm:$0xff]  }
 0x3e0   : > { %7761 = vmatprep.subr.bf16.mxu1 %v10591_v42  ;;  %v10661_v42 = vld [vmem:[%s13771_s2 + $0x1060] ss:$24 sps:$4 sm:$0xff]  }
 0x3e2   : > { %7721 = vmatpush1.bf16.msra.mxu0 %v10586_v30  ;;  %v10666_v30 = vld [vmem:[%s13771_s2 + $0xd34] ss:$24 sps:$4 sm:$0xff]  }
 0x3e3   : > { %7762 = vmatpush1.bf16.msra.mxu1 %v10589_v25  ;;  %7722 = vmatprep.subr.bf16.mxu0 %v10594_v49  ;;  %v10669_v49 = vld [vmem:[%s13771_s2 + $0x1034] ss:$24 sps:$4 sm:$0xff]  }
 0x3e4   : > { %7763 = vmatprep.subr.bf16.mxu1 %v10597_v43 }
 0x3e6   : > { %7723 = vmatpush1.bf16.msra.mxu0 %v10592_v7 }
 0x3e7   : > { %7764 = vmatpush1.bf16.msra.mxu1 %v10595_v59  ;;  %7724 = vmatprep.subr.bf16.mxu0 %v10600_v23  ;;  %v10664_v59 = vld [vmem:[%s13771_s2 + $0xd30] ss:$24 sps:$4 sm:$0xff]  }
 0x3e8   : > { %7765 = vmatprep.subr.bf16.mxu1 %v10603_v48  ;;  %v10667_v48 = vld [vmem:[%s13771_s2 + $0x1030] ss:$24 sps:$4 sm:$0xff]  }
 0x3ea   : > { %7725 = vmatpush1.bf16.msra.mxu0 %v10598_v53 }
 0x3eb   : > { %7766 = vmatpush1.bf16.msra.mxu1 %v10601_v58  ;;  %7726 = vmatprep.subr.bf16.mxu0 %v10606_v11 }
 0x3ec   : > { %7767 = vmatprep.subr.bf16.mxu1 %v10609_v22 }
 0x3ee   : > { %7727 = vmatpush1.bf16.msra.mxu0 %v10604_v50 }
 0x3ef   : > { %7768 = vmatpush1.bf16.msra.mxu1 %v10607_v20  ;;  %7728 = vmatprep.subr.bf16.mxu0 %v10612_v1  ;;  %v10670_v1 = vld [vmem:[%s13771_s2 + $0xd00] ss:$24 sps:$4 sm:$0xff]  }
 0x3f0   : > { %7769 = vmatprep.subr.bf16.mxu1 %v10615_v54  ;;  %v10678_v54 = vld [vmem:[%s13771_s2 + $0xcd4] ss:$24 sps:$4 sm:$0xff]  }
 0x3f2   : > { %7729 = vmatpush2.bf16.msra.mxu0 %v10610_v12 }
 0x3f3   : > { %7770 = vmatpush2.bf16.msra.mxu1 %v10613_v40  ;;  %7730 = vmatprep.subr.bf16.mxu0 %v10618_v52  ;;  %v10681_v40 = vld [vmem:[%s13771_s2 + $0xfd4] ss:$24 sps:$4 sm:$0xff]   ;;  %v10676_v52 = vld [vmem:[%s13771_s2 + $0xcd0] ss:$24 sps:$4 sm:$0xff]  }
 0x3f4   : > { %7771 = vmatprep.subr.bf16.mxu1 %v10621_v9  ;;  %v10679_v9 = vld [vmem:[%s13771_s2 + $0xfd0] ss:$24 sps:$4 sm:$0xff]  }
 0x3f6   : > { %7731 = vmatpush2.bf16.msra.mxu0 %v10616_v57  ;;  %v10684_v57 = vld [vmem:[%s13771_s2 + $0xca4] ss:$24 sps:$4 sm:$0xff]  }
 0x3f7   : > { %7772 = vmatpush2.bf16.msra.mxu1 %v10619_v38  ;;  %7732 = vmatprep.subr.bf16.mxu0 %v10624_v62  ;;  %v10687_v38 = vld [vmem:[%s13771_s2 + $0xfa4] ss:$24 sps:$4 sm:$0xff]   ;;  %v10682_v62 = vld [vmem:[%s13771_s2 + $0xca0] ss:$24 sps:$4 sm:$0xff]  }
 0x3f8   : > { %7773 = vmatprep.subr.bf16.mxu1 %v10627_v14  ;;  %v10685_v14 = vld [vmem:[%s13771_s2 + $0xfa0] ss:$24 sps:$4 sm:$0xff]  }
 0x3fa   : > { %7733 = vmatpush2.bf16.msra.mxu0 %v10622_v26  ;;  %v10690_v26 = vld [vmem:[%s13771_s2 + $0xc74] ss:$24 sps:$4 sm:$0xff]  }
 0x3fb   : > { %7774 = vmatpush2.bf16.msra.mxu1 %v10625_v55  ;;  %7734 = vmatprep.subr.bf16.mxu0 %v10630_v31  ;;  %v10693_v55 = vld [vmem:[%s13771_s2 + $0xf74] ss:$24 sps:$4 sm:$0xff]   ;;  %v10688_v31 = vld [vmem:[%s13771_s2 + $0xc70] ss:$24 sps:$4 sm:$0xff]  }
 0x3fc   : > { %7775 = vmatprep.subr.bf16.mxu1 %v10633_v28  ;;  %v10691_v28 = vld [vmem:[%s13771_s2 + $0xf70] ss:$24 sps:$4 sm:$0xff]  }
 0x3fe   : > { %7735 = vmatpush2.bf16.msra.mxu0 %v10628_v2  ;;  %v10696_v2 = vld [vmem:[%s13771_s2 + $0xc44] ss:$24 sps:$4 sm:$0xff]  }
 0x3ff   : > { %7776 = vmatpush2.bf16.msra.mxu1 %v10631_v32  ;;  %7736 = vmatprep.subr.bf16.mxu0 %v10636_v5  ;;  %v10699_v32 = vld [vmem:[%s13771_s2 + $0xf44] ss:$24 sps:$4 sm:$0xff]   ;;  %v10694_v5 = vld [vmem:[%s13771_s2 + $0xc40] ss:$24 sps:$4 sm:$0xff]  }
 0x400   : > { %7777 = vmatprep.subr.bf16.mxu1 %v10639_v61  ;;  %v10697_v61 = vld [vmem:[%s13771_s2 + $0xf40] ss:$24 sps:$4 sm:$0xff]  }
 0x402   : > { %7737 = vmatpush2.bf16.msra.mxu0 %v10634_v13  ;;  %v10702_v13 = vld [vmem:[%s13771_s2 + $0xc14] ss:$24 sps:$4 sm:$0xff]  }
 0x403   : > { %7778 = vmatpush2.bf16.msra.mxu1 %v10637_v63  ;;  %7738 = vmatprep.subr.bf16.mxu0 %v10642_v8  ;;  %v10705_v63 = vld [vmem:[%s13771_s2 + $0xf14] ss:$24 sps:$4 sm:$0xff]   ;;  %v10700_v8 = vld [vmem:[%s13771_s2 + $0xc10] ss:$24 sps:$4 sm:$0xff]  }
 0x404   : > { %7779 = vmatprep.subr.bf16.mxu1 %v10645_v34  ;;  %v10703_v34 = vld [vmem:[%s13771_s2 + $0xf10] ss:$24 sps:$4 sm:$0xff]  }
 0x406   : > { %7739 = vmatpush2.bf16.msra.mxu0 %v10640_v37  ;;  %v10708_v37 = vld [vmem:[%s13771_s2 + $0xee4] ss:$24 sps:$4 sm:$0xff]  }
 0x407   : > { %7780 = vmatpush2.bf16.msra.mxu1 %v10643_v44  ;;  %7740 = vmatprep.subr.bf16.mxu0 %v10648_v35  ;;  %v10711_v44 = vld [vmem:[%s13771_s2 + $0x11e4] ss:$24 sps:$4 sm:$0xff]   ;;  %v10706_v35 = vld [vmem:[%s13771_s2 + $0xee0] ss:$24 sps:$4 sm:$0xff]  }
 0x408   : > { %7781 = vmatprep.subr.bf16.mxu1 %v10651_v45  ;;  %v10709_v45 = vld [vmem:[%s13771_s2 + $0x11e0] ss:$24 sps:$4 sm:$0xff]  }
 0x40a   : > { %7741 = vmatpush2.bf16.msra.mxu0 %v10646_v41  ;;  %v10714_v41 = vld [vmem:[%s13771_s2 + $0xeb4] ss:$24 sps:$4 sm:$0xff]  }
 0x40b   : > { %7782 = vmatpush2.bf16.msra.mxu1 %v10649_v47  ;;  %7742 = vmatprep.subr.bf16.mxu0 %v10654_v17  ;;  %v10717_v47 = vld [vmem:[%s13771_s2 + $0x11b4] ss:$24 sps:$4 sm:$0xff]   ;;  %v10712_v17 = vld [vmem:[%s13771_s2 + $0xeb0] ss:$24 sps:$4 sm:$0xff]  }
 0x40c   : > { %7783 = vmatprep.subr.bf16.mxu1 %v10657_v3  ;;  %v10715_v3 = vld [vmem:[%s13771_s2 + $0x11b0] ss:$24 sps:$4 sm:$0xff]  }
 0x40e   : > { %7743 = vmatpush2.bf16.msra.mxu0 %v10652_v19  ;;  %v10720_v19 = vld [vmem:[%s13771_s2 + $0xe84] ss:$24 sps:$4 sm:$0xff]  }
 0x40f   : > { %7784 = vmatpush2.bf16.msra.mxu1 %v10655_v60  ;;  %7794 = vmatprep.subr.bf16.mxu0 %v10660_v24  ;;  %v10723_v60 = vld [vmem:[%s13771_s2 + $0x1184] ss:$24 sps:$4 sm:$0xff]   ;;  %v10718_v24 = vld [vmem:[%s13771_s2 + $0xe80] ss:$24 sps:$4 sm:$0xff]  }
 0x410   : > { %7835 = vmatprep.subr.bf16.mxu1 %v10663_v27  ;;  %v10721_v27 = vld [vmem:[%s13771_s2 + $0x1180] ss:$24 sps:$4 sm:$0xff]  }
 0x411   : > { %v6327_v25 = vpop.f32.mrf.mxu0  ;;  %7745 = vmatmul.mubr.bf16.vlgmr.msra.gmra.mxu0 %v13291_v0 }
 0x412   : > { %v6328_v43 = vadd.f32 %v6327_v25, %v12897_v56  ;;  %v6368_v7 = vpop.f32.mrf.mxu1  ;;  %7786 = vmatmul.mubr.bf16.vlgmr.msra.gmra.mxu1 %v13296_v10  ;;  %7795 = vmatpush1.bf16.msra.mxu0 %v10658_v33  ;;  %v10672_v56 = vld [vmem:[%s13771_s2 + $0xd04] ss:$24 sps:$4 sm:$0xff]   ;;  %v10726_v33 = vld [vmem:[%s13771_s2 + $0xe54] ss:$24 sps:$4 sm:$0xff]   ;;  %v10727_v25 = vld [vmem:[%s13771_s2 + $0x1150] ss:$24 sps:$4 sm:$0xff]  }
 0x413   : > { %7826 = vmatprep.mubr.bf16.mxu0 %v13094_v4  ;;  %7836 = vmatpush1.bf16.msra.mxu1 %v10661_v42  ;;  %v6329_v23 = vpop.f32.mrf.mxu0  ;;  %v10675_v4 = vld [vmem:[%s13771_s2 + $0x1004] ss:$24 sps:$4 sm:$0xff]   ;;  %v10729_v42 = vld [vmem:[%s13771_s2 + $0x1154] ss:$24 sps:$4 sm:$0xff]  }
 0x414   : > { %v13519_v53 = vadd.f32 %v6368_v7, %v6328_v43  ;;  %7867 = vmatprep.mubr.bf16.mxu1 %v13100_v51  ;;  %v6330_v58 = vadd.f32 %v6329_v23, %v12911_v29  ;;  %v6370_v11 = vpop.f32.mrf.mxu1  ;;  %7796 = vmatprep.subr.bf16.mxu0 %v10666_v30  ;;  %v10673_v29 = vld [vmem:[%s13771_s2 + $0x1000] ss:$24 sps:$4 sm:$0xff]   ;;  %v10724_v30 = vld [vmem:[%s13771_s2 + $0xe50] ss:$24 sps:$4 sm:$0xff]   ;;  %v10735_v43 = vld [vmem:[%s13771_s2 + $0x1124] ss:$24 sps:$4 sm:$0xff]  }
 0x415   : > { %v6331_v22 = vpop.f32.mrf.mxu0  ;;  %7837 = vmatprep.subr.bf16.mxu1 %v10669_v49  ;;  %v10732_v49 = vld [vmem:[%s13771_s2 + $0xe24] ss:$24 sps:$4 sm:$0xff]   ;;  %v10730_v7 = vld [vmem:[%s13771_s2 + $0xe20] ss:$24 sps:$4 sm:$0xff]   ;;  %v10738_v23 = vld [vmem:[%s13771_s2 + $0xdf4] ss:$24 sps:$4 sm:$0xff]  }
 0x416   : > { %v13526_v50 = vadd.f32 %v6370_v11, %v6330_v58  ;;  %v6372_v20 = vpop.f32.mrf.mxu1  ;;  %7797 = vmatpush1.bf16.msra.mxu0 %v10664_v59  ;;  %v10733_v59 = vld [vmem:[%s13771_s2 + $0x1120] ss:$24 sps:$4 sm:$0xff]   ;;  %v10739_v58 = vld [vmem:[%s13771_s2 + $0x10f0] ss:$24 sps:$4 sm:$0xff]   ;;  %v10744_v11 = vld [vmem:[%s13771_s2 + $0xdc4] ss:$24 sps:$4 sm:$0xff]  }
 0x417   : > { %7838 = vmatpush1.bf16.msra.mxu1 %v10667_v48  ;;  %v6332_v51 = vpop.f32.mrf.mxu0  ;;  %7798 = vmatprep.subr.bf16.mxu0 %v10672_v56  ;;  %v10741_v48 = vld [vmem:[%s13771_s2 + $0x10f4] ss:$24 sps:$4 sm:$0xff]   ;;  %v10736_v56 = vld [vmem:[%s13771_s2 + $0xdf0] ss:$24 sps:$4 sm:$0xff]   ;;  %v10742_v22 = vld [vmem:[%s13771_s2 + $0xdc0] ss:$24 sps:$4 sm:$0xff]  }
 0x418   : > { %v6373_v12 = vpop.f32.mrf.mxu1  ;;  %7839 = vmatprep.subr.bf16.mxu1 %v10675_v4  ;;  %v10747_v4 = vld [vmem:[%s13771_s2 + $0x10c4] ss:$24 sps:$4 sm:$0xff]   ;;  %v10745_v20 = vld [vmem:[%s13771_s2 + $0x10c0] ss:$24 sps:$4 sm:$0xff]   ;;  %v10753_v51 = vld [vmem:[%s13771_s2 + $0x1094] ss:$24 sps:$4 sm:$0xff]  }
 0x41a   : > { %7799 = vmatpush1.bf16.msra.mxu0 %v10670_v1  ;;  %v10750_v1 = vld [vmem:[%s13771_s2 + $0xd94] ss:$24 sps:$4 sm:$0xff]  }
 0x41b   : > { %7840 = vmatpush1.bf16.msra.mxu1 %v10673_v29  ;;  %7800 = vmatprep.subr.bf16.mxu0 %v10678_v54  ;;  %v10748_v29 = vld [vmem:[%s13771_s2 + $0xd90] ss:$24 sps:$4 sm:$0xff]  }
 0x41c   : > { %7841 = vmatprep.subr.bf16.mxu1 %v10681_v40  ;;  %v10751_v54 = vld [vmem:[%s13771_s2 + $0x1090] ss:$24 sps:$4 sm:$0xff]  }
 0x41e   : > { %7801 = vmatpush1.bf16.msra.mxu0 %v10676_v52 }
 0x41f   : > { %7842 = vmatpush1.bf16.msra.mxu1 %v10679_v9  ;;  %7802 = vmatprep.subr.bf16.mxu0 %v10684_v57 }
 0x420   : > { %7843 = vmatprep.subr.bf16.mxu1 %v10687_v38 }
 0x422   : > { %7803 = vmatpush1.bf16.msra.mxu0 %v10682_v62 }
 0x423   : > { %7844 = vmatpush1.bf16.msra.mxu1 %v10685_v14  ;;  %7804 = vmatprep.subr.bf16.mxu0 %v10690_v26 }
 0x424   : > { %7845 = vmatprep.subr.bf16.mxu1 %v10693_v55 }
 0x426   : > { %7805 = vmatpush1.bf16.msra.mxu0 %v10688_v31 }
 0x427   : > { %7846 = vmatpush1.bf16.msra.mxu1 %v10691_v28  ;;  %7806 = vmatprep.subr.bf16.mxu0 %v10696_v2 }
 0x428   : > { %7847 = vmatprep.subr.bf16.mxu1 %v10699_v32 }
 0x42a   : > { %7807 = vmatpush1.bf16.msra.mxu0 %v10694_v5 }
 0x42b   : > { %7848 = vmatpush1.bf16.msra.mxu1 %v10697_v61  ;;  %7808 = vmatprep.subr.bf16.mxu0 %v10702_v13 }
 0x42c   : > { %7849 = vmatprep.subr.bf16.mxu1 %v10705_v63 }
 0x42e   : > { %7809 = vmatpush1.bf16.msra.mxu0 %v10700_v8 }
 0x42f   : > { %7850 = vmatpush1.bf16.msra.mxu1 %v10703_v34  ;;  %7810 = vmatprep.subr.bf16.mxu0 %v10708_v37  ;;  %v13703_v37 = vld [vmem:[%s13773_s4] ss:$4 sm:$0x3f] }
 0x430   : > { %7851 = vmatprep.subr.bf16.mxu1 %v10711_v44  ;;  %v13864_v44 = vld [vmem:[#allocation23_spill] sm:$0xff] }
 0x432   : > { %7811 = vmatpush2.bf16.msra.mxu0 %v10706_v35  ;;  %v7887_v35 = vrot.slane %v13703_v37, %v13864_v44 }
 0x433   : > { %7852 = vmatpush2.bf16.msra.mxu1 %v10709_v45  ;;  %7812 = vmatprep.subr.bf16.mxu0 %v10714_v41 }
 0x434   : > { %7853 = vmatprep.subr.bf16.mxu1 %v10717_v47 }
 0x436   : > { %7813 = vmatpush2.bf16.msra.mxu0 %v10712_v17 }
 0x437   : > { %7854 = vmatpush2.bf16.msra.mxu1 %v10715_v3  ;;  %7814 = vmatprep.subr.bf16.mxu0 %v10720_v19 }
 0x438   : > { %7855 = vmatprep.subr.bf16.mxu1 %v10723_v60  ;;  %v13717_v60 = vld [vmem:[%s13773_s4 + $0x2] ss:$4 sm:$0x3f] }
 0x43a   : > { %7815 = vmatpush2.bf16.msra.mxu0 %v10718_v24 }
 0x43b   : > { %7856 = vmatpush2.bf16.msra.mxu1 %v10721_v27  ;;  %7816 = vmatprep.subr.bf16.mxu0 %v10726_v33 }
 0x43c   : > { %7857 = vmatprep.subr.bf16.mxu1 %v10729_v42  ;;  %v7899_v42 = vrot.slane %v13703_v37, %v11788_v39 }
 0x43e   : > { %7817 = vmatpush2.bf16.msra.mxu0 %v10724_v30 }
 0x43f   : > { %7858 = vmatpush2.bf16.msra.mxu1 %v10727_v25  ;;  %7818 = vmatprep.subr.bf16.mxu0 %v10732_v49 }
 0x440   : > { %7859 = vmatprep.subr.bf16.mxu1 %v10735_v43  ;;  %v7971_v43 = vrot.slane %v13717_v60, %v13864_v44 }
 0x442   : > { %7819 = vmatpush2.bf16.msra.mxu0 %v10730_v7 }
 0x443   : > { %7860 = vmatpush2.bf16.msra.mxu1 %v10733_v59  ;;  %7820 = vmatprep.subr.bf16.mxu0 %v10738_v23 }
 0x444   : > { %7861 = vmatprep.subr.bf16.mxu1 %v10741_v48 }
 0x446   : > { %7821 = vmatpush2.bf16.msra.mxu0 %v10736_v56 }
 0x447   : > { %7862 = vmatpush2.bf16.msra.mxu1 %v10739_v58  ;;  %7822 = vmatprep.subr.bf16.mxu0 %v10744_v11  ;;  %v7983_v11 = vrot.slane %v13717_v60, %v11788_v39 }
 0x448   : > { %7863 = vmatprep.subr.bf16.mxu1 %v10747_v4 }
 0x44a   : > { %7823 = vmatpush2.bf16.msra.mxu0 %v10742_v22 }
 0x44b   : > { %7864 = vmatpush2.bf16.msra.mxu1 %v10745_v20  ;;  %7824 = vmatprep.subr.bf16.mxu0 %v10750_v1 }
 0x44c   : > { %7865 = vmatprep.subr.bf16.mxu1 %v10753_v51 }
 0x44e   : > { %7825 = vmatpush2.bf16.msra.mxu0 %v10748_v29 }
 0x44f   : > { %7866 = vmatpush2.bf16.msra.mxu1 %v10751_v54 }
 0x451   : > { %v6409_v12 = vpop.f32.mrf.mxu0  ;;  %7827 = vmatmul.mubr.bf16.vlgmr.msra.gmra.mxu0 %v13291_v0 }
 0x452   : > { %v6410_v40 = vadd.f32 %v6409_v12, %v13105_v6  ;;  %v6450_v52 = vpop.f32.mrf.mxu1  ;;  %7868 = vmatmul.mubr.bf16.vlgmr.msra.gmra.mxu1 %v13296_v10  ;;  %v13865_v12 = vld [vmem:[#allocation24_spill] sm:$0xff] }
 0x453   : > { %v6411_v9 = vpop.f32.mrf.mxu0 }
 0x454   : > { %v13693_v57 = vadd.f32 %v6450_v52, %v6410_v40  ;;  %v6412_v38 = vadd.f32 %v6411_v9, %v13118_v36  ;;  %v6452_v62 = vpop.f32.mrf.mxu1  ;;  %v13866_v40 = vld [vmem:[#allocation27_spill] sm:$0xff] }
 0x455   : > { %v6413_v14 = vpop.f32.mrf.mxu0  ;;  %v7895_v52 = vrot.slane %v13703_v37, %v13866_v40 }
 0x456   : > { %v13696_v26 = vadd.f32 %v6452_v62, %v6412_v38  ;;  %v6454_v55 = vpop.f32.mrf.mxu1 }
 0x457   : > { %v6414_v31 = vpop.f32.mrf.mxu0 }
 0x458   : > { %v6455_v28 = vpop.f32.mrf.mxu1 }
 0x491   : > { %v7664_v2 = vpop.f32.mrf.mxu0 }
 0x492   : > { %v7705_v32 = vpop.f32.mrf.mxu1 }
 0x493   : > { %v7706_v0 = vadd.f32 %v7705_v32, %v7664_v2  ;;  %v7666_v5 = vpop.f32.mrf.mxu0  ;;  %v7903_v32 = vrot.slane %v13703_v37, %v11786_v16 }
 0x494   : > { %v7707_v6 = vpop.f32.mrf.mxu1 }
 0x495   : > { %v7876_v61 = vadd.f32 %v7706_v0, %v13317_v18  ;;  %v7708_v10 = vadd.f32 %v7707_v6, %v7666_v5  ;;  %v7668_v13 = vpop.f32.mrf.mxu0  ;;  %v13710_v18 = vld [vmem:[%s13773_s4 + $0x1] ss:$4 sm:$0x3f]  ;;  %v7975_v5 = vrot.slane %v13717_v60, %v13865_v12 }
 0x496   : > { %v7709_v63 = vpop.f32.mrf.mxu1  ;;  %v7944_v56 = vrot.slane %v13710_v18, %v11788_v39  ;;  %v7936_v14 = vrot.slane %v13710_v18, %v13865_v12  ;;  %v7940_v28 = vrot.slane %v13710_v18, %v13866_v40 }
 0x497   : > { %v7877_v8 = vadd.f32 %v7708_v10, %v13324_v46  ;;  %v7669_v36 = vpop.f32.mrf.mxu0  ;;  %v7914_v45 = vadd.f32 %v7887_v35, %v7876_v61  ;;  %v7932_v46 = vrot.slane %v13710_v18, %v13864_v44  ;;  %v13867_v63 = vld [vmem:[#allocation28_spill] sm:$0xff] }
 0x498   : > { %v7710_v34 = vpop.f32.mrf.mxu1 }
 0x499   : > { %v7920_v17 = vmax.f32 %v7914_v45, 0.0  ;;  %v7979_v34 = vrot.slane %v13717_v60, %v13866_v40 }
 0x49b   : > { %v7959_v49 = vmul.f32 %v7932_v46, %v7920_v17 }
 0x49d   : > { %v7998_v58 = vadd.f32 %v7971_v43, %v7959_v49 }
 0x49f   : > { %v8010_v22 = vrot.slane %v7998_v58, 1 }
 0x4a1   : > { %v8022_v51 = vmax.f32 %v7998_v58, %v8010_v22 }
 0x4d1   : > { %v7746_v41 = vpop.f32.mrf.mxu0 }
 0x4d2   : > { %v7787_v47 = vpop.f32.mrf.mxu1 }
 0x4d3   : > { %v7788_v3 = vadd.f32 %v7787_v47, %v7746_v41  ;;  %v7748_v19 = vpop.f32.mrf.mxu0  ;;  %v7948_v41 = vrot.slane %v13710_v18, %v11786_v16 }
 0x4d4   : > { %v7789_v24 = vpop.f32.mrf.mxu1 }
 0x4d5   : > { %v7878_v27 = vadd.f32 %v7788_v3, %v13519_v53  ;;  %v7790_v33 = vadd.f32 %v7789_v24, %v7748_v19  ;;  %v7750_v30 = vpop.f32.mrf.mxu0  ;;  %v7952_v24 = vrot.slane %v13710_v18, %v13867_v63 }
 0x4d6   : > { %v7791_v25 = vpop.f32.mrf.mxu1  ;;  %v7991_v30 = vrot.slane %v13717_v60, %v13867_v63 }
 0x4d7   : > { %v7879_v7 = vadd.f32 %v7790_v33, %v13526_v50  ;;  %v7751_v59 = vpop.f32.mrf.mxu0  ;;  %v7891_v50 = vrot.slane %v13703_v37, %v13865_v12  ;;  %v7916_v38 = vadd.f32 %v7895_v52, %v7878_v27 }
 0x4d8   : > { %v7792_v23 = vpop.f32.mrf.mxu1 }
 0x4d9   : > { %v7917_v48 = vadd.f32 %v7899_v42, %v7879_v7  ;;  %v7915_v9 = vadd.f32 %v7891_v50, %v7877_v8  ;;  %v7922_v31 = vmax.f32 %v7916_v38, 0.0  ;;  %v7907_v8 = vrot.slane %v13703_v37, %v13867_v63 }
 0x4db   : > { %v7923_v53 = vmax.f32 %v7917_v48, 0.0  ;;  %v7921_v62 = vmax.f32 %v7915_v9, 0.0  ;;  %v7961_v35 = vmul.f32 %v7940_v28, %v7922_v31 }
 0x4dd   : > { %v7962_v4 = vmul.f32 %v7944_v56, %v7923_v53  ;;  %v7960_v61 = vmul.f32 %v7936_v14, %v7921_v62  ;;  %v8000_v27 = vadd.f32 %v7979_v34, %v7961_v35 }
 0x4df   : > { %v8001_v20 = vadd.f32 %v7983_v11, %v7962_v4  ;;  %v7999_v3 = vadd.f32 %v7975_v5, %v7960_v61  ;;  %v8012_v43 = vrot.slane %v8000_v27, 1 }
 0x4e1   : > { %v8013_v1 = vrot.slane %v8001_v20, 1  ;;  %v8011_v25 = vrot.slane %v7999_v3, 1  ;;  %v8024_v56 = vmax.f32 %v8000_v27, %v8012_v43 }
 0x4e3   : > { %v8025_v29 = vmax.f32 %v8001_v20, %v8013_v1  ;;  %v8023_v59 = vmax.f32 %v7999_v3, %v8011_v25 }
 0x4e5   : > { %v8028_v54 = vmax.f32 %v8022_v51, %v8025_v29 }
 0x511   : > { %v7828_v39 = vpop.f32.mrf.mxu0 }
 0x512   : > { %v7869_v55 = vpop.f32.mrf.mxu1 }
 0x513   : > { %v7870_v2 = vadd.f32 %v7869_v55, %v7828_v39  ;;  %v7830_v0 = vpop.f32.mrf.mxu0 }
 0x514   : > { %v7871_v6 = vpop.f32.mrf.mxu1 }
 0x515   : > { %v7880_v10 = vadd.f32 %v7870_v2, %v13693_v57  ;;  %v7872_v13 = vadd.f32 %v7871_v6, %v7830_v0  ;;  %v7832_v36 = vpop.f32.mrf.mxu0  ;;  %v7987_v57 = vrot.slane %v13717_v60, %v11786_v16 }
 0x516   : > { %v7873_v44 = vpop.f32.mrf.mxu1 }
 0x517   : > { %v7918_v45 = vadd.f32 %v7903_v32, %v7880_v10  ;;  %v7881_v47 = vadd.f32 %v7872_v13, %v13696_v26  ;;  %v7833_v17 = vpop.f32.mrf.mxu0 }
 0x518   : > { %v7874_v46 = vpop.f32.mrf.mxu1 }
 0x519   : > { %v7924_v19 = vmax.f32 %v7918_v45, 0.0  ;;  %v7919_v37 = vadd.f32 %v7907_v8, %v7881_v47 }
 0x51b   : > { %v7963_v33 = vmul.f32 %v7948_v41, %v7924_v19  ;;  %v7925_v42 = vmax.f32 %v7919_v37, 0.0 }
 0x51d   : > { %v8002_v26 = vadd.f32 %v7987_v57, %v7963_v33  ;;  %v7964_v49 = vmul.f32 %v7952_v24, %v7925_v42 }
 0x51f   : > { %v8014_v7 = vrot.slane %v8002_v26, 1  ;;  %v8003_v16 = vadd.f32 %v7991_v30, %v7964_v49 }
 0x521   : > { %v8026_v23 = vmax.f32 %v8002_v26, %v8014_v7  ;;  %v8015_v48 = vrot.slane %v8003_v16, 1 }
 0x523   : > { %v8029_v58 = vmax.f32 %v8023_v59, %v8026_v23  ;;  %v8027_v53 = vmax.f32 %v8003_v16, %v8015_v48 }
 0x525   : > { %v8034_v18 = vcombine.low %v8028_v54, %v8029_v58  ;;  %v8066_v11 = vcombine.high %v8028_v54, %v8029_v58  ;;  %v8030_v4 = vmax.f32 %v8024_v56, %v8027_v53 }
 0x527   : > { %v8041_v22 = vrot.slane %v8034_v18, %v13860_v21  ;;  %v8048_v60 = vrot.slane %v8030_v4, %v13860_v21  ;;  %v8067_v20 = vcombine.high %v8030_v4, %v8030_v4  ;;  %v8074_v1 = vrot.slane %v8066_v11, %v13860_v21 }
 0x529   : > { %v8049_v51 = vcombine.low %v8041_v22, %v8048_v60  ;;  %v8081_v29 = vrot.slane %v8067_v20, %v13860_v21 }
 0x52b   : > { %v8056_v54 = vrot.slane %v8049_v51, %v13860_v21  ;;  %v8082_v12 = vcombine.low %v8074_v1, %v8081_v29 }
 0x52d   : > { %8061 = vst.msk [vmem:[%s224_s26] ss:$4 sm:$0x7] %vm8059_vm6, %v8056_v54  ;;  %v8062_v50 = vcombine.high %v8056_v54, %v8056_v54  ;;  %v8089_v40 = vrot.slane %v8082_v12, %v13860_v21 }
 0x52f   : > { %9584 = vst.msk [vmem:[%s224_s26 + $0x1] ss:$4 sm:$0x7] %vm8059_vm6, %v8062_v50  ;;  %9585 = vst.msk [vmem:[%s224_s26 + $0x2] ss:$4 sm:$0x7] %vm8059_vm6, %v8089_v40 }
 0x530 PF: > { %s15_s18 = sadd.s32 1, %s10760_s18  }
 0x531   : > { %p12_p4 = scmp.ge.s32.totalorder %s15_s18, 4  }
 0x533   :  { %14 = sbr.rel (!%p12_p4) target bundleno = 1 (0x1), region = 96 }

</bundles_post_ra>
